<compile_context>
chip_gen: v5e
topology: v5e:2x2
jax: 0.10.0
libtpu: 0.0.40
codegen_flags: <defaults>
</compile_context>

<pallas_src>
import math

import jax
import jax.numpy as jnp
from jax import lax
from jax.experimental import pallas as pl
from jax.experimental.pallas import tpu as pltpu

# ----------------------------- model config ---------------------------------
VOCAB_SIZE = 64
HIDDEN = 32
MAX_POS = 8
NUM_LAYERS = 2
NUM_HEADS = 4
HEAD_DIM = HIDDEN // NUM_HEADS
LN_EPS = 1e-12
INIT_RANGE = 0.02
EXP_EPS = 1e-7          # min-norm clamp for exp/log maps
BALL_EPS = 1e-5         # keep points strictly inside the unit ball for log map
NEG_INF = -1e9

BATCH = 2
SEQ = MAX_POS
BS = BATCH * SEQ

LANE = 128
VOCAB_PAD = ((VOCAB_SIZE + LANE - 1) // LANE) * LANE            # 128
ATTN_PAD = ((SEQ + LANE - 1) // LANE) * LANE                    # 128
HID_W = ((-(-((NUM_LAYERS + 1) * HIDDEN) // LANE)) * LANE)      # 128
HID_SLOTS = HID_W // HIDDEN                                     # 4 slots of D


# ----------------------------- fused Pallas kernel ---------------------------
def fused_forward_kernel(
        emb_ref, mask_ref, ln_g_ref, ln_b_ref, w_in_ref, b_in_ref,
        wq_ref, bq_ref, wk_ref, bk_ref, wv_ref, bv_ref,
        wo_ref, bo_ref, lng_ref, lnb_ref, w_out_ref, b_out_ref,
        hid_ref, attn_ref, logits_ref):
    """Whole HyperbolicTransformer forward, fully fused, one grid step."""
    f32 = jnp.float32
    bf16 = jnp.bfloat16
    inv_sqrt_d = 1.0 / math.sqrt(HEAD_DIM)

    # ---- embeddings: LayerNorm -> dropout(id) -> input proj -> exp-map(0) ---
    x = emb_ref[...]                                         # (BS, D) f32
    mu = jnp.mean(x, axis=-1, keepdims=True)
    var = jnp.mean((x - mu) ** 2, axis=-1, keepdims=True)
    emb_ln = (x - mu) * lax.rsqrt(var + LN_EPS) * ln_g_ref[...] + ln_b_ref[...]

    v_in = jnp.dot(emb_ln.astype(bf16), w_in_ref[...],
                   preferred_element_type=f32) + b_in_ref[...]
    # Poincare-ball exp map at the origin (curvature c = 1):
    #   exp_0(v) = tanh(||v||) * v / ||v||
    nrm = jnp.sqrt(jnp.sum(v_in * v_in, axis=-1, keepdims=True))
    nrm = jnp.maximum(nrm, EXP_EPS)
    cur = jnp.tanh(nrm) * v_in * pl.reciprocal(nrm, approx=True)

    # ---- additive key mask (shared across layers / heads), kept in f32 ------
    key_bias = (1.0 - mask_ref[...]) * NEG_INF               # (B, 1, S)

    attn_zero = jnp.zeros((NUM_HEADS, SEQ, ATTN_PAD - SEQ), f32)   # hoisted
    hidden_slots = [emb_ln]

    for l in range(NUM_LAYERS):                              # static unroll
        # TODO(synk): HyperbolicGraphAttention source not provided; standard
        # scaled-dot-product multi-head attention + residual + LayerNorm used.
        x_bf = cur.astype(bf16)
        q = jnp.dot(x_bf, wq_ref[l], preferred_element_type=f32) + bq_ref[l]
        k = jnp.dot(x_bf, wk_ref[l], preferred_element_type=f32) + bk_ref[l]
        v = jnp.dot(x_bf, wv_ref[l], preferred_element_type=f32) + bv_ref[l]

        ctx_rows = []
        for b in range(BATCH):                               # static unroll
            rows = slice(b * SEQ, (b + 1) * SEQ)
            qh = q[rows].reshape(SEQ, NUM_HEADS, HEAD_DIM).transpose(1, 0, 2)
            kh = k[rows].reshape(SEQ, NUM_HEADS, HEAD_DIM).transpose(1, 0, 2)
            vh = v[rows].reshape(SEQ, NUM_HEADS, HEAD_DIM).transpose(1, 0, 2)

            # batched per-head contraction on the MXU (f32 score path)
            scores = jnp.einsum('hqd,hkd->hqk',
                                qh.astype(bf16), kh.astype(bf16),
                                preferred_element_type=f32) * inv_sqrt_d
            scores = scores + key_bias[b][None]              # (H,S,S)+(1,1,S)
            smax = jnp.max(scores, axis=-1, keepdims=True)
            p = jnp.exp(scores - smax)
            denom = jnp.sum(p, axis=-1, keepdims=True)
            attn = p * pl.reciprocal(denom, approx=True)     # (H, S, S)

            # lane-dense (key dim padded to 128) attention-weight store
            attn_ref[l, b] = jnp.concatenate([attn, attn_zero], axis=-1)

            ctx = jnp.einsum('hqk,hkd->hqd',
                             attn.astype(bf16), vh.astype(bf16),
                             preferred_element_type=f32)     # (H, S, HD)
            ctx_rows.append(ctx.transpose(1, 0, 2).reshape(SEQ, HIDDEN))
        ctx_all = jnp.concatenate(ctx_rows, axis=0)          # (BS, D)

        o = jnp.dot(ctx_all.astype(bf16), wo_ref[l],
                    preferred_element_type=f32) + bo_ref[l]
        h = o + cur                                          # residual
        mu = jnp.mean(h, axis=-1, keepdims=True)
        var = jnp.mean((h - mu) ** 2, axis=-1, keepdims=True)
        cur = (h - mu) * lax.rsqrt(var + LN_EPS) * lng_ref[l] + lnb_ref[l]
        hidden_slots.append(cur)

    # ---- packed, lane-dense hidden-state slab (emb_ln | layer outs | pad) ---
    n_pad_slots = HID_SLOTS - len(hidden_slots)
    if n_pad_slots > 0:
        hidden_slots.append(jnp.zeros((BS, n_pad_slots * HIDDEN), f32))
    hid_ref[...] = jnp.concatenate(hidden_slots, axis=-1)    # (BS, HID_W)

    # ---- log-map at origin + output projection (vocab padded to 128) --------
    #   log_0(x) = artanh(||x||) * x / ||x||
    nrm = jnp.sqrt(jnp.sum(cur * cur, axis=-1, keepdims=True))
    n = jnp.clip(nrm, EXP_EPS, 1.0 - BALL_EPS)
    scale = (0.5 * jnp.log((1.0 + n) * pl.reciprocal(1.0 - n, approx=True))
             * pl.reciprocal(n, approx=True))
    y = cur * scale
    logits_ref[...] = jnp.dot(y.astype(bf16), w_out_ref[...],
                              preferred_element_type=f32) + b_out_ref[...]


# ----------------------------- pallas_call wrapper ---------------------------
def _full_spec(shape):
    zeros = (0,) * len(shape)
    return pl.BlockSpec(tuple(shape), lambda i, _z=zeros: _z)


def _fused_forward(emb2d, mask3, p):
    bf16 = jnp.bfloat16
    out_shapes = (
        jax.ShapeDtypeStruct((BS, HID_W), jnp.float32),
        jax.ShapeDtypeStruct((NUM_LAYERS, BATCH, NUM_HEADS, SEQ, ATTN_PAD),
                             jnp.float32),
        jax.ShapeDtypeStruct((BS, VOCAB_PAD), jnp.float32),
    )
    inputs = (
        emb2d, mask3,
        p["ln_g"], p["ln_b"], p["w_in"].astype(bf16), p["b_in"],
        p["wq"].astype(bf16), p["bq"], p["wk"].astype(bf16), p["bk"],
        p["wv"].astype(bf16), p["bv"], p["wo"].astype(bf16), p["bo"],
        p["ln2_g"], p["ln2_b"],
        p["w_out"].astype(bf16), p["b_out"],
    )
    return pl.pallas_call(
        fused_forward_kernel,
        out_shape=out_shapes,
        grid_spec=pltpu.PrefetchScalarGridSpec(
            num_scalar_prefetch=0,
            grid=(1,),
            in_specs=[_full_spec(x.shape) for x in inputs],
            out_specs=[_full_spec(s.shape) for s in out_shapes]),
        compiler_params=pltpu.CompilerParams(
            dimension_semantics=("arbitrary",),
            vmem_limit_bytes=8 * 1024 * 1024),
    )(*inputs)


# ----------------------------- parameters & forward --------------------------
def init_params(key):
    ks = iter(jax.random.split(key, 32))
    nrm = lambda shape: (INIT_RANGE
                         * jax.random.normal(next(ks), shape, jnp.float32))
    tok_emb = nrm((VOCAB_SIZE, HIDDEN)).at[0].set(0.0)       # padding_idx=0
    w_out = nrm((HIDDEN, VOCAB_SIZE))                        # [in, out]
    w_out_p = jnp.zeros((HIDDEN, VOCAB_PAD), jnp.float32).at[:, :VOCAB_SIZE].set(w_out)
    return {
        "tok_emb": tok_emb,
        "pos_emb": nrm((MAX_POS, HIDDEN)),
        "ln_g": jnp.ones((1, HIDDEN), jnp.float32),
        "ln_b": jnp.zeros((1, HIDDEN), jnp.float32),
        "w_in": nrm((HIDDEN, HIDDEN)),                       # [in, out]
        "b_in": jnp.zeros((1, HIDDEN), jnp.float32),
        # per-layer weights stacked along a leading layer axis
        "wq": nrm((NUM_LAYERS, HIDDEN, HIDDEN)),
        "bq": jnp.zeros((NUM_LAYERS, 1, HIDDEN), jnp.float32),
        "wk": nrm((NUM_LAYERS, HIDDEN, HIDDEN)),
        "bk": jnp.zeros((NUM_LAYERS, 1, HIDDEN), jnp.float32),
        "wv": nrm((NUM_LAYERS, HIDDEN, HIDDEN)),
        "bv": jnp.zeros((NUM_LAYERS, 1, HIDDEN), jnp.float32),
        "wo": nrm((NUM_LAYERS, HIDDEN, HIDDEN)),
        "bo": jnp.zeros((NUM_LAYERS, 1, HIDDEN), jnp.float32),
        "ln2_g": jnp.ones((NUM_LAYERS, 1, HIDDEN), jnp.float32),
        "ln2_b": jnp.zeros((NUM_LAYERS, 1, HIDDEN), jnp.float32),
        "w_out": w_out_p,                                    # [in, out] padded
        "b_out": jnp.zeros((1, VOCAB_PAD), jnp.float32),
    }


def hyperbolic_transformer_forward(params, input_ids, attention_mask=None):
    B, S = input_ids.shape
    assert (B, S) == (BATCH, SEQ), "kernel is specialized to (BATCH, SEQ)"
    if attention_mask is None:
        attention_mask = jnp.ones((B, S), jnp.float32)
    mask3 = attention_mask.astype(jnp.float32).reshape(B, 1, S)

    position_ids = jnp.broadcast_to(jnp.arange(S, dtype=jnp.int32), (B, S))
    # embedding gathers stay in plain JAX (glue); everything else in the kernel
    emb = (jnp.take(params["tok_emb"], input_ids, axis=0)
           + jnp.take(params["pos_emb"], position_ids, axis=0))
    emb2d = emb.reshape(B * S, HIDDEN)

    hid, attn_pad, logits_pad = _fused_forward(emb2d, mask3, params)

    embeddings_ln = hid[:, :HIDDEN].reshape(B, S, HIDDEN)
    layer_embs = [hid[:, (i + 1) * HIDDEN:(i + 2) * HIDDEN].reshape(B, S, HIDDEN)
                  for i in range(NUM_LAYERS)]
    attn_w = attn_pad[..., :SEQ]                             # (L, B, H, S, S)
    logits = logits_pad[:, :VOCAB_SIZE].reshape(B, S, VOCAB_SIZE)

    layer_outputs = [{"embeddings": layer_embs[i], "attention": attn_w[i]}
                     for i in range(NUM_LAYERS)]
    # TODO(synk): 'patterns' / graph updates / community detection omitted
    # (component sources not provided; they do not affect the returned logits).
    return {"logits": logits,
            "last_hidden_state": layer_embs[-1],
            "layer_outputs": layer_outputs,
            "embeddings": embeddings_ln}


# ----------------------------- main ------------------------------------------
if __name__ == "__main__":
    key = jax.random.PRNGKey(0)
    pkey, dkey = jax.random.split(key)
    params = init_params(pkey)

    B, S = BATCH, SEQ
    input_ids = jax.random.randint(dkey, (B, S), 0, VOCAB_SIZE, dtype=jnp.int32)
    attention_mask = jnp.ones((B, S), jnp.float32)

    forward = jax.jit(hyperbolic_transformer_forward)
    out = forward(params, input_ids, attention_mask)
    jax.block_until_ready(out["logits"])
    jax.block_until_ready(out["last_hidden_state"])

    assert out["logits"].shape == (B, S, VOCAB_SIZE)
    assert out["last_hidden_state"].shape == (B, S, HIDDEN)
    assert out["embeddings"].shape == (B, S, HIDDEN)
    assert out["layer_outputs"][0]["attention"].shape == (B, NUM_HEADS, S, S)
    assert len(out["layer_outputs"]) == NUM_LAYERS
    print("KERNEL_OK")
</pallas_src>

<mosaic_0001>
module attributes {stable_mosaic.version = 11 : i64} {
  func.func @fused_forward_kernel(%arg0: i32, %arg1: memref<16x32xf32, #tpu.memory_space<vmem>>, %arg2: memref<2x1x8xf32, #tpu.memory_space<vmem>>, %arg3: memref<1x32xf32, #tpu.memory_space<vmem>>, %arg4: memref<1x32xf32, #tpu.memory_space<vmem>>, %arg5: memref<32x32xbf16, #tpu.memory_space<vmem>>, %arg6: memref<1x32xf32, #tpu.memory_space<vmem>>, %arg7: memref<2x32x32xbf16, #tpu.memory_space<vmem>>, %arg8: memref<2x1x32xf32, #tpu.memory_space<vmem>>, %arg9: memref<2x32x32xbf16, #tpu.memory_space<vmem>>, %arg10: memref<2x1x32xf32, #tpu.memory_space<vmem>>, %arg11: memref<2x32x32xbf16, #tpu.memory_space<vmem>>, %arg12: memref<2x1x32xf32, #tpu.memory_space<vmem>>, %arg13: memref<2x32x32xbf16, #tpu.memory_space<vmem>>, %arg14: memref<2x1x32xf32, #tpu.memory_space<vmem>>, %arg15: memref<2x1x32xf32, #tpu.memory_space<vmem>>, %arg16: memref<2x1x32xf32, #tpu.memory_space<vmem>>, %arg17: memref<32x128xbf16, #tpu.memory_space<vmem>>, %arg18: memref<1x128xf32, #tpu.memory_space<vmem>>, %arg19: memref<16x128xf32, #tpu.memory_space<vmem>>, %arg20: memref<2x2x4x8x128xf32, #tpu.memory_space<vmem>>, %arg21: memref<16x128xf32, #tpu.memory_space<vmem>>) attributes {dimension_semantics = [#tpu.dimension_semantics<arbitrary>], iteration_bounds = array<i64: 1>, scalar_prefetch = 0 : i64, scratch_operands = 0 : i64, tpu.core_type = #tpu.core_type<tc>, window_params = [{pipeline_mode = #tpu.pipeline_mode<synchronous>, transform_indices = @transform_0, window_bounds = array<i64: 16, 32>}, {pipeline_mode = #tpu.pipeline_mode<synchronous>, transform_indices = @transform_1, window_bounds = array<i64: 2, 1, 8>}, {pipeline_mode = #tpu.pipeline_mode<synchronous>, transform_indices = @transform_2, window_bounds = array<i64: 1, 32>}, {pipeline_mode = #tpu.pipeline_mode<synchronous>, transform_indices = @transform_3, window_bounds = array<i64: 1, 32>}, {pipeline_mode = #tpu.pipeline_mode<synchronous>, transform_indices = @transform_4, window_bounds = array<i64: 32, 32>}, {pipeline_mode = #tpu.pipeline_mode<synchronous>, transform_indices = @transform_5, window_bounds = array<i64: 1, 32>}, {pipeline_mode = #tpu.pipeline_mode<synchronous>, transform_indices = @transform_6, window_bounds = array<i64: 2, 32, 32>}, {pipeline_mode = #tpu.pipeline_mode<synchronous>, transform_indices = @transform_7, window_bounds = array<i64: 2, 1, 32>}, {pipeline_mode = #tpu.pipeline_mode<synchronous>, transform_indices = @transform_8, window_bounds = array<i64: 2, 32, 32>}, {pipeline_mode = #tpu.pipeline_mode<synchronous>, transform_indices = @transform_9, window_bounds = array<i64: 2, 1, 32>}, {pipeline_mode = #tpu.pipeline_mode<synchronous>, transform_indices = @transform_10, window_bounds = array<i64: 2, 32, 32>}, {pipeline_mode = #tpu.pipeline_mode<synchronous>, transform_indices = @transform_11, window_bounds = array<i64: 2, 1, 32>}, {pipeline_mode = #tpu.pipeline_mode<synchronous>, transform_indices = @transform_12, window_bounds = array<i64: 2, 32, 32>}, {pipeline_mode = #tpu.pipeline_mode<synchronous>, transform_indices = @transform_13, window_bounds = array<i64: 2, 1, 32>}, {pipeline_mode = #tpu.pipeline_mode<synchronous>, transform_indices = @transform_14, window_bounds = array<i64: 2, 1, 32>}, {pipeline_mode = #tpu.pipeline_mode<synchronous>, transform_indices = @transform_15, window_bounds = array<i64: 2, 1, 32>}, {pipeline_mode = #tpu.pipeline_mode<synchronous>, transform_indices = @transform_16, window_bounds = array<i64: 32, 128>}, {pipeline_mode = #tpu.pipeline_mode<synchronous>, transform_indices = @transform_17, window_bounds = array<i64: 1, 128>}, {pipeline_mode = #tpu.pipeline_mode<synchronous>, transform_indices = @transform_18, window_bounds = array<i64: 16, 128>}, {pipeline_mode = #tpu.pipeline_mode<synchronous>, transform_indices = @transform_19, window_bounds = array<i64: 2, 2, 4, 8, 128>}, {pipeline_mode = #tpu.pipeline_mode<synchronous>, transform_indices = @transform_20, window_bounds = array<i64: 16, 128>}]} {
    %c0 = arith.constant 0 : index
    %c0_0 = arith.constant 0 : index
    %0 = vector.load %arg1[%c0, %c0_0] : memref<16x32xf32, #tpu.memory_space<vmem>>, vector<16x32xf32>
    %cst = arith.constant dense<0.000000e+00> : vector<16xf32>
    %1 = vector.multi_reduction <add>, %0, %cst [1] : vector<16x32xf32> to vector<16xf32>
    %2 = vector.shape_cast %1 : vector<16xf32> to vector<16x1xf32>
    %cst_1 = arith.constant 3.200000e+01 : f32
    %3 = vector.broadcast %cst_1 : f32 to vector<16x1xf32>
    %4 = arith.divf %2, %3 : vector<16x1xf32>
    %5 = vector.broadcast %4 : vector<16x1xf32> to vector<16x32xf32>
    %6 = arith.subf %0, %5 : vector<16x32xf32>
    %7 = arith.mulf %6, %6 : vector<16x32xf32>
    %cst_2 = arith.constant dense<0.000000e+00> : vector<16xf32>
    %8 = vector.multi_reduction <add>, %7, %cst_2 [1] : vector<16x32xf32> to vector<16xf32>
    %9 = vector.shape_cast %8 : vector<16xf32> to vector<16x1xf32>
    %cst_3 = arith.constant 3.200000e+01 : f32
    %10 = vector.broadcast %cst_3 : f32 to vector<16x1xf32>
    %11 = arith.divf %9, %10 : vector<16x1xf32>
    %12 = vector.broadcast %4 : vector<16x1xf32> to vector<16x32xf32>
    %13 = arith.subf %0, %12 : vector<16x32xf32>
    %cst_4 = arith.constant 9.99999996E-13 : f32
    %14 = vector.broadcast %cst_4 : f32 to vector<16x1xf32>
    %15 = arith.addf %11, %14 : vector<16x1xf32>
    %16 = math.rsqrt %15 : vector<16x1xf32>
    %17 = vector.broadcast %16 : vector<16x1xf32> to vector<16x32xf32>
    %18 = arith.mulf %13, %17 : vector<16x32xf32>
    %c0_5 = arith.constant 0 : index
    %c0_6 = arith.constant 0 : index
    %19 = vector.load %arg3[%c0_5, %c0_6] : memref<1x32xf32, #tpu.memory_space<vmem>>, vector<1x32xf32>
    %20 = vector.broadcast %19 : vector<1x32xf32> to vector<16x32xf32>
    %21 = arith.mulf %18, %20 : vector<16x32xf32>
    %c0_7 = arith.constant 0 : index
    %c0_8 = arith.constant 0 : index
    %22 = vector.load %arg4[%c0_7, %c0_8] : memref<1x32xf32, #tpu.memory_space<vmem>>, vector<1x32xf32>
    %23 = vector.broadcast %22 : vector<1x32xf32> to vector<16x32xf32>
    %24 = arith.addf %21, %23 : vector<16x32xf32>
    %25 = arith.truncf %24 : vector<16x32xf32> to vector<16x32xbf16>
    %c0_9 = arith.constant 0 : index
    %c0_10 = arith.constant 0 : index
    %26 = vector.load %arg5[%c0_9, %c0_10] : memref<32x32xbf16, #tpu.memory_space<vmem>>, vector<32x32xbf16>
    %cst_11 = arith.constant dense<0.000000e+00> : vector<16x32xf32>
    %27 = tpu.matmul %25, %26, %cst_11 {dimension_numbers = #tpu.dot_dimension_numbers<[1], [0], [0], [1], [0, 0, 1, 1], [], []>} : vector<16x32xbf16>, vector<32x32xbf16>, vector<16x32xf32> -> vector<16x32xf32>
    %c0_12 = arith.constant 0 : index
    %c0_13 = arith.constant 0 : index
    %28 = vector.load %arg6[%c0_12, %c0_13] : memref<1x32xf32, #tpu.memory_space<vmem>>, vector<1x32xf32>
    %29 = vector.broadcast %28 : vector<1x32xf32> to vector<16x32xf32>
    %30 = arith.addf %27, %29 : vector<16x32xf32>
    %31 = arith.mulf %30, %30 : vector<16x32xf32>
    %cst_14 = arith.constant dense<0.000000e+00> : vector<16xf32>
    %32 = vector.multi_reduction <add>, %31, %cst_14 [1] : vector<16x32xf32> to vector<16xf32>
    %33 = vector.shape_cast %32 : vector<16xf32> to vector<16x1xf32>
    %34 = math.sqrt %33 : vector<16x1xf32>
    %cst_15 = arith.constant 1.000000e-07 : f32
    %35 = vector.broadcast %cst_15 : f32 to vector<16x1xf32>
    %36 = arith.maximumf %34, %35 : vector<16x1xf32>
    %37 = math.tanh %36 : vector<16x1xf32>
    %38 = vector.broadcast %37 : vector<16x1xf32> to vector<16x32xf32>
    %39 = arith.mulf %38, %30 : vector<16x32xf32>
    %40 = tpu.reciprocal %36 {approx = true} : vector<16x1xf32> -> vector<16x1xf32>
    %41 = vector.broadcast %40 : vector<16x1xf32> to vector<16x32xf32>
    %42 = arith.mulf %39, %41 : vector<16x32xf32>
    %c0_16 = arith.constant 0 : index
    %c0_17 = arith.constant 0 : index
    %c0_18 = arith.constant 0 : index
    %43 = vector.load %arg2[%c0_16, %c0_17, %c0_18] : memref<2x1x8xf32, #tpu.memory_space<vmem>>, vector<2x1x8xf32>
    %cst_19 = arith.constant 1.000000e+00 : f32
    %44 = vector.broadcast %cst_19 : f32 to vector<2x1x8xf32>
    %45 = arith.subf %44, %43 : vector<2x1x8xf32>
    %cst_20 = arith.constant -1.000000e+09 : f32
    %46 = vector.broadcast %cst_20 : f32 to vector<2x1x8xf32>
    %47 = arith.mulf %45, %46 : vector<2x1x8xf32>
    %cst_21 = arith.constant 0.000000e+00 : f32
    %48 = vector.broadcast %cst_21 : f32 to vector<4x8x120xf32>
    %49 = arith.truncf %42 : vector<16x32xf32> to vector<16x32xbf16>
    %c0_22 = arith.constant 0 : index
    %c0_23 = arith.constant 0 : index
    %c0_24 = arith.constant 0 : index
    %50 = vector.load %arg7[%c0_22, %c0_23, %c0_24] : memref<2x32x32xbf16, #tpu.memory_space<vmem>>, vector<1x32x32xbf16>
    %51 = vector.shape_cast %50 : vector<1x32x32xbf16> to vector<32x32xbf16>
    %cst_25 = arith.constant dense<0.000000e+00> : vector<16x32xf32>
    %52 = tpu.matmul %49, %51, %cst_25 {dimension_numbers = #tpu.dot_dimension_numbers<[1], [0], [0], [1], [0, 0, 1, 1], [], []>} : vector<16x32xbf16>, vector<32x32xbf16>, vector<16x32xf32> -> vector<16x32xf32>
    %c0_26 = arith.constant 0 : index
    %c0_27 = arith.constant 0 : index
    %c0_28 = arith.constant 0 : index
    %53 = vector.load %arg8[%c0_26, %c0_27, %c0_28] : memref<2x1x32xf32, #tpu.memory_space<vmem>>, vector<1x1x32xf32>
    %54 = vector.shape_cast %53 : vector<1x1x32xf32> to vector<1x32xf32>
    %55 = vector.broadcast %54 : vector<1x32xf32> to vector<16x32xf32>
    %56 = arith.addf %52, %55 : vector<16x32xf32>
    %c0_29 = arith.constant 0 : index
    %c0_30 = arith.constant 0 : index
    %c0_31 = arith.constant 0 : index
    %57 = vector.load %arg9[%c0_29, %c0_30, %c0_31] : memref<2x32x32xbf16, #tpu.memory_space<vmem>>, vector<1x32x32xbf16>
    %58 = vector.shape_cast %57 : vector<1x32x32xbf16> to vector<32x32xbf16>
    %cst_32 = arith.constant dense<0.000000e+00> : vector<16x32xf32>
    %59 = tpu.matmul %49, %58, %cst_32 {dimension_numbers = #tpu.dot_dimension_numbers<[1], [0], [0], [1], [0, 0, 1, 1], [], []>} : vector<16x32xbf16>, vector<32x32xbf16>, vector<16x32xf32> -> vector<16x32xf32>
    %c0_33 = arith.constant 0 : index
    %c0_34 = arith.constant 0 : index
    %c0_35 = arith.constant 0 : index
    %60 = vector.load %arg10[%c0_33, %c0_34, %c0_35] : memref<2x1x32xf32, #tpu.memory_space<vmem>>, vector<1x1x32xf32>
    %61 = vector.shape_cast %60 : vector<1x1x32xf32> to vector<1x32xf32>
    %62 = vector.broadcast %61 : vector<1x32xf32> to vector<16x32xf32>
    %63 = arith.addf %59, %62 : vector<16x32xf32>
    %c0_36 = arith.constant 0 : index
    %c0_37 = arith.constant 0 : index
    %c0_38 = arith.constant 0 : index
    %64 = vector.load %arg11[%c0_36, %c0_37, %c0_38] : memref<2x32x32xbf16, #tpu.memory_space<vmem>>, vector<1x32x32xbf16>
    %65 = vector.shape_cast %64 : vector<1x32x32xbf16> to vector<32x32xbf16>
    %cst_39 = arith.constant dense<0.000000e+00> : vector<16x32xf32>
    %66 = tpu.matmul %49, %65, %cst_39 {dimension_numbers = #tpu.dot_dimension_numbers<[1], [0], [0], [1], [0, 0, 1, 1], [], []>} : vector<16x32xbf16>, vector<32x32xbf16>, vector<16x32xf32> -> vector<16x32xf32>
    %c0_40 = arith.constant 0 : index
    %c0_41 = arith.constant 0 : index
    %c0_42 = arith.constant 0 : index
    %67 = vector.load %arg12[%c0_40, %c0_41, %c0_42] : memref<2x1x32xf32, #tpu.memory_space<vmem>>, vector<1x1x32xf32>
    %68 = vector.shape_cast %67 : vector<1x1x32xf32> to vector<1x32xf32>
    %69 = vector.broadcast %68 : vector<1x32xf32> to vector<16x32xf32>
    %70 = arith.addf %66, %69 : vector<16x32xf32>
    %71 = vector.extract_strided_slice %56 {offsets = [0, 0], sizes = [8, 32], strides = [1, 1]} : vector<16x32xf32> to vector<8x32xf32>
    %72 = vector.shape_cast %71 : vector<8x32xf32> to vector<8x4x8xf32>
    %73 = tpu.transpose %72, [1, 0, 2] : vector<8x4x8xf32> -> vector<4x8x8xf32>
    %74 = vector.extract_strided_slice %63 {offsets = [0, 0], sizes = [8, 32], strides = [1, 1]} : vector<16x32xf32> to vector<8x32xf32>
    %75 = vector.shape_cast %74 : vector<8x32xf32> to vector<8x4x8xf32>
    %76 = tpu.transpose %75, [1, 0, 2] : vector<8x4x8xf32> -> vector<4x8x8xf32>
    %77 = vector.extract_strided_slice %70 {offsets = [0, 0], sizes = [8, 32], strides = [1, 1]} : vector<16x32xf32> to vector<8x32xf32>
    %78 = vector.shape_cast %77 : vector<8x32xf32> to vector<8x4x8xf32>
    %79 = tpu.transpose %78, [1, 0, 2] : vector<8x4x8xf32> -> vector<4x8x8xf32>
    %80 = arith.truncf %73 : vector<4x8x8xf32> to vector<4x8x8xbf16>
    %81 = arith.truncf %76 : vector<4x8x8xf32> to vector<4x8x8xbf16>
    "tpu.trace_start"() <{level = 10 : i32, message = "hqd,hkd->hqk"}> : () -> ()
    %cst_43 = arith.constant dense<0.000000e+00> : vector<4x8x8xf32>
    %82 = tpu.matmul %80, %81, %cst_43 {dimension_numbers = #tpu.dot_dimension_numbers<[2], [2], [1], [1], [0, 0, 0, 1, 1, 1], [0], [0]>} : vector<4x8x8xbf16>, vector<4x8x8xbf16>, vector<4x8x8xf32> -> vector<4x8x8xf32>
    "tpu.trace_stop"() : () -> ()
    %cst_44 = arith.constant 0.353553385 : f32
    %83 = vector.broadcast %cst_44 : f32 to vector<4x8x8xf32>
    %84 = arith.mulf %82, %83 : vector<4x8x8xf32>
    %85 = vector.extract_strided_slice %47 {offsets = [0, 0, 0], sizes = [1, 1, 8], strides = [1, 1, 1]} : vector<2x1x8xf32> to vector<1x1x8xf32>
    %86 = vector.shape_cast %85 : vector<1x1x8xf32> to vector<1x8xf32>
    %87 = vector.shape_cast %86 : vector<1x8xf32> to vector<1x1x8xf32>
    %88 = vector.broadcast %87 : vector<1x1x8xf32> to vector<4x8x8xf32>
    %89 = arith.addf %84, %88 : vector<4x8x8xf32>
    %cst_45 = arith.constant dense<0xFF800000> : vector<4x8xf32>
    %90 = vector.multi_reduction <maximumf>, %89, %cst_45 [2] : vector<4x8x8xf32> to vector<4x8xf32>
    %91 = vector.shape_cast %90 : vector<4x8xf32> to vector<4x8x1xf32>
    %92 = vector.broadcast %91 : vector<4x8x1xf32> to vector<4x8x8xf32>
    %93 = arith.subf %89, %92 : vector<4x8x8xf32>
    %94 = math.exp %93 : vector<4x8x8xf32>
    %cst_46 = arith.constant dense<0.000000e+00> : vector<4x8xf32>
    %95 = vector.multi_reduction <add>, %94, %cst_46 [2] : vector<4x8x8xf32> to vector<4x8xf32>
    %96 = vector.shape_cast %95 : vector<4x8xf32> to vector<4x8x1xf32>
    %97 = tpu.reciprocal %96 {approx = true} : vector<4x8x1xf32> -> vector<4x8x1xf32>
    %98 = vector.broadcast %97 : vector<4x8x1xf32> to vector<4x8x8xf32>
    %99 = arith.mulf %94, %98 : vector<4x8x8xf32>
    %100 = tpu.concatenate %99, %48 in 2 : vector<4x8x8xf32>, vector<4x8x120xf32> -> vector<4x8x128xf32>
    %c0_47 = arith.constant 0 : index
    %c0_48 = arith.constant 0 : index
    %c0_49 = arith.constant 0 : index
    %c0_50 = arith.constant 0 : index
    %c0_51 = arith.constant 0 : index
    %101 = vector.load %arg20[%c0_47, %c0_48, %c0_49, %c0_50, %c0_51] : memref<2x2x4x8x128xf32, #tpu.memory_space<vmem>>, vector<1x1x4x8x128xf32>
    %102 = vector.shape_cast %101 : vector<1x1x4x8x128xf32> to vector<4x8x128xf32>
    %103 = vector.shape_cast %100 : vector<4x8x128xf32> to vector<1x1x4x8x128xf32>
    tpu.vector_store %arg20[%c0_47, %c0_48, %c0_49, %c0_50, %c0_51], %103 {strides = array<i32>} : memref<2x2x4x8x128xf32, #tpu.memory_space<vmem>>, vector<1x1x4x8x128xf32>,
    %104 = arith.truncf %99 : vector<4x8x8xf32> to vector<4x8x8xbf16>
    %105 = arith.truncf %79 : vector<4x8x8xf32> to vector<4x8x8xbf16>
    "tpu.trace_start"() <{level = 10 : i32, message = "hqk,hkd->hqd"}> : () -> ()
    %cst_52 = arith.constant dense<0.000000e+00> : vector<4x8x8xf32>
    %106 = tpu.matmul %104, %105, %cst_52 {dimension_numbers = #tpu.dot_dimension_numbers<[2], [1], [1], [2], [0, 0, 0, 1, 1, 2], [0], [0]>} : vector<4x8x8xbf16>, vector<4x8x8xbf16>, vector<4x8x8xf32> -> vector<4x8x8xf32>
    "tpu.trace_stop"() : () -> ()
    %107 = tpu.transpose %106, [1, 0, 2] : vector<4x8x8xf32> -> vector<8x4x8xf32>
    %108 = vector.shape_cast %107 : vector<8x4x8xf32> to vector<8x32xf32>
    %109 = vector.extract_strided_slice %56 {offsets = [8, 0], sizes = [8, 32], strides = [1, 1]} : vector<16x32xf32> to vector<8x32xf32>
    %110 = vector.shape_cast %109 : vector<8x32xf32> to vector<8x4x8xf32>
    %111 = tpu.transpose %110, [1, 0, 2] : vector<8x4x8xf32> -> vector<4x8x8xf32>
    %112 = vector.extract_strided_slice %63 {offsets = [8, 0], sizes = [8, 32], strides = [1, 1]} : vector<16x32xf32> to vector<8x32xf32>
    %113 = vector.shape_cast %112 : vector<8x32xf32> to vector<8x4x8xf32>
    %114 = tpu.transpose %113, [1, 0, 2] : vector<8x4x8xf32> -> vector<4x8x8xf32>
    %115 = vector.extract_strided_slice %70 {offsets = [8, 0], sizes = [8, 32], strides = [1, 1]} : vector<16x32xf32> to vector<8x32xf32>
    %116 = vector.shape_cast %115 : vector<8x32xf32> to vector<8x4x8xf32>
    %117 = tpu.transpose %116, [1, 0, 2] : vector<8x4x8xf32> -> vector<4x8x8xf32>
    %118 = arith.truncf %111 : vector<4x8x8xf32> to vector<4x8x8xbf16>
    %119 = arith.truncf %114 : vector<4x8x8xf32> to vector<4x8x8xbf16>
    "tpu.trace_start"() <{level = 10 : i32, message = "hqd,hkd->hqk"}> : () -> ()
    %cst_53 = arith.constant dense<0.000000e+00> : vector<4x8x8xf32>
    %120 = tpu.matmul %118, %119, %cst_53 {dimension_numbers = #tpu.dot_dimension_numbers<[2], [2], [1], [1], [0, 0, 0, 1, 1, 1], [0], [0]>} : vector<4x8x8xbf16>, vector<4x8x8xbf16>, vector<4x8x8xf32> -> vector<4x8x8xf32>
    "tpu.trace_stop"() : () -> ()
    %cst_54 = arith.constant 0.353553385 : f32
    %121 = vector.broadcast %cst_54 : f32 to vector<4x8x8xf32>
    %122 = arith.mulf %120, %121 : vector<4x8x8xf32>
    %123 = vector.extract_strided_slice %47 {offsets = [1, 0, 0], sizes = [1, 1, 8], strides = [1, 1, 1]} : vector<2x1x8xf32> to vector<1x1x8xf32>
    %124 = vector.shape_cast %123 : vector<1x1x8xf32> to vector<1x8xf32>
    %125 = vector.shape_cast %124 : vector<1x8xf32> to vector<1x1x8xf32>
    %126 = vector.broadcast %125 : vector<1x1x8xf32> to vector<4x8x8xf32>
    %127 = arith.addf %122, %126 : vector<4x8x8xf32>
    %cst_55 = arith.constant dense<0xFF800000> : vector<4x8xf32>
    %128 = vector.multi_reduction <maximumf>, %127, %cst_55 [2] : vector<4x8x8xf32> to vector<4x8xf32>
    %129 = vector.shape_cast %128 : vector<4x8xf32> to vector<4x8x1xf32>
    %130 = vector.broadcast %129 : vector<4x8x1xf32> to vector<4x8x8xf32>
    %131 = arith.subf %127, %130 : vector<4x8x8xf32>
    %132 = math.exp %131 : vector<4x8x8xf32>
    %cst_56 = arith.constant dense<0.000000e+00> : vector<4x8xf32>
    %133 = vector.multi_reduction <add>, %132, %cst_56 [2] : vector<4x8x8xf32> to vector<4x8xf32>
    %134 = vector.shape_cast %133 : vector<4x8xf32> to vector<4x8x1xf32>
    %135 = tpu.reciprocal %134 {approx = true} : vector<4x8x1xf32> -> vector<4x8x1xf32>
    %136 = vector.broadcast %135 : vector<4x8x1xf32> to vector<4x8x8xf32>
    %137 = arith.mulf %132, %136 : vector<4x8x8xf32>
    %138 = tpu.concatenate %137, %48 in 2 : vector<4x8x8xf32>, vector<4x8x120xf32> -> vector<4x8x128xf32>
    %c0_57 = arith.constant 0 : index
    %c1 = arith.constant 1 : index
    %c0_58 = arith.constant 0 : index
    %c0_59 = arith.constant 0 : index
    %c0_60 = arith.constant 0 : index
    %139 = vector.load %arg20[%c0_57, %c1, %c0_58, %c0_59, %c0_60] : memref<2x2x4x8x128xf32, #tpu.memory_space<vmem>>, vector<1x1x4x8x128xf32>
    %140 = vector.shape_cast %139 : vector<1x1x4x8x128xf32> to vector<4x8x128xf32>
    %141 = vector.shape_cast %138 : vector<4x8x128xf32> to vector<1x1x4x8x128xf32>
    tpu.vector_store %arg20[%c0_57, %c1, %c0_58, %c0_59, %c0_60], %141 {strides = array<i32>} : memref<2x2x4x8x128xf32, #tpu.memory_space<vmem>>, vector<1x1x4x8x128xf32>,
    %142 = arith.truncf %137 : vector<4x8x8xf32> to vector<4x8x8xbf16>
    %143 = arith.truncf %117 : vector<4x8x8xf32> to vector<4x8x8xbf16>
    "tpu.trace_start"() <{level = 10 : i32, message = "hqk,hkd->hqd"}> : () -> ()
    %cst_61 = arith.constant dense<0.000000e+00> : vector<4x8x8xf32>
    %144 = tpu.matmul %142, %143, %cst_61 {dimension_numbers = #tpu.dot_dimension_numbers<[2], [1], [1], [2], [0, 0, 0, 1, 1, 2], [0], [0]>} : vector<4x8x8xbf16>, vector<4x8x8xbf16>, vector<4x8x8xf32> -> vector<4x8x8xf32>
    "tpu.trace_stop"() : () -> ()
    %145 = tpu.transpose %144, [1, 0, 2] : vector<4x8x8xf32> -> vector<8x4x8xf32>
    %146 = vector.shape_cast %145 : vector<8x4x8xf32> to vector<8x32xf32>
    %147 = tpu.concatenate %108, %146 in 0 : vector<8x32xf32>, vector<8x32xf32> -> vector<16x32xf32>
    %148 = arith.truncf %147 : vector<16x32xf32> to vector<16x32xbf16>
    %c0_62 = arith.constant 0 : index
    %c0_63 = arith.constant 0 : index
    %c0_64 = arith.constant 0 : index
    %149 = vector.load %arg13[%c0_62, %c0_63, %c0_64] : memref<2x32x32xbf16, #tpu.memory_space<vmem>>, vector<1x32x32xbf16>
    %150 = vector.shape_cast %149 : vector<1x32x32xbf16> to vector<32x32xbf16>
    %cst_65 = arith.constant dense<0.000000e+00> : vector<16x32xf32>
    %151 = tpu.matmul %148, %150, %cst_65 {dimension_numbers = #tpu.dot_dimension_numbers<[1], [0], [0], [1], [0, 0, 1, 1], [], []>} : vector<16x32xbf16>, vector<32x32xbf16>, vector<16x32xf32> -> vector<16x32xf32>
    %c0_66 = arith.constant 0 : index
    %c0_67 = arith.constant 0 : index
    %c0_68 = arith.constant 0 : index
    %152 = vector.load %arg14[%c0_66, %c0_67, %c0_68] : memref<2x1x32xf32, #tpu.memory_space<vmem>>, vector<1x1x32xf32>
    %153 = vector.shape_cast %152 : vector<1x1x32xf32> to vector<1x32xf32>
    %154 = vector.broadcast %153 : vector<1x32xf32> to vector<16x32xf32>
    %155 = arith.addf %151, %154 : vector<16x32xf32>
    %156 = arith.addf %155, %42 : vector<16x32xf32>
    %cst_69 = arith.constant dense<0.000000e+00> : vector<16xf32>
    %157 = vector.multi_reduction <add>, %156, %cst_69 [1] : vector<16x32xf32> to vector<16xf32>
    %158 = vector.shape_cast %157 : vector<16xf32> to vector<16x1xf32>
    %cst_70 = arith.constant 3.200000e+01 : f32
    %159 = vector.broadcast %cst_70 : f32 to vector<16x1xf32>
    %160 = arith.divf %158, %159 : vector<16x1xf32>
    %161 = vector.broadcast %160 : vector<16x1xf32> to vector<16x32xf32>
    %162 = arith.subf %156, %161 : vector<16x32xf32>
    %163 = arith.mulf %162, %162 : vector<16x32xf32>
    %cst_71 = arith.constant dense<0.000000e+00> : vector<16xf32>
    %164 = vector.multi_reduction <add>, %163, %cst_71 [1] : vector<16x32xf32> to vector<16xf32>
    %165 = vector.shape_cast %164 : vector<16xf32> to vector<16x1xf32>
    %cst_72 = arith.constant 3.200000e+01 : f32
    %166 = vector.broadcast %cst_72 : f32 to vector<16x1xf32>
    %167 = arith.divf %165, %166 : vector<16x1xf32>
    %168 = vector.broadcast %160 : vector<16x1xf32> to vector<16x32xf32>
    %169 = arith.subf %156, %168 : vector<16x32xf32>
    %cst_73 = arith.constant 9.99999996E-13 : f32
    %170 = vector.broadcast %cst_73 : f32 to vector<16x1xf32>
    %171 = arith.addf %167, %170 : vector<16x1xf32>
    %172 = math.rsqrt %171 : vector<16x1xf32>
    %173 = vector.broadcast %172 : vector<16x1xf32> to vector<16x32xf32>
    %174 = arith.mulf %169, %173 : vector<16x32xf32>
    %c0_74 = arith.constant 0 : index
    %c0_75 = arith.constant 0 : index
    %c0_76 = arith.constant 0 : index
    %175 = vector.load %arg15[%c0_74, %c0_75, %c0_76] : memref<2x1x32xf32, #tpu.memory_space<vmem>>, vector<1x1x32xf32>
    %176 = vector.shape_cast %175 : vector<1x1x32xf32> to vector<1x32xf32>
    %177 = vector.broadcast %176 : vector<1x32xf32> to vector<16x32xf32>
    %178 = arith.mulf %174, %177 : vector<16x32xf32>
    %c0_77 = arith.constant 0 : index
    %c0_78 = arith.constant 0 : index
    %c0_79 = arith.constant 0 : index
    %179 = vector.load %arg16[%c0_77, %c0_78, %c0_79] : memref<2x1x32xf32, #tpu.memory_space<vmem>>, vector<1x1x32xf32>
    %180 = vector.shape_cast %179 : vector<1x1x32xf32> to vector<1x32xf32>
    %181 = vector.broadcast %180 : vector<1x32xf32> to vector<16x32xf32>
    %182 = arith.addf %178, %181 : vector<16x32xf32>
    %183 = arith.truncf %182 : vector<16x32xf32> to vector<16x32xbf16>
    %c1_80 = arith.constant 1 : index
    %c0_81 = arith.constant 0 : index
    %c0_82 = arith.constant 0 : index
    %184 = vector.load %arg7[%c1_80, %c0_81, %c0_82] : memref<2x32x32xbf16, #tpu.memory_space<vmem>>, vector<1x32x32xbf16>
    %185 = vector.shape_cast %184 : vector<1x32x32xbf16> to vector<32x32xbf16>
    %cst_83 = arith.constant dense<0.000000e+00> : vector<16x32xf32>
    %186 = tpu.matmul %183, %185, %cst_83 {dimension_numbers = #tpu.dot_dimension_numbers<[1], [0], [0], [1], [0, 0, 1, 1], [], []>} : vector<16x32xbf16>, vector<32x32xbf16>, vector<16x32xf32> -> vector<16x32xf32>
    %c1_84 = arith.constant 1 : index
    %c0_85 = arith.constant 0 : index
    %c0_86 = arith.constant 0 : index
    %187 = vector.load %arg8[%c1_84, %c0_85, %c0_86] : memref<2x1x32xf32, #tpu.memory_space<vmem>>, vector<1x1x32xf32>
    %188 = vector.shape_cast %187 : vector<1x1x32xf32> to vector<1x32xf32>
    %189 = vector.broadcast %188 : vector<1x32xf32> to vector<16x32xf32>
    %190 = arith.addf %186, %189 : vector<16x32xf32>
    %c1_87 = arith.constant 1 : index
    %c0_88 = arith.constant 0 : index
    %c0_89 = arith.constant 0 : index
    %191 = vector.load %arg9[%c1_87, %c0_88, %c0_89] : memref<2x32x32xbf16, #tpu.memory_space<vmem>>, vector<1x32x32xbf16>
    %192 = vector.shape_cast %191 : vector<1x32x32xbf16> to vector<32x32xbf16>
    %cst_90 = arith.constant dense<0.000000e+00> : vector<16x32xf32>
    %193 = tpu.matmul %183, %192, %cst_90 {dimension_numbers = #tpu.dot_dimension_numbers<[1], [0], [0], [1], [0, 0, 1, 1], [], []>} : vector<16x32xbf16>, vector<32x32xbf16>, vector<16x32xf32> -> vector<16x32xf32>
    %c1_91 = arith.constant 1 : index
    %c0_92 = arith.constant 0 : index
    %c0_93 = arith.constant 0 : index
    %194 = vector.load %arg10[%c1_91, %c0_92, %c0_93] : memref<2x1x32xf32, #tpu.memory_space<vmem>>, vector<1x1x32xf32>
    %195 = vector.shape_cast %194 : vector<1x1x32xf32> to vector<1x32xf32>
    %196 = vector.broadcast %195 : vector<1x32xf32> to vector<16x32xf32>
    %197 = arith.addf %193, %196 : vector<16x32xf32>
    %c1_94 = arith.constant 1 : index
    %c0_95 = arith.constant 0 : index
    %c0_96 = arith.constant 0 : index
    %198 = vector.load %arg11[%c1_94, %c0_95, %c0_96] : memref<2x32x32xbf16, #tpu.memory_space<vmem>>, vector<1x32x32xbf16>
    %199 = vector.shape_cast %198 : vector<1x32x32xbf16> to vector<32x32xbf16>
    %cst_97 = arith.constant dense<0.000000e+00> : vector<16x32xf32>
    %200 = tpu.matmul %183, %199, %cst_97 {dimension_numbers = #tpu.dot_dimension_numbers<[1], [0], [0], [1], [0, 0, 1, 1], [], []>} : vector<16x32xbf16>, vector<32x32xbf16>, vector<16x32xf32> -> vector<16x32xf32>
    %c1_98 = arith.constant 1 : index
    %c0_99 = arith.constant 0 : index
    %c0_100 = arith.constant 0 : index
    %201 = vector.load %arg12[%c1_98, %c0_99, %c0_100] : memref<2x1x32xf32, #tpu.memory_space<vmem>>, vector<1x1x32xf32>
    %202 = vector.shape_cast %201 : vector<1x1x32xf32> to vector<1x32xf32>
    %203 = vector.broadcast %202 : vector<1x32xf32> to vector<16x32xf32>
    %204 = arith.addf %200, %203 : vector<16x32xf32>
    %205 = vector.extract_strided_slice %190 {offsets = [0, 0], sizes = [8, 32], strides = [1, 1]} : vector<16x32xf32> to vector<8x32xf32>
    %206 = vector.shape_cast %205 : vector<8x32xf32> to vector<8x4x8xf32>
    %207 = tpu.transpose %206, [1, 0, 2] : vector<8x4x8xf32> -> vector<4x8x8xf32>
    %208 = vector.extract_strided_slice %197 {offsets = [0, 0], sizes = [8, 32], strides = [1, 1]} : vector<16x32xf32> to vector<8x32xf32>
    %209 = vector.shape_cast %208 : vector<8x32xf32> to vector<8x4x8xf32>
    %210 = tpu.transpose %209, [1, 0, 2] : vector<8x4x8xf32> -> vector<4x8x8xf32>
    %211 = vector.extract_strided_slice %204 {offsets = [0, 0], sizes = [8, 32], strides = [1, 1]} : vector<16x32xf32> to vector<8x32xf32>
    %212 = vector.shape_cast %211 : vector<8x32xf32> to vector<8x4x8xf32>
    %213 = tpu.transpose %212, [1, 0, 2] : vector<8x4x8xf32> -> vector<4x8x8xf32>
    %214 = arith.truncf %207 : vector<4x8x8xf32> to vector<4x8x8xbf16>
    %215 = arith.truncf %210 : vector<4x8x8xf32> to vector<4x8x8xbf16>
    "tpu.trace_start"() <{level = 10 : i32, message = "hqd,hkd->hqk"}> : () -> ()
    %cst_101 = arith.constant dense<0.000000e+00> : vector<4x8x8xf32>
    %216 = tpu.matmul %214, %215, %cst_101 {dimension_numbers = #tpu.dot_dimension_numbers<[2], [2], [1], [1], [0, 0, 0, 1, 1, 1], [0], [0]>} : vector<4x8x8xbf16>, vector<4x8x8xbf16>, vector<4x8x8xf32> -> vector<4x8x8xf32>
    "tpu.trace_stop"() : () -> ()
    %cst_102 = arith.constant 0.353553385 : f32
    %217 = vector.broadcast %cst_102 : f32 to vector<4x8x8xf32>
    %218 = arith.mulf %216, %217 : vector<4x8x8xf32>
    %219 = vector.extract_strided_slice %47 {offsets = [0, 0, 0], sizes = [1, 1, 8], strides = [1, 1, 1]} : vector<2x1x8xf32> to vector<1x1x8xf32>
    %220 = vector.shape_cast %219 : vector<1x1x8xf32> to vector<1x8xf32>
    %221 = vector.shape_cast %220 : vector<1x8xf32> to vector<1x1x8xf32>
    %222 = vector.broadcast %221 : vector<1x1x8xf32> to vector<4x8x8xf32>
    %223 = arith.addf %218, %222 : vector<4x8x8xf32>
    %cst_103 = arith.constant dense<0xFF800000> : vector<4x8xf32>
    %224 = vector.multi_reduction <maximumf>, %223, %cst_103 [2] : vector<4x8x8xf32> to vector<4x8xf32>
    %225 = vector.shape_cast %224 : vector<4x8xf32> to vector<4x8x1xf32>
    %226 = vector.broadcast %225 : vector<4x8x1xf32> to vector<4x8x8xf32>
    %227 = arith.subf %223, %226 : vector<4x8x8xf32>
    %228 = math.exp %227 : vector<4x8x8xf32>
    %cst_104 = arith.constant dense<0.000000e+00> : vector<4x8xf32>
    %229 = vector.multi_reduction <add>, %228, %cst_104 [2] : vector<4x8x8xf32> to vector<4x8xf32>
    %230 = vector.shape_cast %229 : vector<4x8xf32> to vector<4x8x1xf32>
    %231 = tpu.reciprocal %230 {approx = true} : vector<4x8x1xf32> -> vector<4x8x1xf32>
    %232 = vector.broadcast %231 : vector<4x8x1xf32> to vector<4x8x8xf32>
    %233 = arith.mulf %228, %232 : vector<4x8x8xf32>
    %234 = tpu.concatenate %233, %48 in 2 : vector<4x8x8xf32>, vector<4x8x120xf32> -> vector<4x8x128xf32>
    %c1_105 = arith.constant 1 : index
    %c0_106 = arith.constant 0 : index
    %c0_107 = arith.constant 0 : index
    %c0_108 = arith.constant 0 : index
    %c0_109 = arith.constant 0 : index
    %235 = vector.load %arg20[%c1_105, %c0_106, %c0_107, %c0_108, %c0_109] : memref<2x2x4x8x128xf32, #tpu.memory_space<vmem>>, vector<1x1x4x8x128xf32>
    %236 = vector.shape_cast %235 : vector<1x1x4x8x128xf32> to vector<4x8x128xf32>
    %237 = vector.shape_cast %234 : vector<4x8x128xf32> to vector<1x1x4x8x128xf32>
    tpu.vector_store %arg20[%c1_105, %c0_106, %c0_107, %c0_108, %c0_109], %237 {strides = array<i32>} : memref<2x2x4x8x128xf32, #tpu.memory_space<vmem>>, vector<1x1x4x8x128xf32>,
    %238 = arith.truncf %233 : vector<4x8x8xf32> to vector<4x8x8xbf16>
    %239 = arith.truncf %213 : vector<4x8x8xf32> to vector<4x8x8xbf16>
    "tpu.trace_start"() <{level = 10 : i32, message = "hqk,hkd->hqd"}> : () -> ()
    %cst_110 = arith.constant dense<0.000000e+00> : vector<4x8x8xf32>
    %240 = tpu.matmul %238, %239, %cst_110 {dimension_numbers = #tpu.dot_dimension_numbers<[2], [1], [1], [2], [0, 0, 0, 1, 1, 2], [0], [0]>} : vector<4x8x8xbf16>, vector<4x8x8xbf16>, vector<4x8x8xf32> -> vector<4x8x8xf32>
    "tpu.trace_stop"() : () -> ()
    %241 = tpu.transpose %240, [1, 0, 2] : vector<4x8x8xf32> -> vector<8x4x8xf32>
    %242 = vector.shape_cast %241 : vector<8x4x8xf32> to vector<8x32xf32>
    %243 = vector.extract_strided_slice %190 {offsets = [8, 0], sizes = [8, 32], strides = [1, 1]} : vector<16x32xf32> to vector<8x32xf32>
    %244 = vector.shape_cast %243 : vector<8x32xf32> to vector<8x4x8xf32>
    %245 = tpu.transpose %244, [1, 0, 2] : vector<8x4x8xf32> -> vector<4x8x8xf32>
    %246 = vector.extract_strided_slice %197 {offsets = [8, 0], sizes = [8, 32], strides = [1, 1]} : vector<16x32xf32> to vector<8x32xf32>
    %247 = vector.shape_cast %246 : vector<8x32xf32> to vector<8x4x8xf32>
    %248 = tpu.transpose %247, [1, 0, 2] : vector<8x4x8xf32> -> vector<4x8x8xf32>
    %249 = vector.extract_strided_slice %204 {offsets = [8, 0], sizes = [8, 32], strides = [1, 1]} : vector<16x32xf32> to vector<8x32xf32>
    %250 = vector.shape_cast %249 : vector<8x32xf32> to vector<8x4x8xf32>
    %251 = tpu.transpose %250, [1, 0, 2] : vector<8x4x8xf32> -> vector<4x8x8xf32>
    %252 = arith.truncf %245 : vector<4x8x8xf32> to vector<4x8x8xbf16>
    %253 = arith.truncf %248 : vector<4x8x8xf32> to vector<4x8x8xbf16>
    "tpu.trace_start"() <{level = 10 : i32, message = "hqd,hkd->hqk"}> : () -> ()
    %cst_111 = arith.constant dense<0.000000e+00> : vector<4x8x8xf32>
    %254 = tpu.matmul %252, %253, %cst_111 {dimension_numbers = #tpu.dot_dimension_numbers<[2], [2], [1], [1], [0, 0, 0, 1, 1, 1], [0], [0]>} : vector<4x8x8xbf16>, vector<4x8x8xbf16>, vector<4x8x8xf32> -> vector<4x8x8xf32>
    "tpu.trace_stop"() : () -> ()
    %cst_112 = arith.constant 0.353553385 : f32
    %255 = vector.broadcast %cst_112 : f32 to vector<4x8x8xf32>
    %256 = arith.mulf %254, %255 : vector<4x8x8xf32>
    %257 = vector.extract_strided_slice %47 {offsets = [1, 0, 0], sizes = [1, 1, 8], strides = [1, 1, 1]} : vector<2x1x8xf32> to vector<1x1x8xf32>
    %258 = vector.shape_cast %257 : vector<1x1x8xf32> to vector<1x8xf32>
    %259 = vector.shape_cast %258 : vector<1x8xf32> to vector<1x1x8xf32>
    %260 = vector.broadcast %259 : vector<1x1x8xf32> to vector<4x8x8xf32>
    %261 = arith.addf %256, %260 : vector<4x8x8xf32>
    %cst_113 = arith.constant dense<0xFF800000> : vector<4x8xf32>
    %262 = vector.multi_reduction <maximumf>, %261, %cst_113 [2] : vector<4x8x8xf32> to vector<4x8xf32>
    %263 = vector.shape_cast %262 : vector<4x8xf32> to vector<4x8x1xf32>
    %264 = vector.broadcast %263 : vector<4x8x1xf32> to vector<4x8x8xf32>
    %265 = arith.subf %261, %264 : vector<4x8x8xf32>
    %266 = math.exp %265 : vector<4x8x8xf32>
    %cst_114 = arith.constant dense<0.000000e+00> : vector<4x8xf32>
    %267 = vector.multi_reduction <add>, %266, %cst_114 [2] : vector<4x8x8xf32> to vector<4x8xf32>
    %268 = vector.shape_cast %267 : vector<4x8xf32> to vector<4x8x1xf32>
    %269 = tpu.reciprocal %268 {approx = true} : vector<4x8x1xf32> -> vector<4x8x1xf32>
    %270 = vector.broadcast %269 : vector<4x8x1xf32> to vector<4x8x8xf32>
    %271 = arith.mulf %266, %270 : vector<4x8x8xf32>
    %272 = tpu.concatenate %271, %48 in 2 : vector<4x8x8xf32>, vector<4x8x120xf32> -> vector<4x8x128xf32>
    %c1_115 = arith.constant 1 : index
    %c1_116 = arith.constant 1 : index
    %c0_117 = arith.constant 0 : index
    %c0_118 = arith.constant 0 : index
    %c0_119 = arith.constant 0 : index
    %273 = vector.load %arg20[%c1_115, %c1_116, %c0_117, %c0_118, %c0_119] : memref<2x2x4x8x128xf32, #tpu.memory_space<vmem>>, vector<1x1x4x8x128xf32>
    %274 = vector.shape_cast %273 : vector<1x1x4x8x128xf32> to vector<4x8x128xf32>
    %275 = vector.shape_cast %272 : vector<4x8x128xf32> to vector<1x1x4x8x128xf32>
    tpu.vector_store %arg20[%c1_115, %c1_116, %c0_117, %c0_118, %c0_119], %275 {strides = array<i32>} : memref<2x2x4x8x128xf32, #tpu.memory_space<vmem>>, vector<1x1x4x8x128xf32>,
    %276 = arith.truncf %271 : vector<4x8x8xf32> to vector<4x8x8xbf16>
    %277 = arith.truncf %251 : vector<4x8x8xf32> to vector<4x8x8xbf16>
    "tpu.trace_start"() <{level = 10 : i32, message = "hqk,hkd->hqd"}> : () -> ()
    %cst_120 = arith.constant dense<0.000000e+00> : vector<4x8x8xf32>
    %278 = tpu.matmul %276, %277, %cst_120 {dimension_numbers = #tpu.dot_dimension_numbers<[2], [1], [1], [2], [0, 0, 0, 1, 1, 2], [0], [0]>} : vector<4x8x8xbf16>, vector<4x8x8xbf16>, vector<4x8x8xf32> -> vector<4x8x8xf32>
    "tpu.trace_stop"() : () -> ()
    %279 = tpu.transpose %278, [1, 0, 2] : vector<4x8x8xf32> -> vector<8x4x8xf32>
    %280 = vector.shape_cast %279 : vector<8x4x8xf32> to vector<8x32xf32>
    %281 = tpu.concatenate %242, %280 in 0 : vector<8x32xf32>, vector<8x32xf32> -> vector<16x32xf32>
    %282 = arith.truncf %281 : vector<16x32xf32> to vector<16x32xbf16>
    %c1_121 = arith.constant 1 : index
    %c0_122 = arith.constant 0 : index
    %c0_123 = arith.constant 0 : index
    %283 = vector.load %arg13[%c1_121, %c0_122, %c0_123] : memref<2x32x32xbf16, #tpu.memory_space<vmem>>, vector<1x32x32xbf16>
    %284 = vector.shape_cast %283 : vector<1x32x32xbf16> to vector<32x32xbf16>
    %cst_124 = arith.constant dense<0.000000e+00> : vector<16x32xf32>
    %285 = tpu.matmul %282, %284, %cst_124 {dimension_numbers = #tpu.dot_dimension_numbers<[1], [0], [0], [1], [0, 0, 1, 1], [], []>} : vector<16x32xbf16>, vector<32x32xbf16>, vector<16x32xf32> -> vector<16x32xf32>
    %c1_125 = arith.constant 1 : index
    %c0_126 = arith.constant 0 : index
    %c0_127 = arith.constant 0 : index
    %286 = vector.load %arg14[%c1_125, %c0_126, %c0_127] : memref<2x1x32xf32, #tpu.memory_space<vmem>>, vector<1x1x32xf32>
    %287 = vector.shape_cast %286 : vector<1x1x32xf32> to vector<1x32xf32>
    %288 = vector.broadcast %287 : vector<1x32xf32> to vector<16x32xf32>
    %289 = arith.addf %285, %288 : vector<16x32xf32>
    %290 = arith.addf %289, %182 : vector<16x32xf32>
    %cst_128 = arith.constant dense<0.000000e+00> : vector<16xf32>
    %291 = vector.multi_reduction <add>, %290, %cst_128 [1] : vector<16x32xf32> to vector<16xf32>
    %292 = vector.shape_cast %291 : vector<16xf32> to vector<16x1xf32>
    %cst_129 = arith.constant 3.200000e+01 : f32
    %293 = vector.broadcast %cst_129 : f32 to vector<16x1xf32>
    %294 = arith.divf %292, %293 : vector<16x1xf32>
    %295 = vector.broadcast %294 : vector<16x1xf32> to vector<16x32xf32>
    %296 = arith.subf %290, %295 : vector<16x32xf32>
    %297 = arith.mulf %296, %296 : vector<16x32xf32>
    %cst_130 = arith.constant dense<0.000000e+00> : vector<16xf32>
    %298 = vector.multi_reduction <add>, %297, %cst_130 [1] : vector<16x32xf32> to vector<16xf32>
    %299 = vector.shape_cast %298 : vector<16xf32> to vector<16x1xf32>
    %cst_131 = arith.constant 3.200000e+01 : f32
    %300 = vector.broadcast %cst_131 : f32 to vector<16x1xf32>
    %301 = arith.divf %299, %300 : vector<16x1xf32>
    %302 = vector.broadcast %294 : vector<16x1xf32> to vector<16x32xf32>
    %303 = arith.subf %290, %302 : vector<16x32xf32>
    %cst_132 = arith.constant 9.99999996E-13 : f32
    %304 = vector.broadcast %cst_132 : f32 to vector<16x1xf32>
    %305 = arith.addf %301, %304 : vector<16x1xf32>
    %306 = math.rsqrt %305 : vector<16x1xf32>
    %307 = vector.broadcast %306 : vector<16x1xf32> to vector<16x32xf32>
    %308 = arith.mulf %303, %307 : vector<16x32xf32>
    %c1_133 = arith.constant 1 : index
    %c0_134 = arith.constant 0 : index
    %c0_135 = arith.constant 0 : index
    %309 = vector.load %arg15[%c1_133, %c0_134, %c0_135] : memref<2x1x32xf32, #tpu.memory_space<vmem>>, vector<1x1x32xf32>
    %310 = vector.shape_cast %309 : vector<1x1x32xf32> to vector<1x32xf32>
    %311 = vector.broadcast %310 : vector<1x32xf32> to vector<16x32xf32>
    %312 = arith.mulf %308, %311 : vector<16x32xf32>
    %c1_136 = arith.constant 1 : index
    %c0_137 = arith.constant 0 : index
    %c0_138 = arith.constant 0 : index
    %313 = vector.load %arg16[%c1_136, %c0_137, %c0_138] : memref<2x1x32xf32, #tpu.memory_space<vmem>>, vector<1x1x32xf32>
    %314 = vector.shape_cast %313 : vector<1x1x32xf32> to vector<1x32xf32>
    %315 = vector.broadcast %314 : vector<1x32xf32> to vector<16x32xf32>
    %316 = arith.addf %312, %315 : vector<16x32xf32>
    %cst_139 = arith.constant 0.000000e+00 : f32
    %317 = vector.broadcast %cst_139 : f32 to vector<16x32xf32>
    %318 = tpu.concatenate %24, %182, %316, %317 in 1 : vector<16x32xf32>, vector<16x32xf32>, vector<16x32xf32>, vector<16x32xf32> -> vector<16x128xf32>
    %c0_140 = arith.constant 0 : index
    %c0_141 = arith.constant 0 : index
    %319 = vector.load %arg19[%c0_140, %c0_141] : memref<16x128xf32, #tpu.memory_space<vmem>>, vector<16x128xf32>
    tpu.vector_store %arg19[%c0_140, %c0_141], %318 {strides = array<i32>} : memref<16x128xf32, #tpu.memory_space<vmem>>, vector<16x128xf32>,
    %320 = arith.mulf %316, %316 : vector<16x32xf32>
    %cst_142 = arith.constant dense<0.000000e+00> : vector<16xf32>
    %321 = vector.multi_reduction <add>, %320, %cst_142 [1] : vector<16x32xf32> to vector<16xf32>
    %322 = vector.shape_cast %321 : vector<16xf32> to vector<16x1xf32>
    %323 = math.sqrt %322 : vector<16x1xf32>
    %cst_143 = arith.constant 1.000000e-07 : f32
    %cst_144 = arith.constant 0.999989986 : f32
    %324 = vector.broadcast %cst_143 : f32 to vector<16x1xf32>
    %325 = arith.maximumf %324, %323 : vector<16x1xf32>
    %326 = vector.broadcast %cst_144 : f32 to vector<16x1xf32>
    %327 = arith.minimumf %326, %325 : vector<16x1xf32>
    %cst_145 = arith.constant 1.000000e+00 : f32
    %328 = vector.broadcast %cst_145 : f32 to vector<16x1xf32>
    %329 = arith.addf %328, %327 : vector<16x1xf32>
    %cst_146 = arith.constant 1.000000e+00 : f32
    %330 = vector.broadcast %cst_146 : f32 to vector<16x1xf32>
    %331 = arith.subf %330, %327 : vector<16x1xf32>
    %332 = tpu.reciprocal %331 {approx = true} : vector<16x1xf32> -> vector<16x1xf32>
    %333 = arith.mulf %329, %332 : vector<16x1xf32>
    %334 = math.log %333 : vector<16x1xf32>
    %cst_147 = arith.constant 5.000000e-01 : f32
    %335 = vector.broadcast %cst_147 : f32 to vector<16x1xf32>
    %336 = arith.mulf %335, %334 : vector<16x1xf32>
    %337 = tpu.reciprocal %327 {approx = true} : vector<16x1xf32> -> vector<16x1xf32>
    %338 = arith.mulf %336, %337 : vector<16x1xf32>
    %339 = vector.broadcast %338 : vector<16x1xf32> to vector<16x32xf32>
    %340 = arith.mulf %316, %339 : vector<16x32xf32>
    %341 = arith.truncf %340 : vector<16x32xf32> to vector<16x32xbf16>
    %c0_148 = arith.constant 0 : index
    %c0_149 = arith.constant 0 : index
    %342 = vector.load %arg17[%c0_148, %c0_149] : memref<32x128xbf16, #tpu.memory_space<vmem>>, vector<32x128xbf16>
    %cst_150 = arith.constant dense<0.000000e+00> : vector<16x128xf32>
    %343 = tpu.matmul %341, %342, %cst_150 {dimension_numbers = #tpu.dot_dimension_numbers<[1], [0], [0], [1], [0, 0, 1, 1], [], []>} : vector<16x32xbf16>, vector<32x128xbf16>, vector<16x128xf32> -> vector<16x128xf32>
    %c0_151 = arith.constant 0 : index
    %c0_152 = arith.constant 0 : index
    %344 = vector.load %arg18[%c0_151, %c0_152] : memref<1x128xf32, #tpu.memory_space<vmem>>, vector<1x128xf32>
    %345 = vector.broadcast %344 : vector<1x128xf32> to vector<16x128xf32>
    %346 = arith.addf %343, %345 : vector<16x128xf32>
    %c0_153 = arith.constant 0 : index
    %c0_154 = arith.constant 0 : index
    %347 = vector.load %arg21[%c0_153, %c0_154] : memref<16x128xf32, #tpu.memory_space<vmem>>, vector<16x128xf32>
    tpu.vector_store %arg21[%c0_153, %c0_154], %346 {strides = array<i32>} : memref<16x128xf32, #tpu.memory_space<vmem>>, vector<16x128xf32>,
    return
  }
  func.func @transform_0(%arg0: i32) -> (i32, i32) {
    %c0_i32 = arith.constant 0 : i32
    %c0_i32_0 = arith.constant 0 : i32
    %c0_i32_1 = arith.constant 0 : i32
    return %c0_i32, %c0_i32_0 : i32, i32
  }
  func.func @transform_1(%arg0: i32) -> (i32, i32, i32) {
    %c0_i32 = arith.constant 0 : i32
    %c0_i32_0 = arith.constant 0 : i32
    %c0_i32_1 = arith.constant 0 : i32
    %c0_i32_2 = arith.constant 0 : i32
    return %c0_i32, %c0_i32_0, %c0_i32_1 : i32, i32, i32
  }
  func.func @transform_2(%arg0: i32) -> (i32, i32) {
    %c0_i32 = arith.constant 0 : i32
    %c0_i32_0 = arith.constant 0 : i32
    %c0_i32_1 = arith.constant 0 : i32
    return %c0_i32, %c0_i32_0 : i32, i32
  }
  func.func @transform_3(%arg0: i32) -> (i32, i32) {
    %c0_i32 = arith.constant 0 : i32
    %c0_i32_0 = arith.constant 0 : i32
    %c0_i32_1 = arith.constant 0 : i32
    return %c0_i32, %c0_i32_0 : i32, i32
  }
  func.func @transform_4(%arg0: i32) -> (i32, i32) {
    %c0_i32 = arith.constant 0 : i32
    %c0_i32_0 = arith.constant 0 : i32
    %c0_i32_1 = arith.constant 0 : i32
    return %c0_i32, %c0_i32_0 : i32, i32
  }
  func.func @transform_5(%arg0: i32) -> (i32, i32) {
    %c0_i32 = arith.constant 0 : i32
    %c0_i32_0 = arith.constant 0 : i32
    %c0_i32_1 = arith.constant 0 : i32
    return %c0_i32, %c0_i32_0 : i32, i32
  }
  func.func @transform_6(%arg0: i32) -> (i32, i32, i32) {
    %c0_i32 = arith.constant 0 : i32
    %c0_i32_0 = arith.constant 0 : i32
    %c0_i32_1 = arith.constant 0 : i32
    %c0_i32_2 = arith.constant 0 : i32
    return %c0_i32, %c0_i32_0, %c0_i32_1 : i32, i32, i32
  }
  func.func @transform_7(%arg0: i32) -> (i32, i32, i32) {
    %c0_i32 = arith.constant 0 : i32
    %c0_i32_0 = arith.constant 0 : i32
    %c0_i32_1 = arith.constant 0 : i32
    %c0_i32_2 = arith.constant 0 : i32
    return %c0_i32, %c0_i32_0, %c0_i32_1 : i32, i32, i32
  }
  func.func @transform_8(%arg0: i32) -> (i32, i32, i32) {
    %c0_i32 = arith.constant 0 : i32
    %c0_i32_0 = arith.constant 0 : i32
    %c0_i32_1 = arith.constant 0 : i32
    %c0_i32_2 = arith.constant 0 : i32
    return %c0_i32, %c0_i32_0, %c0_i32_1 : i32, i32, i32
  }
  func.func @transform_9(%arg0: i32) -> (i32, i32, i32) {
    %c0_i32 = arith.constant 0 : i32
    %c0_i32_0 = arith.constant 0 : i32
    %c0_i32_1 = arith.constant 0 : i32
    %c0_i32_2 = arith.constant 0 : i32
    return %c0_i32, %c0_i32_0, %c0_i32_1 : i32, i32, i32
  }
  func.func @transform_10(%arg0: i32) -> (i32, i32, i32) {
    %c0_i32 = arith.constant 0 : i32
    %c0_i32_0 = arith.constant 0 : i32
    %c0_i32_1 = arith.constant 0 : i32
    %c0_i32_2 = arith.constant 0 : i32
    return %c0_i32, %c0_i32_0, %c0_i32_1 : i32, i32, i32
  }
  func.func @transform_11(%arg0: i32) -> (i32, i32, i32) {
    %c0_i32 = arith.constant 0 : i32
    %c0_i32_0 = arith.constant 0 : i32
    %c0_i32_1 = arith.constant 0 : i32
    %c0_i32_2 = arith.constant 0 : i32
    return %c0_i32, %c0_i32_0, %c0_i32_1 : i32, i32, i32
  }
  func.func @transform_12(%arg0: i32) -> (i32, i32, i32) {
    %c0_i32 = arith.constant 0 : i32
    %c0_i32_0 = arith.constant 0 : i32
    %c0_i32_1 = arith.constant 0 : i32
    %c0_i32_2 = arith.constant 0 : i32
    return %c0_i32, %c0_i32_0, %c0_i32_1 : i32, i32, i32
  }
  func.func @transform_13(%arg0: i32) -> (i32, i32, i32) {
    %c0_i32 = arith.constant 0 : i32
    %c0_i32_0 = arith.constant 0 : i32
    %c0_i32_1 = arith.constant 0 : i32
    %c0_i32_2 = arith.constant 0 : i32
    return %c0_i32, %c0_i32_0, %c0_i32_1 : i32, i32, i32
  }
  func.func @transform_14(%arg0: i32) -> (i32, i32, i32) {
    %c0_i32 = arith.constant 0 : i32
    %c0_i32_0 = arith.constant 0 : i32
    %c0_i32_1 = arith.constant 0 : i32
    %c0_i32_2 = arith.constant 0 : i32
    return %c0_i32, %c0_i32_0, %c0_i32_1 : i32, i32, i32
  }
  func.func @transform_15(%arg0: i32) -> (i32, i32, i32) {
    %c0_i32 = arith.constant 0 : i32
    %c0_i32_0 = arith.constant 0 : i32
    %c0_i32_1 = arith.constant 0 : i32
    %c0_i32_2 = arith.constant 0 : i32
    return %c0_i32, %c0_i32_0, %c0_i32_1 : i32, i32, i32
  }
  func.func @transform_16(%arg0: i32) -> (i32, i32) {
    %c0_i32 = arith.constant 0 : i32
    %c0_i32_0 = arith.constant 0 : i32
    %c0_i32_1 = arith.constant 0 : i32
    return %c0_i32, %c0_i32_0 : i32, i32
  }
  func.func @transform_17(%arg0: i32) -> (i32, i32) {
    %c0_i32 = arith.constant 0 : i32
    %c0_i32_0 = arith.constant 0 : i32
    %c0_i32_1 = arith.constant 0 : i32
    return %c0_i32, %c0_i32_0 : i32, i32
  }
  func.func @transform_18(%arg0: i32) -> (i32, i32) {
    %c0_i32 = arith.constant 0 : i32
    %c0_i32_0 = arith.constant 0 : i32
    %c0_i32_1 = arith.constant 0 : i32
    return %c0_i32, %c0_i32_0 : i32, i32
  }
  func.func @transform_19(%arg0: i32) -> (i32, i32, i32, i32, i32) {
    %c0_i32 = arith.constant 0 : i32
    %c0_i32_0 = arith.constant 0 : i32
    %c0_i32_1 = arith.constant 0 : i32
    %c0_i32_2 = arith.constant 0 : i32
    %c0_i32_3 = arith.constant 0 : i32
    %c0_i32_4 = arith.constant 0 : i32
    return %c0_i32, %c0_i32_0, %c0_i32_1, %c0_i32_2, %c0_i32_3 : i32, i32, i32, i32, i32
  }
  func.func @transform_20(%arg0: i32) -> (i32, i32) {
    %c0_i32 = arith.constant 0 : i32
    %c0_i32_0 = arith.constant 0 : i32
    %c0_i32_1 = arith.constant 0 : i32
    return %c0_i32, %c0_i32_0 : i32, i32
  }
}

</mosaic_0001>

<bundles_post_ra>
// kernel: hyperbolic_transformer_forward.1
= control target key start
LH: loop header
LB: loop body
LE: loop exit
PB: predicated region body
PF: predicated region fallthrough
CT: control target
= control target key end

     0   :  { %vm65_vm0 = vcmask 261120   ;;  %v3998_v4 = vmov 32.0   ;;  %s4001_s25 = smov 120   ;;  %vm332_vm12 = vcmask 1047556   ;;  %vm690_vm13 = vcmask 64512   ;;  %s5363_s0 = inlined_call_operand.vmem [shape: f32[16,32], index: 0, kind: input, shape index: {}]   ;;  %s5364_s2 = inlined_call_operand.vmem [shape: f32[1,32], index: 2, kind: input, shape index: {}]   ;;  %s5365_s3 = inlined_call_operand.vmem [shape: f32[1,32], index: 3, kind: input, shape index: {}]   ;;  %s5366_s5 = inlined_call_operand.vmem [shape: f32[1,32], index: 5, kind: input, shape index: {}]   ;;  %s5367_s4 = inlined_call_operand.vmem [shape: bf16[32,32], index: 4, kind: input, shape index: {}]   ;;  %s5368_s7 = inlined_call_operand.vmem [shape: f32[2,1,32], index: 7, kind: input, shape index: {}]   ;;  %s5369_s6 = inlined_call_operand.vmem [shape: bf16[2,32,32], index: 6, kind: input, shape index: {}]   ;;  %s5370_s8 = inlined_call_operand.vmem [shape: bf16[2,32,32], index: 8, kind: input, shape index: {}]   ;;  %s5371_s10 = inlined_call_operand.vmem [shape: bf16[2,32,32], index: 10, kind: input, shape index: {}]   ;;  %s5372_s9 = inlined_call_operand.vmem [shape: f32[2,1,32], index: 9, kind: input, shape index: {}]   ;;  %s5373_s11 = inlined_call_operand.vmem [shape: f32[2,1,32], index: 11, kind: input, shape index: {}]   ;;  %s5374_s1 = inlined_call_operand.vmem [shape: f32[2,1,8], index: 1, kind: input, shape index: {}]   ;;  %s5375_s19 = inlined_call_operand.vmem [shape: f32[2,2,4,8,128], index: 19, kind: output, shape index: {1}]   ;;  %s5376_s13 = inlined_call_operand.vmem [shape: f32[2,1,32], index: 13, kind: input, shape index: {}]   ;;  %s5377_s12 = inlined_call_operand.vmem [shape: bf16[2,32,32], index: 12, kind: input, shape index: {}]   ;;  %s5378_s14 = inlined_call_operand.vmem [shape: f32[2,1,32], index: 14, kind: input, shape index: {}]   ;;  %s5379_s15 = inlined_call_operand.vmem [shape: f32[2,1,32], index: 15, kind: input, shape index: {}]   ;;  %s5380_s17 = inlined_call_operand.vmem [shape: f32[1,128], index: 17, kind: input, shape index: {}]   ;;  %s5381_s16 = inlined_call_operand.vmem [shape: bf16[32,128], index: 16, kind: input, shape index: {}]   ;;  %s5382_s18 = inlined_call_operand.vmem [shape: f32[16,128], index: 18, kind: output, shape index: {0}]   ;;  %s5383_s20 = inlined_call_operand.vmem [shape: f32[16,128], index: 20, kind: output, shape index: {2}]  }
   0x1   :  { %5386 = sst [smem:[#allocation2_spill]] %s5363_s0  ;;  %3892 = vrcp.f32 %v3998_v4  ;;  %v3788_v61 = vld [vmem:[%s5369_s6 + $0x8] sm:$0xff]  ;;  %vm841_vm14 = vcmask 1043456   ;;  %vm1038_vm15 = vcmask 130048  }
   0x2   :  { %5387 = sst [smem:[#allocation3_spill]] %s5364_s2  ;;  %v3790_v62 = vld [vmem:[%s5370_s8 + $0x8] sm:$0xff]  ;;  %245 = vmatpush.bf16.msra.mxu1 %v3788_v61 }
   0x3   :  { %5388 = sst [smem:[#allocation4_spill]] %s5365_s3  ;;  %v3792_v63 = vld [vmem:[%s5371_s10 + $0x8] sm:$0xff]  ;;  %279 = vmatpush.bf16.msra.mxu2 %v3790_v62  ;;  %s4000_s3 = smov 112  }
   0x4   :  { %5389 = sst [smem:[#allocation5_spill]] %s5366_s5  ;;  %313 = vmatpush.bf16.msra.mxu3 %v3792_v63  ;;  %s4005_s5 = smov 24  }
   0x5   :  { %5390 = sst [smem:[#allocation6_spill]] %s5367_s4 }
   0x6   :  { %s5391_s23 = sld [smem:[#allocation2_spill]] }
   0x7   :  { %v3893_v5 = vpop.eup %3892  ;;  %s5392_s26 = sld [smem:[#allocation6_spill]] }
   0x8   :  { %v73_v6 = vmul.f32 32.0, %v3893_v5  ;;  %vm77_vm1 = vweird.f32 %v3893_v5  ;;  %s5393_s30 = sld [smem:[#allocation3_spill]] }
   0x9   :  { %s5394_s2 = sld [smem:[#allocation4_spill]] }
   0xa   :  { %v74_v7 = vsub.f32 1.0, %v73_v6  ;;  %s5395_s24 = sld [smem:[#allocation5_spill]] }
   0xc   :  { %v63_v0 = vld [vmem:[%s5391_s23] sm:$0xff]  ;;  %v64_v2 = vld [vmem:[%s5391_s23 + $0x8] sm:$0xff]  ;;  %v75_v8 = vmul.f32 %v3893_v5, %v74_v7  ;;  %s4004_s23 = smov 16  }
   0xd   :  { %v66_v1 = vsel %vm65_vm0, %v63_v0, 0.0  ;;  %v69_v3 = vsel %vm65_vm0, %v64_v2, 0.0  ;;  %v3786_v21 = vld [vmem:[%s5392_s26 + $0x8] sm:$0xff]  ;;  %v3785_v23 = vld [vmem:[%s5392_s26] sm:$0xff]  ;;  %s4006_s26 = smov 8  }
   0xe   :  { %67 = vadd.xlane.f32.xlu0 %v66_v1  ;;  %v76_v9 = vadd.f32 %v3893_v5, %v75_v8  ;;  %159 = vmatpush.bf16.msra.mxu0 %v3786_v21  ;;  %v3876_v42 = vld [vmem:[%s5393_s30] ss:$0 sm:$0xff] }
   0xf   :  { %v3877_v47 = vld [vmem:[%s5394_s2] ss:$0 sm:$0xff] }
  0x10   :  { %v4122_v10 = vsel %vm77_vm1, %v3893_v5, %v76_v9  ;;  %v3878_v52 = vld [vmem:[%s5395_s24] ss:$0 sm:$0xff]  ;;  %s3999_s24 = smov 104   ;;  %vm1040_vm1 = vcmask 195584  }
  0x11   :  { %v3789_v1 = vld [vmem:[%s5370_s8] sm:$0xff] }
  0x12   :  { %160 = vmatpush.bf16.msra.mxu0 %v3785_v23  ;;  %280 = vmatpush.bf16.msra.mxu2 %v3789_v1 }
  0x16   :  { %70 = vadd.xlane.f32.xlu0 %v69_v3 }
  0x81   :  { %v68_v11 = vpop.xlane.xlu0 %67 }
  0x82   :  { %v79_v12 = vmul.f32 %v4122_v10, %v68_v11 }
  0x84   :  { %v81_v13 = vsub.f32 %v63_v0, %v79_v12  ;;  %v3787_v0 = vld [vmem:[%s5369_s6] sm:$0xff] }
  0x85   :  { %246 = vmatpush.bf16.msra.mxu1 %v3787_v0 }
  0x86   :  { %v83_v14 = vmul.f32 %v81_v13, %v81_v13 }
  0x88   :  { %v85_v15 = vsel %vm65_vm0, %v83_v14, 0.0 }
  0x89   :  { %86 = vadd.xlane.f32.xlu1 %v85_v15  ;;  %v71_v16 = vpop.xlane.xlu0 %70 }
  0x8a   :  { %v80_v17 = vmul.f32 %v4122_v10, %v71_v16 }
  0x8c   :  { %v82_v18 = vsub.f32 %v64_v2, %v80_v17  ;;  %v3791_v2 = vld [vmem:[%s5371_s10] sm:$0xff] }
  0x8d   :  { %314 = vmatpush.bf16.msra.mxu3 %v3791_v2 }
  0x8e   :  { %v84_v19 = vmul.f32 %v82_v18, %v82_v18 }
  0x90   :  { %v88_v20 = vsel %vm65_vm0, %v84_v19, 0.0 }
  0x91   :  { %89 = vadd.xlane.f32.xlu1 %v88_v20 }
  0xfc   :  { %v87_v22 = vpop.xlane.xlu1 %86 }
  0xfd   :  { %v91_v24 = vmul.f32 %v87_v22, %v4122_v10 }
  0xff   :  { %v93_v25 = vadd.f32 1e-12, %v91_v24 }
 0x101   :  { %3894 = vrsqrt.f32 %v93_v25  ;;  %vm101_vm3 = vweird.f32 %v93_v25 }
 0x104   :  { %v90_v26 = vpop.xlane.xlu1 %89 }
 0x105   :  { %v92_v27 = vmul.f32 %v90_v26, %v4122_v10 }
 0x107   :  { %v3895_v28 = vpop.eup %3894  ;;  %v94_v29 = vadd.f32 1e-12, %v92_v27 }
 0x108   :  { %v96_v30 = vmul.f32 %v3895_v28, %v93_v25  ;;  %vm102_vm2 = vweird.f32 %v3895_v28 }
 0x109   :  { %3896 = vrsqrt.f32 %v94_v29  ;;  %vm103_vm4 = vmor %vm101_vm3, %vm102_vm2  ;;  %vm111_vm6 = vweird.f32 %v94_v29 }
 0x10a   :  { %v97_v31 = vmul.f32 %v3895_v28, %v96_v30 }
 0x10c   :  { %v98_v32 = vmul.f32 0.5, %v97_v31 }
 0x10e   :  { %v99_v33 = vsub.f32 1.5, %v98_v32 }
 0x10f   :  { %v3897_v34 = vpop.eup %3896 }
 0x110   :  { %v100_v35 = vmul.f32 %v3895_v28, %v99_v33  ;;  %v106_v36 = vmul.f32 %v3897_v34, %v94_v29  ;;  %vm112_vm5 = vweird.f32 %v3897_v34 }
 0x111   :  { %vm113_vm7 = vmor %vm111_vm6, %vm112_vm5 }
 0x112   :  { %v107_v37 = vmul.f32 %v3897_v34, %v106_v36  ;;  %v104_v38 = vsel %vm103_vm4, %v3895_v28, %v100_v35 }
 0x113   :  { %v115_v41 = vmul.f32 %v104_v38, %v81_v13 }
 0x114   :  { %v108_v39 = vmul.f32 0.5, %v107_v37  ;;  %v4184_v37 = vld [vmem:[%s5372_s9] ss:$0 sm:$0xff] }
 0x115   :  { %v121_v46 = vmul.f32 %v3876_v42, %v115_v41 }
 0x116   :  { %v109_v40 = vsub.f32 1.5, %v108_v39 }
 0x117   :  { %v4142_v49 = vadd.f32 %v3877_v47, %v121_v46 }
 0x118   :  { %v110_v43 = vmul.f32 %v3897_v34, %v109_v40  ;;  %v4193_v40 = vld [vmem:[%s5368_s7] ss:$0 sm:$0xff] }
 0x11a   :  { %v114_v44 = vsel %vm113_vm7, %v3897_v34, %v110_v43 }
 0x11b   :  { %v116_v45 = vmul.f32 %v114_v44, %v82_v18  ;;  %v4002_v44 = vmov 1983009808  }
 0x11d   :  { %v122_v48 = vmul.f32 %v3876_v42, %v116_v45  ;;  %v337_v45 = vunpack.c.l.s4 %v4002_v44 }
 0x11f   :  { %v4144_v50 = vadd.f32 %v3877_v47, %v122_v48  ;;  %v4003_v48 = vmov 1934713408  }
 0x121   :  { %v129_v51 = vpack.c.bf16 %v4144_v50, %v4142_v49 }
 0x123   :  { %3637 = vmatmul.msk.bf16.vlgmr.msra.gmra.mxu0 %vm65_vm0, %v129_v51  ;;  %v361_v51 = vunpack.c.l.s4 %v4003_v48 }
 0x125   :  { %v4206_v1 = vunpack.c.0.s8 %v361_v51 }
 0x1a0   :  { %v162_v53 = vpop.f32.mrf.mxu0 }
 0x1a1   :  { %v163_v54 = vadd.f32 %v3878_v52, %v162_v53  ;;  %v4199_v53 = vunpack.c.0.s8 %v337_v45 }
 0x1a3   :  { %v167_v55 = vmul.f32 %v163_v54, %v163_v54 }
 0x1a5   :  { %v169_v56 = vsel %vm65_vm0, %v167_v55, 0.0 }
 0x1a6   :  { %170 = vadd.xlane.f32.xlu2 %v169_v56 }
 0x1a8   :  { %v164_v57 = vpop.f32.mrf.mxu0 }
 0x1a9   :  { %v165_v58 = vadd.f32 %v3878_v52, %v164_v57 }
 0x1ab   :  { %v168_v59 = vmul.f32 %v165_v58, %v165_v58 }
 0x1ad   :  { %v172_v60 = vsel %vm65_vm0, %v168_v59, 0.0 }
 0x1ae   :  { %173 = vadd.xlane.f32.xlu2 %v172_v60 }
 0x219   :  { %v171_v3 = vpop.xlane.xlu2 %170 }
 0x21a   :  { %3898 = vrsqrt.f32 %v171_v3  ;;  %vm182_vm8 = vcmp.eq.f32.partialorder %v171_v3, inf  ;;  %v185_v16 = vand.u32 2147483648, %v171_v3  ;;  %vm184_vm9 = vcmp.eq.f32.partialorder %v171_v3, 0.0 }
 0x220   :  { %v3899_v4 = vpop.eup %3898 }
 0x221   :  { %v176_v5 = vmul.f32 %v3899_v4, %v171_v3  ;;  %v174_v6 = vpop.xlane.xlu2 %173 }
 0x222   :  { %3900 = vrsqrt.f32 %v174_v6  ;;  %vm194_vm10 = vcmp.eq.f32.partialorder %v174_v6, inf  ;;  %v197_v24 = vand.u32 2147483648, %v174_v6  ;;  %vm196_vm11 = vcmp.eq.f32.partialorder %v174_v6, 0.0 }
 0x223   :  { %v177_v7 = vmul.f32 %v3899_v4, %v176_v5 }
 0x225   :  { %v178_v8 = vmul.f32 0.5, %v177_v7 }
 0x227   :  { %v179_v9 = vsub.f32 1.5, %v178_v8 }
 0x228   :  { %v3901_v11 = vpop.eup %3900 }
 0x229   :  { %v180_v12 = vmul.f32 %v3899_v4, %v179_v9  ;;  %v188_v13 = vmul.f32 %v3901_v11, %v174_v6 }
 0x22b   :  { %v181_v14 = vmul.f32 %v180_v12, %v171_v3  ;;  %v189_v15 = vmul.f32 %v3901_v11, %v188_v13 }
 0x22d   :  { %v183_v17 = vsel %vm182_vm8, %v171_v3, %v181_v14  ;;  %v190_v18 = vmul.f32 0.5, %v189_v15 }
 0x22e   :  { %v186_v19 = vsel %vm184_vm9, %v185_v16, %v183_v17 }
 0x22f   :  { %v191_v20 = vsub.f32 1.5, %v190_v18  ;;  %v199_v22 = vmax.f32 %v186_v19, 1e-07 }
 0x231   :  { %v192_v21 = vmul.f32 %v3901_v11, %v191_v20  ;;  %3902 = vtanh.f32 %v199_v22 }
 0x233   :  { %v193_v23 = vmul.f32 %v192_v21, %v174_v6 }
 0x235   :  { %v195_v25 = vsel %vm194_vm10, %v174_v6, %v193_v23 }
 0x236   :  { %v198_v26 = vsel %vm196_vm11, %v197_v24, %v195_v25 }
 0x237   :  { %v200_v27 = vmax.f32 %v198_v26, 1e-07  ;;  %v3903_v28 = vpop.eup %3902 }
 0x238   :  { %v203_v29 = vmul.f32 %v3903_v28, %v163_v54 }
 0x239   :  { %3904 = vtanh.f32 %v200_v27 }
 0x23a   :  { %3906 = vrcp.f32 %v199_v22 }
 0x23b   :  { %3908 = vrcp.f32 %v200_v27 }
 0x23f   :  { %v3905_v30 = vpop.eup %3904 }
 0x240   :  { %v3907_v31 = vpop.eup %3906  ;;  %v204_v32 = vmul.f32 %v3905_v30, %v165_v58 }
 0x241   :  { %v3909_v33 = vpop.eup %3908  ;;  %v4172_v34 = vmul.f32 %v3907_v31, %v203_v29 }
 0x242   :  { %v4174_v35 = vmul.f32 %v3909_v33, %v204_v32 }
 0x244   :  { %v215_v36 = vpack.c.bf16 %v4174_v35, %v4172_v34 }
 0x246   :  { %3646 = vmatmul.msk.bf16.vlgmr.msra.gmra.mxu1 %vm65_vm0, %v215_v36  ;;  %3655 = vmatmul.msk.bf16.vlgmr.msra.gmra.mxu2 %vm65_vm0, %v215_v36 }
 0x247   :  { %3664 = vmatmul.msk.bf16.vlgmr.msra.gmra.mxu3 %vm65_vm0, %v215_v36 }
 0x2c3   :  { %v248_v41 = vpop.f32.mrf.mxu1 }
 0x2c4   :  { %v249_v42 = vadd.f32 %v4193_v40, %v248_v41 }
 0x2c6   :  { %v334_v56 = vrot.slane %v249_v42, 4 }
 0x2c9   :  { %v282_v38 = vpop.f32.mrf.mxu2 }
 0x2ca   :  { %v283_v39 = vadd.f32 %v4184_v37, %v282_v38 }
 0x2cc   :  { %449 = vrot.lane.b32.xlu2 %v283_v39, %s3999_s24  ;;  %446 = vrot.lane.b32.xlu1 %v283_v39, %s4000_s3  ;;  %v454_v47 = vrot.slane %v283_v39, 4 }
 0x2cd   :  { %443 = vrot.lane.b32.xlu0 %v283_v39, %s4001_s25 }
 0x2d4   :  { %328 = vrot.lane.b32.xlu1 %v249_v42, %s3999_s24  ;;  %325 = vrot.lane.b32.xlu2 %v249_v42, %s4000_s3 }
 0x2d5   :  { %322 = vrot.lane.b32.xlu0 %v249_v42, %s4001_s25 }
 0x326   :  { %v450_v43 = vpop.permute.xlu2 %449 }
 0x327   :  { %v464_v52 = vrot.slane %v450_v43, 4 }
 0x32e   :  { %v326_v46 = vpop.permute.xlu2 %325 }
 0x32f   :  { %v331_v54 = vrot.slane %v326_v46, 4  ;;  %v335_v63 = vsel %vm332_vm12, %v326_v46, %v334_v56 }
 0x330   :  { %v343_v9 = vperm.slane %v335_v63, %v4199_v53 }
 0x331   :  { %v333_v3 = vsel %vm332_vm12, %v331_v54, %v249_v42 }
 0x332   :  { %v339_v12 = vperm.slane %v333_v3, %v4199_v53  ;;  %v370_v29 = vrot.slane %v343_v9, 4 }
 0x334   :  { %v358_v28 = vrot.slane %v339_v12, 4 }
 0x33e   :  { %v447_v55 = vpop.permute.xlu1 %446 }
 0x33f   :  { %v452_v57 = vrot.slane %v447_v55, 4  ;;  %v455_v58 = vsel %vm332_vm12, %v447_v55, %v454_v47  ;;  %v444_v59 = vpop.permute.xlu0 %443 }
 0x340   :  { %v463_v60 = vperm.slane %v455_v58, %v4199_v53  ;;  %v465_v61 = vsel %vm332_vm12, %v464_v52, %v444_v59  ;;  %v466_v62 = vrot.slane %v444_v59, 4 }
 0x341   :  { %v453_v0 = vsel %vm332_vm12, %v452_v57, %v283_v39  ;;  %v471_v2 = vperm.slane %v465_v61, %v4199_v53 }
 0x342   :  { %v459_v4 = vperm.slane %v453_v0, %v4199_v53  ;;  %v490_v5 = vrot.slane %v463_v60, 4  ;;  %v467_v6 = vsel %vm332_vm12, %v450_v43, %v466_v62 }
 0x343   :  { %v475_v7 = vperm.slane %v467_v6, %v4199_v53  ;;  %v476_v8 = vrot.slane %v471_v2, 4 }
 0x344   :  { %v478_v11 = vrot.slane %v459_v4, 4 }
 0x345   :  { %v477_v13 = vsel %vm332_vm12, %v476_v8, %v459_v4  ;;  %v488_v14 = vrot.slane %v475_v7, 4  ;;  %v491_v15 = vsel %vm332_vm12, %v475_v7, %v490_v5 }
 0x346   :  { %v479_v16 = vsel %vm332_vm12, %v471_v2, %v478_v11  ;;  %v483_v17 = vperm.slane %v477_v13, %v4206_v1  ;;  %v499_v18 = vperm.slane %v491_v15, %v4206_v1  ;;  %v329_v19 = vpop.permute.xlu1 %328 }
 0x347   :  { %v487_v20 = vperm.slane %v479_v16, %v4206_v1  ;;  %v489_v21 = vsel %vm332_vm12, %v488_v14, %v463_v60  ;;  %v344_v22 = vrot.slane %v329_v19, 4  ;;  %v323_v23 = vpop.permute.xlu0 %322 }
 0x348   :  { %v495_v24 = vperm.slane %v489_v21, %v4206_v1  ;;  %v500_v25 = vrot.slane %v483_v17, 4  ;;  %v506_v26 = vrot.slane %v499_v18, 4  ;;  %v346_v27 = vrot.slane %v323_v23, 4 }
 0x349   :  { %v502_v30 = vrot.slane %v487_v20, 4  ;;  %v345_v31 = vsel %vm332_vm12, %v344_v22, %v323_v23 }
 0x34a   :  { %v501_v32 = vsel %vm332_vm12, 0.0, %v500_v25  ;;  %v504_v33 = vrot.slane %v495_v24, 4  ;;  %v507_v36 = vsel %vm332_vm12, 0.0, %v506_v26  ;;  %v347_v38 = vsel %vm332_vm12, %v329_v19, %v346_v27 }
 0x34b   :  { %v503_v39 = vsel %vm332_vm12, 0.0, %v502_v30  ;;  %v508_v41 = vsel %vm332_vm12, %v502_v30, %v483_v17  ;;  %v524_v42 = vrot.slane %v507_v36, 4  ;;  %v351_v43 = vperm.slane %v345_v31, %v4199_v53 }
 0x34c   :  { %v512_v44 = vperm.slane %v508_v41, %v4199_v53  ;;  %v513_v45 = vrot.slane %v503_v39, 4  ;;  %v355_v46 = vperm.slane %v347_v38, %v4199_v53  ;;  %v505_v47 = vsel %vm332_vm12, 0.0, %v504_v33 }
 0x34d   :  { %v356_v48 = vrot.slane %v351_v43, 4  ;;  %v359_v51 = vsel %vm332_vm12, %v351_v43, %v358_v28  ;;  %v519_v52 = vsel %vm332_vm12, %v506_v26, %v495_v24  ;;  %v525_v54 = vsel %vm332_vm12, %v524_v42, %v505_v47 }
 0x34e   :  { %v367_v55 = vperm.slane %v359_v51, %v4206_v1  ;;  %v368_v56 = vrot.slane %v355_v46, 4  ;;  %v371_v57 = vsel %vm332_vm12, %v355_v46, %v370_v29  ;;  %v514_v58 = vsel %vm332_vm12, %v513_v45, %v501_v32 }
 0x34f   :  { %v357_v59 = vsel %vm332_vm12, %v356_v48, %v339_v12  ;;  %v379_v60 = vperm.slane %v371_v57, %v4206_v1  ;;  %v518_v61 = vperm.slane %v514_v58, %v4199_v53  ;;  %v523_v62 = vperm.slane %v519_v52, %v4199_v53 }
 0x350   :  { %v363_v63 = vperm.slane %v357_v59, %v4206_v1  ;;  %v369_v0 = vsel %vm332_vm12, %v368_v56, %v343_v9  ;;  %v382_v2 = vrot.slane %v367_v55, 4  ;;  %v529_v3 = vperm.slane %v525_v54, %v4199_v53 }
 0x351   :  { %v375_v4 = vperm.slane %v369_v0, %v4206_v1  ;;  %v386_v5 = vrot.slane %v379_v60, 4  ;;  %v532_v6 = vrot.slane %v512_v44, 4  ;;  %v544_v7 = vrot.slane %v523_v62, 4 }
 0x352   :  { %v380_v8 = vrot.slane %v363_v63, 4  ;;  %v383_v11 = vsel %vm332_vm12, 0.0, %v382_v2  ;;  %v388_v12 = vsel %vm332_vm12, %v382_v2, %v363_v63  ;;  %v530_v13 = vrot.slane %v518_v61, 4 }
 0x353   :  { %v384_v14 = vrot.slane %v375_v4, 4  ;;  %v387_v15 = vsel %vm332_vm12, 0.0, %v386_v5  ;;  %v392_v16 = vperm.slane %v388_v12, %v4199_v53  ;;  %v393_v9 = vrot.slane %v383_v11, 4 }
 0x354   :  { %v381_v17 = vsel %vm332_vm12, 0.0, %v380_v8  ;;  %v399_v18 = vsel %vm332_vm12, %v386_v5, %v375_v4  ;;  %v404_v19 = vrot.slane %v387_v15, 4  ;;  %v533_v20 = vsel %vm332_vm12, %v518_v61, %v532_v6 }
 0x355   :  { %v385_v21 = vsel %vm332_vm12, 0.0, %v384_v14  ;;  %v394_v22 = vsel %vm332_vm12, %v393_v9, %v381_v17  ;;  %v403_v23 = vperm.slane %v399_v18, %v4199_v53  ;;  %v412_v24 = vrot.slane %v392_v16, 4 }
 0x356   :  { %v398_v25 = vperm.slane %v394_v22, %v4199_v53  ;;  %v405_v26 = vsel %vm332_vm12, %v404_v19, %v385_v21  ;;  %v541_v27 = vperm.slane %v533_v20, %v4206_v1  ;;  %v545_v28 = vsel %vm332_vm12, %v529_v3, %v544_v7  ;;  %v316_v20 = vpop.f32.mrf.mxu3  ;;  %v209_v21 = vld [vmem:[%s5374_s1] sm:$0x1]  ;;  %v250_v22 = vpop.f32.mrf.mxu1 }
 0x357   :  { %v553_v29 = vperm.slane %v545_v28, %v4206_v1  ;;  %v531_v30 = vsel %vm332_vm12, %v530_v13, %v512_v44  ;;  %v542_v31 = vrot.slane %v529_v3, 4  ;;  %v409_v32 = vperm.slane %v405_v26, %v4199_v53 }
 0x358   :  { %v537_v33 = vperm.slane %v531_v30, %v4206_v1  ;;  %v560_v36 = vrot.slane %v541_v27, 4  ;;  %v413_v38 = vsel %vm332_vm12, %v398_v25, %v412_v24  ;;  %v424_v39 = vrot.slane %v403_v23, 4 }
 0x359   :  { %v558_v41 = vrot.slane %v553_v29, 4  ;;  %v543_v42 = vsel %vm332_vm12, %v542_v31, %v523_v62  ;;  %v421_v43 = vperm.slane %v413_v38, %v4206_v1  ;;  %v410_v45 = vrot.slane %v398_v25, 4  ;;  %v284_v25 = vpop.f32.mrf.mxu2 }
 0x35a   :  { %v549_v46 = vperm.slane %v543_v42, %v4206_v1  ;;  %v561_v47 = vsel %vm332_vm12, %v553_v29, %v560_v36  ;;  %v556_v44 = vrot.slane %v537_v33, 4  ;;  %v425_v48 = vsel %vm332_vm12, %v409_v32, %v424_v39 }
 0x35b   :  { %v559_v51 = vsel %vm332_vm12, %v558_v41, %v541_v27  ;;  %v689_v52 = vpack.c.bf16 %v561_v47, %v561_v47  ;;  %v433_v54 = vperm.slane %v425_v48, %v4206_v1  ;;  %v411_v55 = vsel %vm332_vm12, %v410_v45, %v392_v16 }
 0x35c   :  { %v688_v56 = vpack.c.bf16 %v559_v51, %v559_v51  ;;  %v554_v57 = vrot.slane %v549_v46, 4  ;;  %v557_v58 = vsel %vm332_vm12, %v549_v46, %v556_v44  ;;  %v417_v59 = vperm.slane %v411_v55, %v4206_v1  ;;  %v4309_v55 = vld [vmem:[%s5373_s11] ss:$0 sm:$0xff] }
 0x35d   :  { %v752_v60 = vsel %vm690_vm13, %v689_v52, 0  ;;  %v687_v61 = vpack.c.bf16 %v557_v58, %v557_v58  ;;  %v438_v62 = vrot.slane %v433_v54, 4  ;;  %v422_v63 = vrot.slane %v409_v32, 4 }
 0x35e   :  { %v733_v0 = vsel %vm690_vm13, %v688_v56, 0  ;;  %v555_v2 = vsel %vm332_vm12, %v554_v57, %v537_v33  ;;  %761 = vmatpush.bf16.xpose.msrb.mxu3 %v752_v60  ;;  %v440_v3 = vrot.slane %v421_v43, 4  ;;  %v436_v4 = vrot.slane %v417_v59, 4  ;;  %v4294_v24 = vpop.f32.mrf.mxu3 }
 0x35f   :  { %742 = vmatpush.bf16.xpose.msrb.mxu2 %v733_v0  ;;  %v686_v5 = vpack.c.bf16 %v555_v2, %v555_v2  ;;  %v714_v6 = vsel %vm690_vm13, %v687_v61, 0  ;;  %v439_v7 = vsel %vm332_vm12, %v438_v62, %v421_v43  ;;  %v423_v8 = vsel %vm332_vm12, %v422_v63, %v403_v23 }
 0x360   :  { %723 = vmatpush.bf16.xpose.msrb.mxu1 %v714_v6  ;;  %v429_v11 = vperm.slane %v423_v8, %v4206_v1  ;;  %v441_v12 = vsel %vm332_vm12, %v433_v54, %v440_v3  ;;  %v684_v14 = vpack.c.bf16 %v439_v7, %v439_v7  ;;  %v211_v23 = vsub.f32 1.0, %v209_v21 }
 0x361   :  { %v695_v13 = vsel %vm690_vm13, %v686_v5, 0  ;;  %v685_v9 = vpack.c.bf16 %v441_v12, %v441_v12  ;;  %v285_v56 = vadd.f32 %v4184_v37, %v284_v25  ;;  %v317_v57 = vadd.f32 %v4309_v55, %v316_v20 }
 0x362   :  { %704 = vmatpush.bf16.xpose.msrb.mxu0 %v695_v13  ;;  %v434_v15 = vrot.slane %v429_v11, 4  ;;  %v437_v16 = vsel %vm332_vm12, %v429_v11, %v436_v4  ;;  %v213_v26 = vmul.f32 -1e+09, %v211_v23 }
 0x363   :  { %v683_v19 = vpack.c.bf16 %v437_v16, %v437_v16  ;;  %v3821_v58 = vpack.i.bf16 %v285_v56, %v317_v57  ;;  %v1174_v20 = vrot.slane %v285_v56, 4 }
 0x364   :  { %v435_v17 = vsel %vm332_vm12, %v434_v15, %v417_v59  ;;  %v4296_v29 = vperm.slane %v213_v26, 0  ;;  %v4317_v59 = vadd.f32 %v4193_v40, %v250_v22 }
 0x365   :  { %v682_v18 = vpack.c.bf16 %v435_v17, %v435_v17  ;;  %3668 = vmatmul.msk.bf16.vlgmr.msrb.gmra.mxu3 %vm690_vm13, %v685_v9 }
 0x366   :  { %3667 = vmatmul.msk.bf16.vlgmr.msrb.gmra.mxu2 %vm690_vm13, %v684_v14 }
 0x367   :  { %3666 = vmatmul.msk.bf16.vlgmr.msrb.gmra.mxu1 %vm690_vm13, %v683_v19 }
 0x369   :  { %3665 = vmatmul.msk.bf16.vlgmr.msrb.gmra.mxu0 %vm690_vm13, %v682_v18  ;;  %v574_v18 = vrot.slane %v317_v57, 4 }
 0x3e4   :  { %v725_v27 = vpop.f32.mrf.mxu1 }
 0x3e5   :  { %v768_v28 = vmul.f32 0.35355338, %v725_v27 }
 0x3e6   :  { %v706_v30 = vpop.f32.mrf.mxu0 }
 0x3e7   :  { %v767_v31 = vmul.f32 0.35355338, %v706_v30  ;;  %v775_v32 = vadd.f32 %v4296_v29, %v768_v28 }
 0x3e8   :  { %v763_v33 = vpop.f32.mrf.mxu3 }
 0x3e9   :  { %v744_v36 = vpop.f32.mrf.mxu2  ;;  %v770_v38 = vmul.f32 0.35355338, %v763_v33  ;;  %v774_v39 = vadd.f32 %v4296_v29, %v767_v31  ;;  %v781_v41 = vsel %vm690_vm13, %v775_v32, -inf }
 0x3ea   :  { %v769_v42 = vmul.f32 0.35355338, %v744_v36  ;;  %782 = vmax.xlane.f32.xlu0 %v781_v41 }
 0x3eb   :  { %v778_v43 = vsel %vm690_vm13, %v774_v39, -inf  ;;  %v777_v45 = vadd.f32 %v4296_v29, %v770_v38 }
 0x3ec   :  { %779 = vmax.xlane.f32.xlu1 %v778_v43  ;;  %v727_v46 = vpop.f32.mrf.mxu1  ;;  %v776_v44 = vadd.f32 %v4296_v29, %v769_v42 }
 0x3ed   :  { %v787_v47 = vsel %vm690_vm13, %v777_v45, -inf }
 0x3ee   :  { %v708_v48 = vpop.f32.mrf.mxu0  ;;  %788 = vmax.xlane.f32.xlu2 %v787_v47  ;;  %v784_v54 = vsel %vm690_vm13, %v776_v44, -inf }
 0x3f0   :  { %v765_v51 = vpop.f32.mrf.mxu3 }
 0x3f1   :  { %v746_v52 = vpop.f32.mrf.mxu2 }
 0x3f2   :  { %785 = vmax.xlane.f32.xlu0 %v784_v54 }
 0x405   :  { %3822 = vrot.lane.b32.xlu1 %v3821_v58, %s4000_s3 }
 0x406   :  { %3817 = vrot.lane.b32.xlu2 %v3821_v58, %s4001_s25  ;;  %3827 = vrot.lane.b32.xlu0 %v3821_v58, %s3999_s24 }
 0x40d   :  { %1043 = vrot.lane.b32.xlu1 %v4317_v59, %s4001_s25 }
 0x415   :  { %1046 = vrot.lane.b32.xlu1 %v4317_v59, %s4000_s3 }
 0x41d   :  { %1049 = vrot.lane.b32.xlu1 %v4317_v59, %s3999_s24 }
 0x45d   :  { %v783_v37 = vpop.xlane.xlu0 %782 }
 0x45e   :  { %v791_v4 = vsub.f32 %v775_v32, %v783_v37 }
 0x45f   :  { %v780_v60 = vpop.xlane.xlu1 %779 }
 0x460   :  { %v790_v61 = vsub.f32 %v774_v39, %v780_v60  ;;  %v796_v7 = vmul.f32 1.442695, %v791_v4 }
 0x461   :  { %v789_v62 = vpop.xlane.xlu2 %788 }
 0x462   :  { %v794_v63 = vmul.f32 1.442695, %v790_v61  ;;  %v793_v0 = vsub.f32 %v777_v45, %v789_v62 }
 0x464   :  { %3910 = vpow2.f32 %v794_v63  ;;  %v800_v2 = vmul.f32 1.442695, %v793_v0 }
 0x465   :  { %v786_v3 = vpop.xlane.xlu0 %785 }
 0x466   :  { %3912 = vpow2.f32 %v800_v2  ;;  %v792_v40 = vsub.f32 %v776_v44, %v786_v3 }
 0x468   :  { %v798_v5 = vmul.f32 1.442695, %v792_v40 }
 0x469   :  { %v3818_v15 = vpop.permute.xlu2 %3817 }
 0x46a   :  { %v4325_v6 = vpop.eup %3910  ;;  %3914 = vpow2.f32 %v798_v5  ;;  %v3820_v9 = vunpack.i.h.bf16 %v3818_v15  ;;  %v3819_v17 = vunpack.i.l.bf16 %v3818_v15  ;;  %v4366_v15 = vadd.f32 %v4309_v55, %v4294_v24 }
 0x46b   :  { %v802_v8 = vsel %vm690_vm13, %v4325_v6, 0.0  ;;  %3916 = vpow2.f32 %v796_v7 }
 0x46c   :  { %v4329_v11 = vpop.eup %3912  ;;  %803 = vadd.xlane.f32.xlu1 %v802_v8  ;;  %v1186_v26 = vrot.slane %v3820_v9, 4  ;;  %v586_v27 = vrot.slane %v3819_v17, 4 }
 0x46d   :  { %v811_v12 = vsel %vm690_vm13, %v4329_v11, 0.0 }
 0x46e   :  { %812 = vadd.xlane.f32.xlu0 %v811_v12 }
 0x470   :  { %v4333_v13 = vpop.eup %3914 }
 0x471   :  { %v808_v14 = vsel %vm690_vm13, %v4333_v13, 0.0  ;;  %v4337_v16 = vpop.eup %3916 }
 0x472   :  { %809 = vadd.xlane.f32.xlu2 %v808_v14  ;;  %v805_v25 = vsel %vm690_vm13, %v4337_v16, 0.0 }
 0x477   :  { %v3823_v19 = vpop.permute.xlu1 %3822 }
 0x478   :  { %v3825_v21 = vunpack.i.h.bf16 %v3823_v19  ;;  %v3824_v22 = vunpack.i.l.bf16 %v3823_v19  ;;  %v3828_v23 = vpop.permute.xlu0 %3827 }
 0x479   :  { %v3830_v28 = vunpack.i.h.bf16 %v3828_v23  ;;  %v3829_v30 = vunpack.i.l.bf16 %v3828_v23 }
 0x47a   :  { %v1172_v31 = vrot.slane %v3825_v21, 4  ;;  %v1175_v32 = vsel %vm332_vm12, %v3825_v21, %v1174_v20  ;;  %v572_v33 = vrot.slane %v3824_v22, 4  ;;  %v575_v36 = vsel %vm332_vm12, %v3824_v22, %v574_v18  ;;  %806 = vadd.xlane.f32.xlu2 %v805_v25 }
 0x47b   :  { %v1183_v38 = vperm.slane %v1175_v32, %v4199_v53  ;;  %v583_v39 = vperm.slane %v575_v36, %v4199_v53  ;;  %v1184_v41 = vrot.slane %v3830_v28, 4  ;;  %v1187_v42 = vsel %vm332_vm12, %v3830_v28, %v1186_v26 }
 0x47c   :  { %v1173_v43 = vsel %vm332_vm12, %v1172_v31, %v285_v56  ;;  %v573_v45 = vsel %vm332_vm12, %v572_v33, %v317_v57  ;;  %v1195_v46 = vperm.slane %v1187_v42, %v4199_v53  ;;  %v584_v47 = vrot.slane %v3829_v30, 4 }
 0x47d   :  { %v1179_v44 = vperm.slane %v1173_v43, %v4199_v53  ;;  %v1210_v48 = vrot.slane %v1183_v38, 4  ;;  %v579_v51 = vperm.slane %v573_v45, %v4199_v53  ;;  %v1185_v52 = vsel %vm332_vm12, %v1184_v41, %v3820_v9 }
 0x47e   :  { %v1208_v54 = vrot.slane %v1195_v46, 4  ;;  %v585_v58 = vsel %vm332_vm12, %v584_v47, %v3819_v17  ;;  %v587_v37 = vsel %vm332_vm12, %v3829_v30, %v586_v27  ;;  %v1191_v56 = vperm.slane %v1185_v52, %v4199_v53 }
 0x47f   :  { %v1198_v60 = vrot.slane %v1179_v44, 4  ;;  %v598_v61 = vrot.slane %v579_v51, 4  ;;  %v591_v57 = vperm.slane %v585_v58, %v4199_v53  ;;  %v610_v62 = vrot.slane %v583_v39, 4 }
 0x480   :  { %v595_v63 = vperm.slane %v587_v37, %v4199_v53  ;;  %v1209_v0 = vsel %vm332_vm12, %v1208_v54, %v1183_v38  ;;  %v1211_v2 = vsel %vm332_vm12, %v1195_v46, %v1210_v48  ;;  %v1196_v3 = vrot.slane %v1191_v56, 4 }
 0x481   :  { %v596_v40 = vrot.slane %v591_v57, 4  ;;  %v599_v4 = vsel %vm332_vm12, %v591_v57, %v598_v61  ;;  %v1199_v5 = vsel %vm332_vm12, %v1191_v56, %v1198_v60  ;;  %v1215_v22 = vperm.slane %v1209_v0, %v4206_v1 }
 0x482   :  { %v607_v7 = vperm.slane %v599_v4, %v4206_v1  ;;  %v608_v8 = vrot.slane %v595_v63, 4  ;;  %v611_v12 = vsel %vm332_vm12, %v595_v63, %v610_v62  ;;  %v1207_v14 = vperm.slane %v1199_v5, %v4206_v1 }
 0x483   :  { %v597_v9 = vsel %vm332_vm12, %v596_v40, %v579_v51  ;;  %v619_v17 = vperm.slane %v611_v12, %v4206_v1  ;;  %v1197_v18 = vsel %vm332_vm12, %v1196_v3, %v1179_v44  ;;  %v1219_v26 = vperm.slane %v1211_v2, %v4206_v1 }
 0x484   :  { %v603_v19 = vperm.slane %v597_v9, %v4206_v1  ;;  %v609_v20 = vsel %vm332_vm12, %v608_v8, %v583_v39  ;;  %v622_v21 = vrot.slane %v607_v7, 4  ;;  %v1222_v24 = vrot.slane %v1207_v14, 4 }
 0x485   :  { %v615_v23 = vperm.slane %v609_v20, %v4206_v1  ;;  %v626_v25 = vrot.slane %v619_v17, 4  ;;  %1289 = vrot.lane.b32.xlu1 %v4366_v15, %s3999_s24  ;;  %v1203_v28 = vperm.slane %v1197_v18, %v4206_v1  ;;  %v1224_v38 = vrot.slane %v1215_v22, 4 }
 0x486   :  { %v620_v55 = vrot.slane %v603_v19, 4  ;;  %v623_v27 = vsel %vm332_vm12, 0.0, %v622_v21  ;;  %v1223_v36 = vsel %vm332_vm12, 0.0, %v1222_v24  ;;  %v1226_v43 = vrot.slane %v1219_v26, 4 }
 0x487   :  { %v624_v30 = vrot.slane %v615_v23, 4  ;;  %v627_v31 = vsel %vm332_vm12, 0.0, %v626_v25  ;;  %v639_v32 = vsel %vm332_vm12, %v626_v25, %v615_v23  ;;  %v633_v41 = vrot.slane %v623_v27, 4 }
 0x488   :  { %v644_v33 = vrot.slane %v627_v31, 4  ;;  %v643_v42 = vperm.slane %v639_v32, %v4199_v53  ;;  %v1220_v45 = vrot.slane %v1203_v28, 4  ;;  %v621_v46 = vsel %vm332_vm12, 0.0, %v620_v55 }
 0x489   :  { %v625_v39 = vsel %vm332_vm12, 0.0, %v624_v30  ;;  %v628_v47 = vsel %vm332_vm12, %v622_v21, %v603_v19  ;;  %v1227_v48 = vsel %vm332_vm12, 0.0, %v1226_v43  ;;  %v1233_v51 = vrot.slane %v1223_v36, 4 }
 0x48a   :  { %v645_v44 = vsel %vm332_vm12, %v644_v33, %v625_v39  ;;  %v1239_v52 = vsel %vm332_vm12, %v1226_v43, %v1215_v22  ;;  %v1225_v54 = vsel %vm332_vm12, 0.0, %v1224_v38  ;;  %v1244_v58 = vrot.slane %v1227_v48, 4 }
 0x48b   :  { %v632_v37 = vperm.slane %v628_v47, %v4199_v53  ;;  %v634_v60 = vsel %vm332_vm12, %v633_v41, %v621_v46  ;;  %v649_v61 = vperm.slane %v645_v44, %v4199_v53  ;;  %v664_v56 = vrot.slane %v643_v42, 4 }
 0x48c   :  { %v1243_v57 = vperm.slane %v1239_v52, %v4199_v53  ;;  %v638_v62 = vperm.slane %v634_v60, %v4199_v53  ;;  %v1221_v0 = vsel %vm332_vm12, 0.0, %v1220_v45  ;;  %v1228_v3 = vsel %vm332_vm12, %v1222_v24, %v1203_v28 }
 0x48d   :  { %v652_v63 = vrot.slane %v632_v37, 4  ;;  %v665_v2 = vsel %vm332_vm12, %v649_v61, %v664_v56  ;;  %v1234_v40 = vsel %vm332_vm12, %v1233_v51, %v1221_v0  ;;  %v1245_v4 = vsel %vm332_vm12, %v1244_v58, %v1225_v54 }
 0x48e   :  { %v673_v7 = vperm.slane %v665_v2, %v4206_v1  ;;  %v1232_v12 = vperm.slane %v1228_v3, %v4199_v53  ;;  %v1238_v9 = vperm.slane %v1234_v40, %v4199_v53  ;;  %v1249_v17 = vperm.slane %v1245_v4, %v4199_v53 }
 0x48f   :  { %v653_v5 = vsel %vm332_vm12, %v638_v62, %v652_v63  ;;  %v1264_v18 = vrot.slane %v1243_v57, 4  ;;  %v650_v23 = vrot.slane %v638_v62, 4  ;;  %v662_v33 = vrot.slane %v649_v61, 4 }
 0x490   :  { %v661_v8 = vperm.slane %v653_v5, %v4206_v1  ;;  %v678_v14 = vrot.slane %v673_v7, 4  ;;  %v1252_v19 = vrot.slane %v1232_v12, 4  ;;  %v1250_v39 = vrot.slane %v1238_v9, 4 }
 0x491   :  { %v1265_v21 = vsel %vm332_vm12, %v1249_v17, %v1264_v18  ;;  %v651_v28 = vsel %vm332_vm12, %v650_v23, %v632_v37  ;;  %v1262_v41 = vrot.slane %v1249_v17, 4  ;;  %v663_v45 = vsel %vm332_vm12, %v662_v33, %v643_v42  ;;  %v1044_v17 = vpop.permute.xlu1 %1043 }
 0x492   :  { %v679_v20 = vsel %vm332_vm12, %v678_v14, %v661_v8  ;;  %v1253_v25 = vsel %vm332_vm12, %v1238_v9, %v1252_v19  ;;  %v1273_v24 = vperm.slane %v1265_v21, %v4206_v1  ;;  %v657_v31 = vperm.slane %v651_v28, %v4206_v1 }
 0x493   :  { %v836_v22 = vpack.c.bf16 %v679_v20, %v679_v20  ;;  %v1261_v55 = vperm.slane %v1253_v25, %v4206_v1  ;;  %v680_v36 = vrot.slane %v661_v8, 4  ;;  %v669_v44 = vperm.slane %v663_v45, %v4206_v1 }
 0x494   :  { %v1278_v27 = vrot.slane %v1273_v24, 4  ;;  %v676_v47 = vrot.slane %v657_v31, 4  ;;  %v1251_v51 = vsel %vm332_vm12, %v1250_v39, %v1232_v12  ;;  %v1263_v52 = vsel %vm332_vm12, %v1262_v41, %v1243_v57 }
 0x495   :  { %v881_v26 = vsel %vm841_vm14, %v836_v22, 0  ;;  %v1280_v43 = vrot.slane %v1261_v55, 4  ;;  %v681_v46 = vsel %vm332_vm12, %v673_v7, %v680_v36  ;;  %v1257_v54 = vperm.slane %v1251_v51, %v4206_v1 }
 0x496   :  { %890 = vmatpush.bf16.msra.mxu2 %v881_v26  ;;  %v1279_v30 = vsel %vm332_vm12, %v1278_v27, %v1261_v55  ;;  %v837_v48 = vpack.c.bf16 %v681_v46, %v681_v46  ;;  %v1269_v58 = vperm.slane %v1263_v52, %v4206_v1  ;;  %v674_v60 = vrot.slane %v669_v44, 4 }
 0x497   :  { %v1408_v32 = vpack.c.bf16 %v1279_v30, %v1279_v30  ;;  %v1281_v37 = vsel %vm332_vm12, %v1273_v24, %v1280_v43  ;;  %v677_v56 = vsel %vm332_vm12, %v669_v44, %v676_v47  ;;  %v1276_v0 = vrot.slane %v1257_v54, 4 }
 0x498   :  { %v900_v61 = vsel %vm841_vm14, %v837_v48, 0  ;;  %v1409_v42 = vpack.c.bf16 %v1281_v37, %v1281_v37  ;;  %v1274_v62 = vrot.slane %v1269_v58, 4  ;;  %v835_v63 = vpack.c.bf16 %v677_v56, %v677_v56 }
 0x499   :  { %v1452_v38 = vsel %vm690_vm13, %v1408_v32, 0  ;;  %909 = vmatpush.bf16.msra.mxu3 %v900_v61  ;;  %v675_v2 = vsel %vm332_vm12, %v674_v60, %v657_v31  ;;  %v1277_v5 = vsel %vm332_vm12, %v1269_v58, %v1276_v0  ;;  %v1047_v18 = vpop.permute.xlu1 %1046  ;;  %v1054_v19 = vrot.slane %v4317_v59, 4 }
 0x49a   :  { %1461 = vmatpush.bf16.xpose.msrb.mxu2 %v1452_v38  ;;  %v1471_v57 = vsel %vm690_vm13, %v1409_v42, 0  ;;  %v834_v3 = vpack.c.bf16 %v675_v2, %v675_v2  ;;  %v1275_v40 = vsel %vm332_vm12, %v1274_v62, %v1257_v54  ;;  %v862_v4 = vsel %vm841_vm14, %v835_v63, 0 }
 0x49b   :  { %v1406_v7 = vpack.c.bf16 %v1275_v40, %v1275_v40  ;;  %871 = vmatpush.bf16.msra.mxu1 %v862_v4  ;;  %v1407_v8 = vpack.c.bf16 %v1277_v5, %v1277_v5  ;;  %v1066_v21 = vrot.slane %v1044_v17, 4  ;;  %v1052_v22 = vrot.slane %v1047_v18, 4 }
 0x49c   :  { %v843_v12 = vsel %vm841_vm14, %v834_v3, 0  ;;  %v1055_v23 = vsel %vm332_vm12, %v1047_v18, %v1054_v19 }
 0x49d   :  { %1480 = vmatpush.bf16.xpose.msrb.mxu3 %v1471_v57  ;;  %852 = vmatpush.bf16.msra.mxu0 %v843_v12  ;;  %v1414_v14 = vsel %vm690_vm13, %v1406_v7, 0  ;;  %v1433_v9 = vsel %vm690_vm13, %v1407_v8, 0  ;;  %v1063_v24 = vperm.slane %v1055_v23, %v4199_v53  ;;  %v1053_v55 = vsel %vm332_vm12, %v1052_v22, %v4317_v59 }
 0x49e   :  { %v1059_v30 = vperm.slane %v1053_v55, %v4199_v53 }
 0x49f   :  { %1442 = vmatpush.bf16.xpose.msrb.mxu1 %v1433_v9  ;;  %v1090_v31 = vrot.slane %v1063_v24, 4 }
 0x4a0   :  { %v1078_v38 = vrot.slane %v1059_v30, 4 }
 0x4a1   :  { %1423 = vmatpush.bf16.xpose.msrb.mxu0 %v1414_v14  ;;  %v1050_v20 = vpop.permute.xlu1 %1049 }
 0x4a2   :  { %v1064_v25 = vrot.slane %v1050_v20, 4  ;;  %v1067_v26 = vsel %vm332_vm12, %v1050_v20, %v1066_v21 }
 0x4a3   :  { %v1075_v27 = vperm.slane %v1067_v26, %v4199_v53 }
 0x4a4   :  { %v1065_v28 = vsel %vm332_vm12, %v1064_v25, %v1044_v17 }
 0x4a5   :  { %v1071_v32 = vperm.slane %v1065_v28, %v4199_v53  ;;  %v1088_v33 = vrot.slane %v1075_v27, 4  ;;  %v1091_v36 = vsel %vm332_vm12, %v1075_v27, %v1090_v31 }
 0x4a6   :  { %v1099_v39 = vperm.slane %v1091_v36, %v4206_v1 }
 0x4a7   :  { %v1076_v41 = vrot.slane %v1071_v32, 4  ;;  %v1079_v43 = vsel %vm332_vm12, %v1071_v32, %v1078_v38  ;;  %v1089_v59 = vsel %vm332_vm12, %v1088_v33, %v1063_v24 }
 0x4a8   :  { %v1087_v45 = vperm.slane %v1079_v43, %v4206_v1  ;;  %v1095_v46 = vperm.slane %v1089_v59, %v4206_v1  ;;  %v1106_v47 = vrot.slane %v1099_v39, 4 }
 0x4a9   :  { %v1077_v44 = vsel %vm332_vm12, %v1076_v41, %v1059_v30 }
 0x4aa   :  { %v1083_v48 = vperm.slane %v1077_v44, %v4206_v1  ;;  %v1102_v51 = vrot.slane %v1087_v45, 4  ;;  %v1104_v52 = vrot.slane %v1095_v46, 4  ;;  %v1107_v54 = vsel %vm332_vm12, 0.0, %v1106_v47 }
 0x4ab   :  { %v1124_v58 = vrot.slane %v1107_v54, 4  ;;  %v1119_v4 = vsel %vm332_vm12, %v1106_v47, %v1095_v46 }
 0x4ac   :  { %v1100_v37 = vrot.slane %v1083_v48, 4  ;;  %v1103_v60 = vsel %vm332_vm12, 0.0, %v1102_v51  ;;  %v1105_v61 = vsel %vm332_vm12, 0.0, %v1104_v52  ;;  %v1108_v2 = vsel %vm332_vm12, %v1102_v51, %v1083_v48 }
 0x4ad   :  { %v1113_v56 = vrot.slane %v1103_v60, 4  ;;  %v1125_v62 = vsel %vm332_vm12, %v1124_v58, %v1105_v61  ;;  %v1112_v40 = vperm.slane %v1108_v2, %v4199_v53  ;;  %v1123_v17 = vperm.slane %v1119_v4, %v4199_v53 }
 0x4ae   :  { %v1101_v63 = vsel %vm332_vm12, 0.0, %v1100_v37  ;;  %v1129_v57 = vperm.slane %v1125_v62, %v4199_v53 }
 0x4af   :  { %v1114_v3 = vsel %vm332_vm12, %v1113_v56, %v1101_v63  ;;  %v1132_v18 = vrot.slane %v1112_v40, 4  ;;  %v1144_v24 = vrot.slane %v1123_v17, 4 }
 0x4b0   :  { %v1118_v8 = vperm.slane %v1114_v3, %v4199_v53  ;;  %v1142_v12 = vrot.slane %v1129_v57, 4 }
 0x4b2   :  { %v1143_v22 = vsel %vm332_vm12, %v1142_v12, %v1123_v17  ;;  %v1133_v27 = vsel %vm332_vm12, %v1118_v8, %v1132_v18 }
 0x4b3   :  { %v1149_v28 = vperm.slane %v1143_v22, %v4206_v1  ;;  %v1141_v33 = vperm.slane %v1133_v27, %v4206_v1 }
 0x4b5   :  { %v1154_v38 = vrot.slane %v1149_v28, 4  ;;  %v1160_v43 = vrot.slane %v1141_v33, 4 }
 0x4df   :  { %v804_v42 = vpop.xlane.xlu1 %803 }
 0x4e0   :  { %3918 = vrcp.f32 %v804_v42  ;;  %v210_v42 = vld [vmem:[%s5374_s1 + $0x1] sm:$0x1] }
 0x4e1   :  { %v813_v0 = vpop.xlane.xlu0 %812  ;;  %v212_v56 = vsub.f32 1.0, %v210_v42 }
 0x4e2   :  { %3920 = vrcp.f32 %v813_v0 }
 0x4e3   :  { %v214_v2 = vmul.f32 -1e+09, %v212_v56 }
 0x4e5   :  { %v810_v5 = vpop.xlane.xlu2 %809 }
 0x4e6   :  { %v3919_v7 = vpop.eup %3918  ;;  %3922 = vrcp.f32 %v810_v5 }
 0x4e7   :  { %v818_v14 = vmul.f32 %v3919_v7, %v4325_v6  ;;  %v1130_v6 = vrot.slane %v1118_v8, 4 }
 0x4e8   :  { %v3921_v9 = vpop.eup %3920 }
 0x4e9   :  { %v822_v19 = vsel %vm690_vm13, %v818_v14, 0.0  ;;  %v830_v20 = vpack.c.bf16 %v818_v14, %v818_v14  ;;  %v821_v21 = vmul.f32 %v3921_v9, %v4329_v11  ;;  %v1131_v32 = vsel %vm332_vm12, %v1130_v6, %v1112_v40 }
 0x4ea   :  { %826 = vst [vmem:[%s5375_s19] sm:$0xff] %v822_v19  ;;  %v1137_v36 = vperm.slane %v1131_v32, %v4206_v1  ;;  %v4512_v9 = vperm.slane %v214_v2, 0 }
 0x4eb   :  { %v825_v23 = vsel %vm690_vm13, %v821_v21, 0.0  ;;  %v833_v25 = vpack.c.bf16 %v821_v21, %v821_v21  ;;  %3669 = vmatmul.msk.bf16.vlgmr.msra.gmra.mxu0 %vm690_vm13, %v830_v20 }
 0x4ec   :  { %v3923_v26 = vpop.eup %3922  ;;  %829 = vst [vmem:[%s5375_s19 + $0x18] sm:$0xff] %v825_v23  ;;  %v1155_v45 = vsel %vm332_vm12, %v1154_v38, %v1137_v36  ;;  %v1156_v58 = vrot.slane %v1137_v36, 4 }
 0x4ed   :  { %v820_v11 = vmul.f32 %v3923_v26, %v4333_v13  ;;  %v807_v55 = vpop.xlane.xlu2 %806  ;;  %3672 = vmatmul.msk.bf16.vlgmr.msra.gmra.mxu3 %vm690_vm13, %v833_v25  ;;  %v1145_v13 = vsel %vm332_vm12, %v1129_v57, %v1144_v24  ;;  %v1402_v51 = vpack.c.bf16 %v1155_v45, %v1155_v45 }
 0x4ee   :  { %3924 = vrcp.f32 %v807_v55  ;;  %v1153_v41 = vperm.slane %v1145_v13, %v4206_v1  ;;  %v1157_v37 = vsel %vm332_vm12, %v1149_v28, %v1156_v58 }
 0x4ef   :  { %v824_v30 = vsel %vm690_vm13, %v820_v11, 0.0  ;;  %v832_v31 = vpack.c.bf16 %v820_v11, %v820_v11  ;;  %v1403_v60 = vpack.c.bf16 %v1157_v37, %v1157_v37 }
 0x4f0   :  { %828 = vst [vmem:[%s5375_s19 + $0x10] sm:$0xff] %v824_v30  ;;  %v1161_v44 = vsel %vm332_vm12, %v1153_v41, %v1160_v43  ;;  %v1158_v48 = vrot.slane %v1153_v41, 4 }
 0x4f1   :  { %3671 = vmatmul.msk.bf16.vlgmr.msra.gmra.mxu2 %vm690_vm13, %v832_v31  ;;  %v1405_v52 = vpack.c.bf16 %v1161_v44, %v1161_v44 }
 0x4f4   :  { %v3925_v39 = vpop.eup %3924 }
 0x4f5   :  { %v819_v59 = vmul.f32 %v3925_v39, %v4337_v16  ;;  %v1159_v16 = vsel %vm332_vm12, %v1158_v48, %v1141_v33 }
 0x4f6   :  { %v1404_v54 = vpack.c.bf16 %v1159_v16, %v1159_v16 }
 0x4f7   :  { %v823_v46 = vsel %vm690_vm13, %v819_v59, 0.0  ;;  %v831_v47 = vpack.c.bf16 %v819_v59, %v819_v59 }
 0x4f8   :  { %827 = vst [vmem:[%s5375_s19 + $0x8] sm:$0xff] %v823_v46 }
 0x4f9   :  { %3670 = vmatmul.msk.bf16.vlgmr.msra.gmra.mxu1 %vm690_vm13, %v831_v47 }
 0x4fb   :  { %3673 = vmatmul.msk.bf16.vlgmr.msrb.gmra.mxu0 %vm690_vm13, %v1402_v51 }
 0x4fd   :  { %3676 = vmatmul.msk.bf16.vlgmr.msrb.gmra.mxu3 %vm690_vm13, %v1405_v52 }
 0x501   :  { %3675 = vmatmul.msk.bf16.vlgmr.msrb.gmra.mxu2 %vm690_vm13, %v1404_v54 }
 0x509   :  { %3674 = vmatmul.msk.bf16.vlgmr.msrb.gmra.mxu1 %vm690_vm13, %v1403_v60 }
 0x568   :  { %v854_v61 = vpop.f32.mrf.mxu0 }
 0x569   :  { %v917_v0 = vrot.slane %v854_v61, 4 }
 0x570   :  { %v856_v62 = vpop.f32.mrf.mxu0  ;;  %v911_v63 = vpop.f32.mrf.mxu3 }
 0x571   :  { %v927_v3 = vrot.slane %v911_v63, 4 }
 0x574   :  { %v892_v57 = vpop.f32.mrf.mxu2 }
 0x575   :  { %v915_v40 = vrot.slane %v892_v57, 4  ;;  %v918_v4 = vsel %vm332_vm12, %v892_v57, %v917_v0 }
 0x576   :  { %v926_v5 = vperm.slane %v918_v4, %v4199_v53  ;;  %v873_v7 = vpop.f32.mrf.mxu1 }
 0x577   :  { %v916_v8 = vsel %vm332_vm12, %v915_v40, %v854_v61  ;;  %v928_v12 = vsel %vm332_vm12, %v927_v3, %v873_v7  ;;  %v929_v14 = vrot.slane %v873_v7, 4 }
 0x578   :  { %v922_v17 = vperm.slane %v916_v8, %v4199_v53  ;;  %v1425_v18 = vpop.f32.mrf.mxu0  ;;  %v934_v19 = vperm.slane %v928_v12, %v4199_v53  ;;  %v913_v20 = vpop.f32.mrf.mxu3  ;;  %v953_v25 = vrot.slane %v926_v5, 4 }
 0x579   :  { %v1486_v21 = vmul.f32 0.35355338, %v1425_v18  ;;  %v930_v22 = vsel %vm332_vm12, %v911_v63, %v929_v14 }
 0x57a   :  { %v941_v23 = vrot.slane %v922_v17, 4  ;;  %v938_v6 = vperm.slane %v930_v22, %v4199_v53  ;;  %v939_v26 = vrot.slane %v934_v19, 4 }
 0x57b   :  { %v4519_v24 = vadd.f32 %v4512_v9, %v1486_v21 }
 0x57c   :  { %v940_v11 = vsel %vm332_vm12, %v939_v26, %v922_v17  ;;  %v942_v55 = vsel %vm332_vm12, %v934_v19, %v941_v23  ;;  %v951_v27 = vrot.slane %v938_v6, 4  ;;  %v954_v28 = vsel %vm332_vm12, %v938_v6, %v953_v25  ;;  %v894_v30 = vpop.f32.mrf.mxu2 }
 0x57d   :  { %v946_v31 = vperm.slane %v940_v11, %v4206_v1  ;;  %v950_v32 = vperm.slane %v942_v55, %v4206_v1  ;;  %v962_v33 = vperm.slane %v954_v28, %v4206_v1  ;;  %v1497_v13 = vsel %vm690_vm13, %v4519_v24, -inf }
 0x57e   :  { %v952_v36 = vsel %vm332_vm12, %v951_v27, %v926_v5  ;;  %1498 = vmax.xlane.f32.xlu0 %v1497_v13  ;;  %v875_v38 = vpop.f32.mrf.mxu1 }
 0x57f   :  { %v958_v39 = vperm.slane %v952_v36, %v4206_v1  ;;  %v963_v41 = vrot.slane %v946_v31, 4  ;;  %v965_v43 = vrot.slane %v950_v32, 4  ;;  %v969_v59 = vrot.slane %v962_v33, 4 }
 0x580   :  { %v1427_v45 = vpop.f32.mrf.mxu0  ;;  %v1482_v46 = vpop.f32.mrf.mxu3 }
 0x581   :  { %v966_v47 = vsel %vm332_vm12, 0.0, %v965_v43  ;;  %v967_v44 = vrot.slane %v958_v39, 4  ;;  %v970_v48 = vsel %vm332_vm12, 0.0, %v969_v59  ;;  %v971_v51 = vsel %vm332_vm12, %v965_v43, %v946_v31 }
 0x582   :  { %v976_v52 = vrot.slane %v966_v47, 4  ;;  %v982_v16 = vsel %vm332_vm12, %v969_v59, %v958_v39  ;;  %v987_v54 = vrot.slane %v970_v48, 4  ;;  %v964_v58 = vsel %vm332_vm12, 0.0, %v963_v41 }
 0x583   :  { %v968_v37 = vsel %vm332_vm12, 0.0, %v967_v44  ;;  %v975_v60 = vperm.slane %v971_v51, %v4199_v53  ;;  %v986_v61 = vperm.slane %v982_v16, %v4199_v53  ;;  %v1489_v22 = vmul.f32 0.35355338, %v1482_v46 }
 0x584   :  { %v977_v42 = vsel %vm332_vm12, %v976_v52, %v964_v58  ;;  %v1463_v56 = vpop.f32.mrf.mxu2  ;;  %v988_v62 = vsel %vm332_vm12, %v987_v54, %v968_v37 }
 0x585   :  { %v1488_v63 = vmul.f32 0.35355338, %v1463_v56  ;;  %v981_v0 = vperm.slane %v977_v42, %v4199_v53  ;;  %v992_v2 = vperm.slane %v988_v62, %v4199_v53  ;;  %v995_v3 = vrot.slane %v975_v60, 4  ;;  %v1290_v42 = vpop.permute.xlu1 %1289 }
 0x586   :  { %v1444_v57 = vpop.f32.mrf.mxu1  ;;  %v1007_v40 = vrot.slane %v986_v61, 4  ;;  %v1496_v36 = vadd.f32 %v4512_v9, %v1489_v22  ;;  %v1294_v62 = vrot.slane %v4366_v15, 4 }
 0x587   :  { %v1487_v4 = vmul.f32 0.35355338, %v1444_v57  ;;  %v1495_v5 = vadd.f32 %v4512_v9, %v1488_v63  ;;  %v993_v7 = vrot.slane %v981_v0, 4  ;;  %v996_v12 = vsel %vm332_vm12, %v981_v0, %v995_v3 }
 0x588   :  { %v1484_v8 = vpop.f32.mrf.mxu3  ;;  %v1008_v14 = vsel %vm332_vm12, %v992_v2, %v1007_v40  ;;  %v1005_v17 = vrot.slane %v992_v2, 4  ;;  %v1004_v20 = vperm.slane %v996_v12, %v4206_v1  ;;  %v1506_v41 = vsel %vm690_vm13, %v1496_v36, -inf }
 0x589   :  { %v1503_v18 = vsel %vm690_vm13, %v1495_v5, -inf  ;;  %v1494_v19 = vadd.f32 %v4512_v9, %v1487_v4  ;;  %v1016_v21 = vperm.slane %v1008_v14, %v4206_v1  ;;  %v994_v23 = vsel %vm332_vm12, %v993_v7, %v975_v60 }
 0x58a   :  { %1504 = vmax.xlane.f32.xlu0 %v1503_v18  ;;  %v1006_v25 = vsel %vm332_vm12, %v1005_v17, %v986_v61  ;;  %v1023_v11 = vrot.slane %v1004_v20, 4  ;;  %v1000_v55 = vperm.slane %v994_v23, %v4206_v1  ;;  %v1304_v63 = vrot.slane %v1290_v42, 4 }
 0x58b   :  { %v1500_v6 = vsel %vm690_vm13, %v1494_v19, -inf  ;;  %v1021_v26 = vrot.slane %v1016_v21, 4  ;;  %v1012_v28 = vperm.slane %v1006_v25, %v4206_v1 }
 0x58c   :  { %v1465_v27 = vpop.f32.mrf.mxu2  ;;  %1501 = vmax.xlane.f32.xlu2 %v1500_v6  ;;  %v4559_v31 = vsel %vm332_vm12, %v1016_v21, %v1023_v11  ;;  %v1019_v32 = vrot.slane %v1000_v55, 4 }
 0x58d   :  { %v4556_v30 = vsel %vm332_vm12, %v1021_v26, %v1004_v20  ;;  %v1017_v13 = vrot.slane %v1012_v28, 4 }
 0x58e   :  { %v1446_v33 = vpop.f32.mrf.mxu1  ;;  %v4563_v38 = vsel %vm332_vm12, %v1012_v28, %v1019_v32 }
 0x58f   :  { %v4566_v39 = vsel %vm332_vm12, %v1017_v13, %v1000_v55 }
 0x594   :  { %1507 = vmax.xlane.f32.xlu2 %v1506_v41 }
 0x59e   :  { %1283 = vrot.lane.b32.xlu0 %v4366_v15, %s4001_s25 }
 0x5ac   :  { %1286 = vrot.lane.b32.xlu2 %v4366_v15, %s4000_s3 }
 0x5f1   :  { %v1499_v43 = vpop.xlane.xlu0 %1498 }
 0x5f2   :  { %v1509_v59 = vsub.f32 %v4519_v24, %v1499_v43 }
 0x5f4   :  { %v1513_v45 = vmul.f32 1.442695, %v1509_v59 }
 0x5f6   :  { %3926 = vpow2.f32 %v1513_v45 }
 0x5fc   :  { %v4574_v46 = vpop.eup %3926 }
 0x5fd   :  { %v1521_v47 = vsel %vm690_vm13, %v4574_v46, 0.0  ;;  %v1505_v44 = vpop.xlane.xlu0 %1504 }
 0x5fe   :  { %1522 = vadd.xlane.f32.xlu1 %v1521_v47  ;;  %v1511_v48 = vsub.f32 %v1495_v5, %v1505_v44 }
 0x5ff   :  { %v1502_v51 = vpop.xlane.xlu2 %1501 }
 0x600   :  { %v1517_v52 = vmul.f32 1.442695, %v1511_v48  ;;  %v1510_v16 = vsub.f32 %v1494_v19, %v1502_v51 }
 0x602   :  { %3928 = vpow2.f32 %v1517_v52  ;;  %v1515_v54 = vmul.f32 1.442695, %v1510_v16 }
 0x604   :  { %3930 = vpow2.f32 %v1515_v54 }
 0x607   :  { %v1508_v58 = vpop.xlane.xlu2 %1507 }
 0x608   :  { %v4578_v37 = vpop.eup %3928  ;;  %v1512_v24 = vsub.f32 %v1496_v36, %v1508_v58 }
 0x609   :  { %v1527_v60 = vsel %vm690_vm13, %v4578_v37, 0.0 }
 0x60a   :  { %v1519_v61 = vmul.f32 1.442695, %v1512_v24  ;;  %1528 = vadd.xlane.f32.xlu0 %v1527_v60  ;;  %v4582_v56 = vpop.eup %3930 }
 0x60b   :  { %v1524_v7 = vsel %vm690_vm13, %v4582_v56, 0.0 }
 0x60c   :  { %3932 = vpow2.f32 %v1519_v61 }
 0x60f   :  { %v1287_v0 = vpop.permute.xlu2 %1286 }
 0x610   :  { %v1292_v2 = vrot.slane %v1287_v0, 4  ;;  %v1295_v57 = vsel %vm332_vm12, %v1287_v0, %v1294_v62  ;;  %v1284_v3 = vpop.permute.xlu0 %1283 }
 0x611   :  { %v1303_v40 = vperm.slane %v1295_v57, %v4199_v53  ;;  %v1305_v4 = vsel %vm332_vm12, %v1304_v63, %v1284_v3  ;;  %v1306_v5 = vrot.slane %v1284_v3, 4 }
 0x612   :  { %v4590_v8 = vpop.eup %3932  ;;  %v1293_v12 = vsel %vm332_vm12, %v1292_v2, %v4366_v15  ;;  %v1311_v14 = vperm.slane %v1305_v4, %v4199_v53  ;;  %1525 = vadd.xlane.f32.xlu0 %v1524_v7 }
 0x613   :  { %v1299_v17 = vperm.slane %v1293_v12, %v4199_v53  ;;  %v1330_v18 = vrot.slane %v1303_v40, 4  ;;  %v1307_v19 = vsel %vm332_vm12, %v1290_v42, %v1306_v5  ;;  %v1530_v20 = vsel %vm690_vm13, %v4590_v8, 0.0 }
 0x614   :  { %v1315_v21 = vperm.slane %v1307_v19, %v4199_v53  ;;  %v1316_v22 = vrot.slane %v1311_v14, 4  ;;  %1531 = vadd.xlane.f32.xlu2 %v1530_v20 }
 0x615   :  { %v1318_v23 = vrot.slane %v1299_v17, 4 }
 0x616   :  { %v1317_v25 = vsel %vm332_vm12, %v1316_v22, %v1299_v17  ;;  %v1328_v6 = vrot.slane %v1315_v21, 4  ;;  %v1331_v15 = vsel %vm332_vm12, %v1315_v21, %v1330_v18 }
 0x617   :  { %v1319_v26 = vsel %vm332_vm12, %v1311_v14, %v1318_v23  ;;  %v1323_v11 = vperm.slane %v1317_v25, %v4206_v1  ;;  %v1339_v55 = vperm.slane %v1331_v15, %v4206_v1 }
 0x618   :  { %v1327_v27 = vperm.slane %v1319_v26, %v4206_v1  ;;  %v1329_v28 = vsel %vm332_vm12, %v1328_v6, %v1303_v40 }
 0x619   :  { %v1335_v32 = vperm.slane %v1329_v28, %v4206_v1  ;;  %v1346_v33 = vrot.slane %v1339_v55, 4  ;;  %v1340_v13 = vrot.slane %v1323_v11, 4 }
 0x61a   :  { %v1342_v36 = vrot.slane %v1327_v27, 4 }
 0x61b   :  { %v1344_v41 = vrot.slane %v1335_v32, 4  ;;  %v1347_v43 = vsel %vm332_vm12, 0.0, %v1346_v33  ;;  %v1359_v59 = vsel %vm332_vm12, %v1346_v33, %v1335_v32  ;;  %v1341_v54 = vsel %vm332_vm12, 0.0, %v1340_v13 }
 0x61c   :  { %v1343_v45 = vsel %vm332_vm12, 0.0, %v1342_v36  ;;  %v1348_v47 = vsel %vm332_vm12, %v1342_v36, %v1323_v11  ;;  %v1363_v44 = vperm.slane %v1359_v59, %v4199_v53  ;;  %v1364_v48 = vrot.slane %v1347_v43, 4 }
 0x61d   :  { %v1345_v51 = vsel %vm332_vm12, 0.0, %v1344_v41  ;;  %v1352_v52 = vperm.slane %v1348_v47, %v4199_v53  ;;  %v1353_v16 = vrot.slane %v1343_v45, 4 }
 0x61e   :  { %v1365_v58 = vsel %vm332_vm12, %v1364_v48, %v1345_v51  ;;  %v1384_v24 = vrot.slane %v1363_v44, 4 }
 0x61f   :  { %v1354_v60 = vsel %vm332_vm12, %v1353_v16, %v1341_v54  ;;  %v1369_v61 = vperm.slane %v1365_v58, %v4199_v53  ;;  %v1372_v42 = vrot.slane %v1352_v52, 4 }
 0x620   :  { %v1358_v62 = vperm.slane %v1354_v60, %v4199_v53 }
 0x621   :  { %v1385_v63 = vsel %vm332_vm12, %v1369_v61, %v1384_v24  ;;  %v1382_v0 = vrot.slane %v1369_v61, 4 }
 0x622   :  { %v1373_v2 = vsel %vm332_vm12, %v1358_v62, %v1372_v42  ;;  %v1393_v57 = vperm.slane %v1385_v63, %v4206_v1  ;;  %v1370_v3 = vrot.slane %v1358_v62, 4 }
 0x623   :  { %v1381_v40 = vperm.slane %v1373_v2, %v4206_v1  ;;  %v1383_v4 = vsel %vm332_vm12, %v1382_v0, %v1363_v44 }
 0x624   :  { %v1398_v5 = vrot.slane %v1393_v57, 4  ;;  %v1371_v7 = vsel %vm332_vm12, %v1370_v3, %v1352_v52  ;;  %v1389_v12 = vperm.slane %v1383_v4, %v4206_v1 }
 0x625   :  { %v1400_v14 = vrot.slane %v1381_v40, 4  ;;  %v1377_v17 = vperm.slane %v1371_v7, %v4206_v1 }
 0x626   :  { %v1399_v18 = vsel %vm332_vm12, %v1398_v5, %v1381_v40  ;;  %v1394_v19 = vrot.slane %v1389_v12, 4 }
 0x627   :  { %v1556_v20 = vpack.c.bf16 %v1399_v18, %v1399_v18  ;;  %v1401_v21 = vsel %vm332_vm12, %v1393_v57, %v1400_v14  ;;  %v1396_v22 = vrot.slane %v1377_v17, 4 }
 0x628   :  { %v1557_v23 = vpack.c.bf16 %v1401_v21, %v1401_v21  ;;  %v1395_v25 = vsel %vm332_vm12, %v1394_v19, %v1377_v17 }
 0x629   :  { %v1600_v6 = vsel %vm841_vm14, %v1556_v20, 0  ;;  %v1554_v15 = vpack.c.bf16 %v1395_v25, %v1395_v25  ;;  %v1397_v26 = vsel %vm332_vm12, %v1389_v12, %v1396_v22 }
 0x62a   :  { %1609 = vmatpush.bf16.msra.mxu2 %v1600_v6  ;;  %v1619_v11 = vsel %vm841_vm14, %v1557_v23, 0  ;;  %v1555_v55 = vpack.c.bf16 %v1397_v26, %v1397_v26 }
 0x62b   :  { %1628 = vmatpush.bf16.msra.mxu3 %v1619_v11  ;;  %v1562_v27 = vsel %vm841_vm14, %v1554_v15, 0 }
 0x62c   :  { %1571 = vmatpush.bf16.msra.mxu0 %v1562_v27  ;;  %v1581_v28 = vsel %vm841_vm14, %v1555_v55, 0 }
 0x62d   :  { %1590 = vmatpush.bf16.msra.mxu1 %v1581_v28 }
 0x671   :  { %v1523_v32 = vpop.xlane.xlu1 %1522 }
 0x672   :  { %3934 = vrcp.f32 %v1523_v32 }
 0x678   :  { %v3935_v33 = vpop.eup %3934 }
 0x679   :  { %v1537_v13 = vmul.f32 %v3935_v33, %v4574_v46 }
 0x67b   :  { %v1541_v36 = vsel %vm690_vm13, %v1537_v13, 0.0  ;;  %v1550_v41 = vpack.c.bf16 %v1537_v13, %v1537_v13 }
 0x67c   :  { %3677 = vst [vmem:[%s5375_s19 + $0x20] sm:$0xff] %v1541_v36 }
 0x67d   :  { %3681 = vmatmul.msk.bf16.vlgmr.msra.gmra.mxu0 %vm690_vm13, %v1550_v41  ;;  %v1529_v43 = vpop.xlane.xlu0 %1528 }
 0x67e   :  { %3936 = vrcp.f32 %v1529_v43 }
 0x684   :  { %v3937_v59 = vpop.eup %3936 }
 0x685   :  { %v1539_v45 = vmul.f32 %v3937_v59, %v4578_v37  ;;  %v1526_v47 = vpop.xlane.xlu0 %1525 }
 0x686   :  { %3938 = vrcp.f32 %v1526_v47 }
 0x687   :  { %v1543_v44 = vsel %vm690_vm13, %v1539_v45, 0.0  ;;  %v1552_v48 = vpack.c.bf16 %v1539_v45, %v1539_v45  ;;  %v1532_v46 = vpop.xlane.xlu2 %1531 }
 0x688   :  { %3679 = vst [vmem:[%s5375_s19 + $0x30] sm:$0xff] %v1543_v44  ;;  %3940 = vrcp.f32 %v1532_v46 }
 0x689   :  { %3683 = vmatmul.msk.bf16.vlgmr.msra.gmra.mxu2 %vm690_vm13, %v1552_v48 }
 0x68c   :  { %v3939_v51 = vpop.eup %3938 }
 0x68d   :  { %v1538_v52 = vmul.f32 %v3939_v51, %v4582_v56 }
 0x68e   :  { %v3941_v16 = vpop.eup %3940 }
 0x68f   :  { %v1542_v54 = vsel %vm690_vm13, %v1538_v52, 0.0  ;;  %v1551_v37 = vpack.c.bf16 %v1538_v52, %v1538_v52  ;;  %v1540_v58 = vmul.f32 %v3941_v16, %v4590_v8 }
 0x690   :  { %3678 = vst [vmem:[%s5375_s19 + $0x28] sm:$0xff] %v1542_v54 }
 0x691   :  { %v1544_v24 = vsel %vm690_vm13, %v1540_v58, 0.0  ;;  %v1553_v60 = vpack.c.bf16 %v1540_v58, %v1540_v58  ;;  %3682 = vmatmul.msk.bf16.vlgmr.msra.gmra.mxu1 %vm690_vm13, %v1551_v37 }
 0x692   :  { %3680 = vst [vmem:[%s5375_s19 + $0x38] sm:$0xff] %v1544_v24 }
 0x693   :  { %3684 = vmatmul.msk.bf16.vlgmr.msra.gmra.mxu3 %vm690_vm13, %v1553_v60 }
 0x6fa   :  { %v1573_v56 = vpop.f32.mrf.mxu0 }
 0x6fb   :  { %v1636_v8 = vrot.slane %v1573_v56, 4 }
 0x702   :  { %v1575_v61 = vpop.f32.mrf.mxu0 }
 0x70c   :  { %v1611_v42 = vpop.f32.mrf.mxu2 }
 0x70d   :  { %v1634_v63 = vrot.slane %v1611_v42, 4  ;;  %v1637_v0 = vsel %vm332_vm12, %v1611_v42, %v1636_v8 }
 0x70e   :  { %v1592_v62 = vpop.f32.mrf.mxu1  ;;  %v1645_v57 = vperm.slane %v1637_v0, %v4199_v53 }
 0x70f   :  { %v1635_v2 = vsel %vm332_vm12, %v1634_v63, %v1573_v56  ;;  %v1648_v40 = vrot.slane %v1592_v62, 4 }
 0x710   :  { %v1641_v4 = vperm.slane %v1635_v2, %v4199_v53  ;;  %v1672_v17 = vrot.slane %v1645_v57, 4 }
 0x712   :  { %v1660_v20 = vrot.slane %v1641_v4, 4 }
 0x714   :  { %v1613_v3 = vpop.f32.mrf.mxu2 }
 0x716   :  { %v1594_v5 = vpop.f32.mrf.mxu1  ;;  %v1630_v7 = vpop.f32.mrf.mxu3 }
 0x717   :  { %v1646_v12 = vrot.slane %v1630_v7, 4  ;;  %v1649_v14 = vsel %vm332_vm12, %v1630_v7, %v1648_v40 }
 0x718   :  { %v1657_v18 = vperm.slane %v1649_v14, %v4199_v53 }
 0x719   :  { %v1647_v19 = vsel %vm332_vm12, %v1646_v12, %v1592_v62 }
 0x71a   :  { %v1653_v21 = vperm.slane %v1647_v19, %v4199_v53  ;;  %v1670_v22 = vrot.slane %v1657_v18, 4  ;;  %v1673_v23 = vsel %vm332_vm12, %v1657_v18, %v1672_v17 }
 0x71b   :  { %v1681_v25 = vperm.slane %v1673_v23, %v4206_v1 }
 0x71c   :  { %v1658_v6 = vrot.slane %v1653_v21, 4  ;;  %v1661_v15 = vsel %vm332_vm12, %v1653_v21, %v1660_v20  ;;  %v1671_v26 = vsel %vm332_vm12, %v1670_v22, %v1645_v57 }
 0x71d   :  { %v1669_v11 = vperm.slane %v1661_v15, %v4206_v1  ;;  %v1677_v55 = vperm.slane %v1671_v26, %v4206_v1  ;;  %v1688_v27 = vrot.slane %v1681_v25, 4 }
 0x71e   :  { %v1659_v28 = vsel %vm332_vm12, %v1658_v6, %v1641_v4  ;;  %v1632_v32 = vpop.f32.mrf.mxu3 }
 0x71f   :  { %v1665_v33 = vperm.slane %v1659_v28, %v4206_v1  ;;  %v1684_v13 = vrot.slane %v1669_v11, 4  ;;  %v1686_v36 = vrot.slane %v1677_v55, 4  ;;  %v1689_v41 = vsel %vm332_vm12, 0.0, %v1688_v27 }
 0x720   :  { %v1701_v43 = vsel %vm332_vm12, %v1688_v27, %v1677_v55  ;;  %v1706_v59 = vrot.slane %v1689_v41, 4 }
 0x721   :  { %v1682_v45 = vrot.slane %v1665_v33, 4  ;;  %v1685_v47 = vsel %vm332_vm12, 0.0, %v1684_v13  ;;  %v1687_v44 = vsel %vm332_vm12, 0.0, %v1686_v36  ;;  %v1690_v48 = vsel %vm332_vm12, %v1684_v13, %v1665_v33 }
 0x722   :  { %v1695_v46 = vrot.slane %v1685_v47, 4  ;;  %v1705_v51 = vperm.slane %v1701_v43, %v4199_v53  ;;  %v1707_v52 = vsel %vm332_vm12, %v1706_v59, %v1687_v44  ;;  %v1694_v16 = vperm.slane %v1690_v48, %v4199_v53  ;;  %v3882_v59 = vld [vmem:[%s5376_s13] ss:$0 sm:$0xff] }
 0x723   :  { %v1711_v54 = vperm.slane %v1707_v52, %v4199_v53  ;;  %v1683_v37 = vsel %vm332_vm12, 0.0, %v1682_v45 }
 0x724   :  { %v1726_v58 = vrot.slane %v1705_v51, 4  ;;  %v1696_v24 = vsel %vm332_vm12, %v1695_v46, %v1683_v37  ;;  %v1714_v60 = vrot.slane %v1694_v16, 4 }
 0x725   :  { %v1700_v56 = vperm.slane %v1696_v24, %v4199_v53  ;;  %v1724_v61 = vrot.slane %v1711_v54, 4 }
 0x726   :  { %v1727_v42 = vsel %vm332_vm12, %v1711_v54, %v1726_v58 }
 0x727   :  { %v1715_v62 = vsel %vm332_vm12, %v1700_v56, %v1714_v60  ;;  %v1735_v8 = vperm.slane %v1727_v42, %v4206_v1  ;;  %v1712_v63 = vrot.slane %v1700_v56, 4  ;;  %v1725_v0 = vsel %vm332_vm12, %v1724_v61, %v1705_v51 }
 0x728   :  { %v1723_v2 = vperm.slane %v1715_v62, %v4206_v1  ;;  %v1731_v57 = vperm.slane %v1725_v0, %v4206_v1  ;;  %v3798_v0 = vld [vmem:[%s5370_s8 + $0x18] sm:$0xff] }
 0x729   :  { %v1740_v3 = vrot.slane %v1735_v8, 4  ;;  %v1713_v40 = vsel %vm332_vm12, %v1712_v63, %v1694_v16  ;;  %v3796_v63 = vld [vmem:[%s5369_s6 + $0x18] sm:$0xff]  ;;  %1923 = vmatpush.bf16.msrb.mxu2 %v3798_v0 }
 0x72a   :  { %v1742_v4 = vrot.slane %v1723_v2, 4  ;;  %v1719_v5 = vperm.slane %v1713_v40, %v4206_v1  ;;  %v1736_v7 = vrot.slane %v1731_v57, 4  ;;  %1887 = vmatpush.bf16.msrb.mxu1 %v3796_v63  ;;  %v3799_v40 = vld [vmem:[%s5371_s10 + $0x10] sm:$0xff] }
 0x72b   :  { %v1741_v12 = vsel %vm332_vm12, %v1740_v3, %v1723_v2  ;;  %v3800_v2 = vld [vmem:[%s5371_s10 + $0x18] sm:$0xff]  ;;  %v3797_v3 = vld [vmem:[%s5370_s8 + $0x10] sm:$0xff] }
 0x72c   :  { %v3836_v14 = vpack.i.bf16 %v1741_v12, %v4556_v30  ;;  %v1743_v17 = vsel %vm332_vm12, %v1735_v8, %v1742_v4  ;;  %v1738_v18 = vrot.slane %v1719_v5, 4  ;;  %v1737_v19 = vsel %vm332_vm12, %v1736_v7, %v1719_v5  ;;  %v3794_v30 = vld [vmem:[%s5377_s12 + $0x8] sm:$0xff]  ;;  %1959 = vmatpush.bf16.msrb.mxu3 %v3800_v2 }
 0x72d   :  { %v3841_v20 = vpack.i.bf16 %v1743_v17, %v4559_v31  ;;  %1789 = vmatpush.bf16.msrb.mxu0 %v3794_v30  ;;  %v3793_v31 = vld [vmem:[%s5377_s12] sm:$0xff]  ;;  %1924 = vmatpush.bf16.msrb.mxu2 %v3797_v3 }
 0x72e   :  { %3837 = vrot.lane.b32.xlu2 %v3836_v14, %s4004_s23  ;;  %v1739_v21 = vsel %vm332_vm12, %v1731_v57, %v1738_v18  ;;  %v3795_v57 = vld [vmem:[%s5369_s6 + $0x10] sm:$0xff] }
 0x72f   :  { %3842 = vrot.lane.b32.xlu1 %v3841_v20, %s4005_s5  ;;  %v3831_v22 = vpack.i.bf16 %v1739_v21, %v4563_v38  ;;  %1888 = vmatpush.bf16.msrb.mxu1 %v3795_v57 }
 0x730   :  { %1960 = vmatpush.bf16.msrb.mxu3 %v3799_v40 }
 0x731   :  { %3832 = vrot.lane.b32.xlu0 %v3831_v22, %s4006_s26  ;;  %1790 = vmatpush.bf16.msrb.mxu0 %v3793_v31 }
 0x788   :  { %v3838_v23 = vpop.permute.xlu2 %3837 }
 0x789   :  { %v3840_v38 = vunpack.i.h.bf16 %v3838_v23  ;;  %v3839_v11 = vunpack.i.l.bf16 %v3838_v23 }
 0x7a1   :  { %v3843_v25 = vpop.permute.xlu1 %3842 }
 0x7a2   :  { %v3845_v55 = vunpack.i.h.bf16 %v3843_v25  ;;  %v3844_v27 = vunpack.i.l.bf16 %v3843_v25 }
 0x7a3   :  { %v3833_v6 = vpop.permute.xlu0 %3832 }
 0x7a4   :  { %v3835_v15 = vunpack.i.h.bf16 %v3833_v6  ;;  %v3834_v26 = vunpack.i.l.bf16 %v3833_v6  ;;  %v3883_v6 = vld [vmem:[%s5378_s14] ss:$0 sm:$0xff] }
 0x7a6   :  { %v1037_v28 = vsel %vm690_vm13, %v4566_v39, %v3834_v26  ;;  %v1756_v32 = vsel %vm690_vm13, %v1737_v19, %v3835_v15 }
 0x7a7   :  { %v1039_v33 = vsel %vm1038_vm15, %v1037_v28, %v3839_v11  ;;  %v1757_v13 = vsel %vm1038_vm15, %v1756_v32, %v3840_v38  ;;  %v3884_v11 = vld [vmem:[%s5379_s15] ss:$0 sm:$0xff] }
 0x7a8   :  { %v1041_v36 = vsel %vm1040_vm1, %v1039_v33, %v3844_v27  ;;  %v1758_v41 = vsel %vm1040_vm1, %v1757_v13, %v3845_v55 }
 0x7a9   :  { %v1759_v43 = vpack.c.bf16 %v1758_v41, %v1041_v36  ;;  %v4769_v36 = vld [vmem:[%s5372_s9 + $0x1] ss:$0 sm:$0xff] }
 0x7ab   :  { %3693 = vmatmul.msk.bf16.vlgmr.msrb.gmra.mxu0 %vm65_vm0, %v1759_v43 }
 0x828   :  { %v1792_v45 = vpop.f32.mrf.mxu0 }
 0x829   :  { %v1793_v47 = vadd.f32 %v3882_v59, %v1792_v45 }
 0x82b   :  { %v1797_v39 = vadd.f32 %v1793_v47, %v4172_v34 }
 0x82d   :  { %v1799_v44 = vsel %vm65_vm0, %v1797_v39, 0.0 }
 0x82e   :  { %1800 = vadd.xlane.f32.xlu0 %v1799_v44 }
 0x830   :  { %v1794_v48 = vpop.f32.mrf.mxu0 }
 0x831   :  { %v1795_v46 = vadd.f32 %v3882_v59, %v1794_v48  ;;  %v4778_v59 = vld [vmem:[%s5368_s7 + $0x1] ss:$0 sm:$0xff] }
 0x833   :  { %v1798_v51 = vadd.f32 %v1795_v46, %v4174_v35 }
 0x835   :  { %v1802_v52 = vsel %vm65_vm0, %v1798_v51, 0.0 }
 0x836   :  { %1803 = vadd.xlane.f32.xlu2 %v1802_v52 }
 0x8a1   :  { %v1801_v16 = vpop.xlane.xlu0 %1800 }
 0x8a2   :  { %v1805_v54 = vmul.f32 %v1801_v16, %v4122_v10 }
 0x8a4   :  { %v1807_v37 = vsub.f32 %v1797_v39, %v1805_v54 }
 0x8a6   :  { %v1809_v58 = vmul.f32 %v1807_v37, %v1807_v37 }
 0x8a8   :  { %v1811_v24 = vsel %vm65_vm0, %v1809_v58, 0.0 }
 0x8a9   :  { %v1804_v60 = vpop.xlane.xlu2 %1803  ;;  %1812 = vadd.xlane.f32.xlu1 %v1811_v24 }
 0x8aa   :  { %v1806_v34 = vmul.f32 %v1804_v60, %v4122_v10 }
 0x8ac   :  { %v1808_v56 = vsub.f32 %v1798_v51, %v1806_v34 }
 0x8ae   :  { %v1810_v61 = vmul.f32 %v1808_v56, %v1808_v56 }
 0x8b0   :  { %v1814_v42 = vsel %vm65_vm0, %v1810_v61, 0.0 }
 0x8b1   :  { %1815 = vadd.xlane.f32.xlu0 %v1814_v42 }
 0x91c   :  { %v1813_v35 = vpop.xlane.xlu1 %1812 }
 0x91d   :  { %v1817_v62 = vmul.f32 %v1813_v35, %v4122_v10 }
 0x91f   :  { %v1819_v8 = vadd.f32 1e-12, %v1817_v62 }
 0x921   :  { %3942 = vrsqrt.f32 %v1819_v8  ;;  %vm1827_vm3 = vweird.f32 %v1819_v8 }
 0x924   :  { %v1816_v4 = vpop.xlane.xlu0 %1815 }
 0x925   :  { %v1818_v5 = vmul.f32 %v1816_v4, %v4122_v10 }
 0x927   :  { %v3943_v7 = vpop.eup %3942  ;;  %v1820_v12 = vadd.f32 1e-12, %v1818_v5 }
 0x928   :  { %v1822_v14 = vmul.f32 %v3943_v7, %v1819_v8  ;;  %vm1828_vm2 = vweird.f32 %v3943_v7 }
 0x929   :  { %3944 = vrsqrt.f32 %v1820_v12  ;;  %vm1829_vm4 = vmor %vm1827_vm3, %vm1828_vm2  ;;  %vm1837_vm6 = vweird.f32 %v1820_v12 }
 0x92a   :  { %v1823_v17 = vmul.f32 %v3943_v7, %v1822_v14 }
 0x92c   :  { %v1824_v18 = vmul.f32 0.5, %v1823_v17 }
 0x92e   :  { %v1825_v19 = vsub.f32 1.5, %v1824_v18 }
 0x92f   :  { %v3945_v20 = vpop.eup %3944 }
 0x930   :  { %v1826_v21 = vmul.f32 %v3943_v7, %v1825_v19  ;;  %v1832_v22 = vmul.f32 %v3945_v20, %v1820_v12  ;;  %vm1838_vm5 = vweird.f32 %v3945_v20 }
 0x931   :  { %vm1839_vm7 = vmor %vm1837_vm6, %vm1838_vm5 }
 0x932   :  { %v1833_v30 = vmul.f32 %v3945_v20, %v1832_v22  ;;  %v1830_v31 = vsel %vm1829_vm4, %v3943_v7, %v1826_v21 }
 0x933   :  { %v1841_v15 = vmul.f32 %v1830_v31, %v1807_v37 }
 0x934   :  { %v1834_v23 = vmul.f32 0.5, %v1833_v30 }
 0x935   :  { %v1847_v55 = vmul.f32 %v3883_v6, %v1841_v15 }
 0x936   :  { %v1835_v25 = vsub.f32 1.5, %v1834_v23 }
 0x937   :  { %v4757_v32 = vadd.f32 %v3884_v11, %v1847_v55 }
 0x938   :  { %v1836_v26 = vmul.f32 %v3945_v20, %v1835_v25 }
 0x93a   :  { %v1840_v38 = vsel %vm1839_vm7, %v3945_v20, %v1836_v26 }
 0x93b   :  { %v1842_v27 = vmul.f32 %v1840_v38, %v1808_v56 }
 0x93d   :  { %v1848_v28 = vmul.f32 %v3883_v6, %v1842_v27 }
 0x93f   :  { %v4759_v33 = vadd.f32 %v3884_v11, %v1848_v28 }
 0x941   :  { %v1855_v13 = vpack.c.bf16 %v4759_v33, %v4757_v32 }
 0x943   :  { %3707 = vmatmul.msk.bf16.vlgmr.msrb.gmra.mxu1 %vm65_vm0, %v1855_v13  ;;  %3721 = vmatmul.msk.bf16.vlgmr.msrb.gmra.mxu2 %vm65_vm0, %v1855_v13 }
 0x944   :  { %3735 = vmatmul.msk.bf16.vlgmr.msrb.gmra.mxu3 %vm65_vm0, %v1855_v13 }
 0x9c0   :  { %v1890_v45 = vpop.f32.mrf.mxu1 }
 0x9c1   :  { %v1891_v47 = vadd.f32 %v4778_v59, %v1890_v45 }
 0x9c3   :  { %v1979_v8 = vrot.slane %v1891_v47, 4 }
 0x9c6   :  { %v1926_v41 = vpop.f32.mrf.mxu2 }
 0x9c7   :  { %v1927_v43 = vadd.f32 %v4769_v36, %v1926_v41 }
 0x9c9   :  { %2094 = vrot.lane.b32.xlu1 %v1927_v43, %s3999_s24  ;;  %2091 = vrot.lane.b32.xlu0 %v1927_v43, %s4000_s3  ;;  %v2099_v48 = vrot.slane %v1927_v43, 4 }
 0x9ca   :  { %2088 = vrot.lane.b32.xlu2 %v1927_v43, %s4001_s25 }
 0x9d1   :  { %1968 = vrot.lane.b32.xlu0 %v1891_v47, %s4001_s25 }
 0x9d2   :  { %1971 = vrot.lane.b32.xlu2 %v1891_v47, %s4000_s3 }
 0x9d9   :  { %1974 = vrot.lane.b32.xlu0 %v1891_v47, %s3999_s24 }
 0xa24   :  { %v2089_v39 = vpop.permute.xlu2 %2088 }
 0xa25   :  { %v2111_v44 = vrot.slane %v2089_v39, 4 }
 0xa2c   :  { %v1972_v56 = vpop.permute.xlu2 %1971 }
 0xa2d   :  { %v1977_v3 = vrot.slane %v1972_v56, 4  ;;  %v1980_v5 = vsel %vm332_vm12, %v1972_v56, %v1979_v8 }
 0xa2e   :  { %v1988_v23 = vperm.slane %v1980_v5, %v4199_v53 }
 0xa2f   :  { %v1978_v21 = vsel %vm332_vm12, %v1977_v3, %v1891_v47 }
 0xa30   :  { %v1984_v55 = vperm.slane %v1978_v21, %v4199_v53 }
 0xa3b   :  { %v2095_v46 = vpop.permute.xlu1 %2094  ;;  %v2092_v51 = vpop.permute.xlu0 %2091 }
 0xa3c   :  { %v2109_v52 = vrot.slane %v2095_v46, 4  ;;  %v2112_v16 = vsel %vm332_vm12, %v2095_v46, %v2111_v44  ;;  %v2097_v54 = vrot.slane %v2092_v51, 4  ;;  %v2100_v37 = vsel %vm332_vm12, %v2092_v51, %v2099_v48 }
 0xa3d   :  { %v2120_v58 = vperm.slane %v2112_v16, %v4199_v53  ;;  %v2108_v24 = vperm.slane %v2100_v37, %v4199_v53  ;;  %v2015_v37 = vrot.slane %v1988_v23, 4 }
 0xa3e   :  { %v2110_v60 = vsel %vm332_vm12, %v2109_v52, %v2089_v39  ;;  %v2098_v34 = vsel %vm332_vm12, %v2097_v54, %v1927_v43  ;;  %v2003_v54 = vrot.slane %v1984_v55, 4 }
 0xa3f   :  { %v2116_v61 = vperm.slane %v2110_v60, %v4199_v53  ;;  %v2133_v42 = vrot.slane %v2120_v58, 4  ;;  %v2104_v35 = vperm.slane %v2098_v34, %v4199_v53  ;;  %v2135_v62 = vrot.slane %v2108_v24, 4 }
 0xa41   :  { %v2121_v63 = vrot.slane %v2116_v61, 4  ;;  %v2123_v0 = vrot.slane %v2104_v35, 4  ;;  %v2134_v2 = vsel %vm332_vm12, %v2133_v42, %v2108_v24  ;;  %v2136_v57 = vsel %vm332_vm12, %v2120_v58, %v2135_v62 }
 0xa42   :  { %v2140_v40 = vperm.slane %v2134_v2, %v4206_v1  ;;  %v2144_v4 = vperm.slane %v2136_v57, %v4206_v1 }
 0xa43   :  { %v2122_v7 = vsel %vm332_vm12, %v2121_v63, %v2104_v35  ;;  %v2124_v12 = vsel %vm332_vm12, %v2116_v61, %v2123_v0  ;;  %v1969_v14 = vpop.permute.xlu0 %1968 }
 0xa44   :  { %v2128_v17 = vperm.slane %v2122_v7, %v4206_v1  ;;  %v2132_v18 = vperm.slane %v2124_v12, %v4206_v1  ;;  %v2149_v19 = vrot.slane %v2140_v40, 4  ;;  %v2151_v20 = vrot.slane %v2144_v4, 4 }
 0xa45   :  { %v1991_v47 = vrot.slane %v1969_v14, 4 }
 0xa46   :  { %v2145_v22 = vrot.slane %v2128_v17, 4  ;;  %v2147_v30 = vrot.slane %v2132_v18, 4  ;;  %v2152_v31 = vsel %vm332_vm12, 0.0, %v2151_v20  ;;  %v2164_v25 = vsel %vm332_vm12, %v2151_v20, %v2140_v40 }
 0xa47   :  { %v2169_v6 = vrot.slane %v2152_v31, 4  ;;  %v2150_v26 = vsel %vm332_vm12, 0.0, %v2149_v19  ;;  %v2168_v11 = vperm.slane %v2164_v25, %v4199_v53 }
 0xa48   :  { %v2148_v15 = vsel %vm332_vm12, 0.0, %v2147_v30  ;;  %v2153_v38 = vsel %vm332_vm12, %v2147_v30, %v2128_v17  ;;  %v2146_v41 = vsel %vm332_vm12, 0.0, %v2145_v22 }
 0xa49   :  { %v2158_v27 = vrot.slane %v2148_v15, 4  ;;  %v2170_v28 = vsel %vm332_vm12, %v2169_v6, %v2150_v26  ;;  %v2157_v13 = vperm.slane %v2153_v38, %v4199_v53  ;;  %v2189_v45 = vrot.slane %v2168_v11, 4 }
 0xa4a   :  { %v2174_v43 = vperm.slane %v2170_v28, %v4199_v53 }
 0xa4b   :  { %v1975_v39 = vpop.permute.xlu0 %1974  ;;  %v2159_v44 = vsel %vm332_vm12, %v2158_v27, %v2146_v41  ;;  %v2177_v48 = vrot.slane %v2157_v13, 4 }
 0xa4c   :  { %v2187_v46 = vrot.slane %v2174_v43, 4  ;;  %v1989_v51 = vrot.slane %v1975_v39, 4  ;;  %v1992_v52 = vsel %vm332_vm12, %v1975_v39, %v1991_v47  ;;  %v2163_v16 = vperm.slane %v2159_v44, %v4199_v53 }
 0xa4d   :  { %v2000_v58 = vperm.slane %v1992_v52, %v4199_v53  ;;  %v2190_v24 = vsel %vm332_vm12, %v2174_v43, %v2189_v45 }
 0xa4e   :  { %v1990_v60 = vsel %vm332_vm12, %v1989_v51, %v1969_v14  ;;  %v2178_v34 = vsel %vm332_vm12, %v2163_v16, %v2177_v48  ;;  %v2198_v56 = vperm.slane %v2190_v24, %v4206_v1  ;;  %v2175_v61 = vrot.slane %v2163_v16, 4 }
 0xa4f   :  { %v1996_v42 = vperm.slane %v1990_v60, %v4199_v53  ;;  %v2013_v35 = vrot.slane %v2000_v58, 4  ;;  %v2016_v62 = vsel %vm332_vm12, %v2000_v58, %v2015_v37  ;;  %v2186_v8 = vperm.slane %v2178_v34, %v4206_v1 }
 0xa50   :  { %v2024_v63 = vperm.slane %v2016_v62, %v4206_v1  ;;  %v2203_v0 = vrot.slane %v2198_v56, 4  ;;  %v2176_v2 = vsel %vm332_vm12, %v2175_v61, %v2157_v13  ;;  %v2188_v57 = vsel %vm332_vm12, %v2187_v46, %v2168_v11 }
 0xa51   :  { %v2001_v3 = vrot.slane %v1996_v42, 4  ;;  %v2004_v40 = vsel %vm332_vm12, %v1996_v42, %v2003_v54  ;;  %v2014_v4 = vsel %vm332_vm12, %v2013_v35, %v1988_v23  ;;  %v2182_v5 = vperm.slane %v2176_v2, %v4206_v1 }
 0xa52   :  { %v2012_v7 = vperm.slane %v2004_v40, %v4206_v1  ;;  %v2020_v12 = vperm.slane %v2014_v4, %v4206_v1  ;;  %v2031_v14 = vrot.slane %v2024_v63, 4  ;;  %v2204_v17 = vsel %vm332_vm12, %v2203_v0, %v2186_v8 }
 0xa53   :  { %v2002_v18 = vsel %vm332_vm12, %v2001_v3, %v1984_v55  ;;  %v2333_v19 = vpack.c.bf16 %v2204_v17, %v2204_v17  ;;  %v2194_v20 = vperm.slane %v2188_v57, %v4206_v1  ;;  %v2205_v21 = vrot.slane %v2186_v8, 4 }
 0xa54   :  { %v2008_v22 = vperm.slane %v2002_v18, %v4206_v1  ;;  %v2027_v30 = vrot.slane %v2012_v7, 4  ;;  %v2029_v31 = vrot.slane %v2020_v12, 4  ;;  %v2032_v23 = vsel %vm332_vm12, 0.0, %v2031_v14 }
 0xa55   :  { %v2044_v25 = vsel %vm332_vm12, %v2031_v14, %v2020_v12  ;;  %v2049_v6 = vrot.slane %v2032_v23, 4  ;;  %v2377_v15 = vsel %vm690_vm13, %v2333_v19, 0  ;;  %v2199_v26 = vrot.slane %v2194_v20, 4  ;;  %v1928_v23 = vpop.f32.mrf.mxu2 }
 0xa56   :  { %v2025_v38 = vrot.slane %v2008_v22, 4  ;;  %v2028_v11 = vsel %vm332_vm12, 0.0, %v2027_v30  ;;  %v2030_v55 = vsel %vm332_vm12, 0.0, %v2029_v31  ;;  %v2033_v27 = vsel %vm332_vm12, %v2027_v30, %v2008_v22  ;;  %2386 = vmatpush.bf16.xpose.msra.mxu2 %v2377_v15  ;;  %v1962_v30 = vpop.f32.mrf.mxu3  ;;  %v1892_v31 = vpop.f32.mrf.mxu1 }
 0xa57   :  { %v2037_v28 = vperm.slane %v2033_v27, %v4199_v53  ;;  %v2038_v13 = vrot.slane %v2028_v11, 4  ;;  %v2048_v41 = vperm.slane %v2044_v25, %v4199_v53  ;;  %v2050_v43 = vsel %vm332_vm12, %v2049_v6, %v2030_v55 }
 0xa58   :  { %v2026_v45 = vsel %vm332_vm12, 0.0, %v2025_v38  ;;  %v2054_v47 = vperm.slane %v2050_v43, %v4199_v53  ;;  %v2200_v39 = vsel %vm332_vm12, %v2199_v26, %v2182_v5  ;;  %v2206_v44 = vsel %vm332_vm12, %v2198_v56, %v2205_v21 }
 0xa59   :  { %v2039_v48 = vsel %vm332_vm12, %v2038_v13, %v2026_v45  ;;  %v2057_v46 = vrot.slane %v2037_v28, 4  ;;  %v2069_v51 = vrot.slane %v2048_v41, 4  ;;  %v2331_v52 = vpack.c.bf16 %v2200_v39, %v2200_v39 }
 0xa5a   :  { %v2043_v16 = vperm.slane %v2039_v48, %v4199_v53  ;;  %v2067_v54 = vrot.slane %v2054_v47, 4  ;;  %v2334_v37 = vpack.c.bf16 %v2206_v44, %v2206_v44  ;;  %v2201_v58 = vrot.slane %v2182_v5, 4 }
 0xa5b   :  { %v2339_v24 = vsel %vm690_vm13, %v2331_v52, 0  ;;  %v2070_v60 = vsel %vm332_vm12, %v2054_v47, %v2069_v51 }
 0xa5c   :  { %v2068_v34 = vsel %vm332_vm12, %v2067_v54, %v2048_v41  ;;  %2348 = vmatpush.bf16.xpose.msra.mxu0 %v2339_v24  ;;  %v2396_v61 = vsel %vm690_vm13, %v2334_v37, 0  ;;  %v2202_v56 = vsel %vm332_vm12, %v2194_v20, %v2201_v58  ;;  %v2058_v42 = vsel %vm332_vm12, %v2043_v16, %v2057_v46  ;;  %v4885_v54 = vld [vmem:[%s5373_s11 + $0x1] ss:$0 sm:$0xff] }
 0xa5d   :  { %2405 = vmatpush.bf16.xpose.msra.mxu3 %v2396_v61  ;;  %v2332_v35 = vpack.c.bf16 %v2202_v56, %v2202_v56  ;;  %v2066_v62 = vperm.slane %v2058_v42, %v4206_v1  ;;  %v2078_v8 = vperm.slane %v2070_v60, %v4206_v1  ;;  %v2055_v63 = vrot.slane %v2043_v16, 4 }
 0xa5e   :  { %v2074_v0 = vperm.slane %v2068_v34, %v4206_v1  ;;  %v4872_v25 = vpop.f32.mrf.mxu3  ;;  %v4888_v37 = vadd.f32 %v4769_v36, %v1928_v23  ;;  %v1963_v58 = vadd.f32 %v4885_v54, %v1962_v30 }
 0xa5f   :  { %v2358_v2 = vsel %vm690_vm13, %v2332_v35, 0  ;;  %v2083_v57 = vrot.slane %v2078_v8, 4  ;;  %v2056_v3 = vsel %vm332_vm12, %v2055_v63, %v2037_v28  ;;  %v2085_v40 = vrot.slane %v2066_v62, 4 }
 0xa60   :  { %2367 = vmatpush.bf16.xpose.msra.mxu1 %v2358_v2  ;;  %v2062_v4 = vperm.slane %v2056_v3, %v4206_v1  ;;  %v2079_v5 = vrot.slane %v2074_v0, 4  ;;  %v3856_v24 = vpack.i.bf16 %v4888_v37, %v1963_v58 }
 0xa61   :  { %v2084_v7 = vsel %vm332_vm12, %v2083_v57, %v2066_v62  ;;  %v2086_v12 = vsel %vm332_vm12, %v2078_v8, %v2085_v40 }
 0xa62   :  { %v2329_v14 = vpack.c.bf16 %v2084_v7, %v2084_v7  ;;  %v2080_v17 = vsel %vm332_vm12, %v2079_v5, %v2062_v4  ;;  %v2330_v18 = vpack.c.bf16 %v2086_v12, %v2086_v12  ;;  %v2081_v19 = vrot.slane %v2062_v4, 4 }
 0xa63   :  { %v2327_v20 = vpack.c.bf16 %v2080_v17, %v2080_v17 }
 0xa64   :  { %3738 = vmatmul.msk.bf16.vlgmr.msra.gmra.mxu2 %vm690_vm13, %v2329_v14  ;;  %3739 = vmatmul.msk.bf16.vlgmr.msra.gmra.mxu3 %vm690_vm13, %v2330_v18  ;;  %v2082_v21 = vsel %vm332_vm12, %v2074_v0, %v2081_v19 }
 0xa65   :  { %3736 = vmatmul.msk.bf16.vlgmr.msra.gmra.mxu0 %vm690_vm13, %v2327_v20  ;;  %v2328_v22 = vpack.c.bf16 %v2082_v21, %v2082_v21  ;;  %v2219_v20 = vrot.slane %v1963_v58, 4 }
 0xa67   :  { %3737 = vmatmul.msk.bf16.vlgmr.msra.gmra.mxu1 %vm690_vm13, %v2328_v22 }
 0xae2   :  { %v2350_v6 = vpop.f32.mrf.mxu0 }
 0xae3   :  { %v2411_v15 = vmul.f32 0.35355338, %v2350_v6 }
 0xae4   :  { %v2369_v26 = vpop.f32.mrf.mxu1 }
 0xae5   :  { %v2412_v38 = vmul.f32 0.35355338, %v2369_v26  ;;  %v2415_v11 = vadd.f32 %v2411_v15, %v4296_v29 }
 0xae7   :  { %v2388_v55 = vpop.f32.mrf.mxu2  ;;  %v2407_v27 = vpop.f32.mrf.mxu3  ;;  %v2419_v28 = vsel %vm690_vm13, %v2415_v11, -inf  ;;  %v2416_v13 = vadd.f32 %v2412_v38, %v4296_v29 }
 0xae8   :  { %v2414_v41 = vmul.f32 0.35355338, %v2407_v27  ;;  %2420 = vmax.xlane.f32.xlu0 %v2419_v28  ;;  %v2413_v43 = vmul.f32 0.35355338, %v2388_v55  ;;  %v2813_v28 = vrot.slane %v4888_v37, 4 }
 0xae9   :  { %v2422_v45 = vsel %vm690_vm13, %v2416_v13, -inf }
 0xaea   :  { %2423 = vmax.xlane.f32.xlu2 %v2422_v45  ;;  %v2352_v47 = vpop.f32.mrf.mxu0  ;;  %v2418_v39 = vadd.f32 %v2414_v41, %v4296_v29  ;;  %v2417_v46 = vadd.f32 %v2413_v43, %v4296_v29  ;;  %v4896_v29 = vadd.f32 %v4778_v59, %v1892_v31 }
 0xaec   :  { %v2371_v44 = vpop.f32.mrf.mxu1  ;;  %v2428_v48 = vsel %vm690_vm13, %v2418_v39, -inf  ;;  %v2425_v16 = vsel %vm690_vm13, %v2417_v46, -inf }
 0xaed   :  { %2429 = vmax.xlane.f32.xlu1 %v2428_v48 }
 0xaef   :  { %v2390_v51 = vpop.f32.mrf.mxu2  ;;  %v2409_v52 = vpop.f32.mrf.mxu3 }
 0xaf2   :  { %2426 = vmax.xlane.f32.xlu2 %v2425_v16  ;;  %v4935_v16 = vadd.f32 %v4885_v54, %v4872_v25 }
 0xafc   :  { %3857 = vrot.lane.b32.xlu0 %v3856_v24, %s3999_s24 }
 0xb06   :  { %3847 = vrot.lane.b32.xlu1 %v3856_v24, %s4001_s25 }
 0xb0a   :  { %3852 = vrot.lane.b32.xlu2 %v3856_v24, %s4000_s3 }
 0xb12   :  { %2682 = vrot.lane.b32.xlu2 %v4896_v29, %s4001_s25 }
 0xb1a   :  { %2685 = vrot.lane.b32.xlu2 %v4896_v29, %s4000_s3 }
 0xb22   :  { %2688 = vrot.lane.b32.xlu2 %v4896_v29, %s3999_s24 }
 0xb5b   :  { %v2421_v36 = vpop.xlane.xlu0 %2420 }
 0xb5c   :  { %v2431_v60 = vsub.f32 %v2415_v11, %v2421_v36 }
 0xb5d   :  { %v2424_v34 = vpop.xlane.xlu2 %2423 }
 0xb5e   :  { %v2435_v61 = vmul.f32 1.442695, %v2431_v60  ;;  %v2432_v2 = vsub.f32 %v2416_v13, %v2424_v34 }
 0xb60   :  { %3946 = vpow2.f32 %v2435_v61  ;;  %v2430_v56 = vpop.xlane.xlu1 %2429  ;;  %v2437_v40 = vmul.f32 1.442695, %v2432_v2 }
 0xb61   :  { %v2434_v42 = vsub.f32 %v2418_v39, %v2430_v56 }
 0xb63   :  { %v2441_v35 = vmul.f32 1.442695, %v2434_v42 }
 0xb65   :  { %3948 = vpow2.f32 %v2441_v35  ;;  %v2427_v59 = vpop.xlane.xlu2 %2426 }
 0xb66   :  { %v4904_v62 = vpop.eup %3946  ;;  %v2433_v8 = vsub.f32 %v2417_v46, %v2427_v59 }
 0xb67   :  { %v2443_v63 = vsel %vm690_vm13, %v4904_v62, 0.0 }
 0xb68   :  { %v2439_v0 = vmul.f32 1.442695, %v2433_v8  ;;  %2444 = vadd.xlane.f32.xlu2 %v2443_v63 }
 0xb6a   :  { %3950 = vpow2.f32 %v2439_v0 }
 0xb6b   :  { %v4908_v57 = vpop.eup %3948  ;;  %3952 = vpow2.f32 %v2437_v40 }
 0xb6c   :  { %v2452_v3 = vsel %vm690_vm13, %v4908_v57, 0.0 }
 0xb6d   :  { %v3853_v4 = vpop.permute.xlu2 %3852  ;;  %2453 = vadd.xlane.f32.xlu0 %v2452_v3 }
 0xb6e   :  { %v3854_v5 = vunpack.i.l.bf16 %v3853_v4  ;;  %v3855_v7 = vunpack.i.h.bf16 %v3853_v4  ;;  %v3858_v17 = vpop.permute.xlu0 %3857 }
 0xb6f   :  { %v3860_v22 = vunpack.i.h.bf16 %v3858_v17  ;;  %v3859_v30 = vunpack.i.l.bf16 %v3858_v17 }
 0xb70   :  { %v4912_v12 = vpop.eup %3950  ;;  %v2217_v14 = vrot.slane %v3854_v5, 4  ;;  %v2811_v19 = vrot.slane %v3855_v7, 4  ;;  %v2220_v6 = vsel %vm332_vm12, %v3854_v5, %v2219_v20  ;;  %v2814_v48 = vsel %vm332_vm12, %v3855_v7, %v2813_v28 }
 0xb71   :  { %v2449_v18 = vsel %vm690_vm13, %v4912_v12, 0.0  ;;  %v4917_v31 = vpop.eup %3952  ;;  %v2823_v38 = vrot.slane %v3860_v22, 4  ;;  %v2229_v11 = vrot.slane %v3859_v30, 4  ;;  %v2228_v41 = vperm.slane %v2220_v6, %v4199_v53 }
 0xb72   :  { %2450 = vadd.xlane.f32.xlu1 %v2449_v18  ;;  %v2218_v21 = vsel %vm332_vm12, %v2217_v14, %v1963_v58  ;;  %v2812_v23 = vsel %vm332_vm12, %v2811_v19, %v4888_v37  ;;  %v2446_v43 = vsel %vm690_vm13, %v4917_v31, 0.0  ;;  %v2822_v61 = vperm.slane %v2814_v48, %v4199_v53 }
 0xb73   :  { %v2224_v15 = vperm.slane %v2218_v21, %v4199_v53  ;;  %v2818_v13 = vperm.slane %v2812_v23, %v4199_v53  ;;  %v2255_v24 = vrot.slane %v2228_v41, 4 }
 0xb74   :  { %v2849_v7 = vrot.slane %v2822_v61, 4 }
 0xb75   :  { %v2243_v46 = vrot.slane %v2224_v15, 4  ;;  %v2837_v56 = vrot.slane %v2818_v13, 4 }
 0xb78   :  { %v3848_v26 = vpop.permute.xlu1 %3847 }
 0xb79   :  { %v3850_v55 = vunpack.i.h.bf16 %v3848_v26  ;;  %v3849_v27 = vunpack.i.l.bf16 %v3848_v26 }
 0xb7a   :  { %2447 = vadd.xlane.f32.xlu1 %v2446_v43 }
 0xb7b   :  { %v2825_v45 = vrot.slane %v3850_v55, 4  ;;  %v2230_v47 = vsel %vm332_vm12, %v2229_v11, %v3849_v27  ;;  %v2231_v39 = vrot.slane %v3849_v27, 4  ;;  %v2824_v44 = vsel %vm332_vm12, %v2823_v38, %v3850_v55 }
 0xb7c   :  { %v2236_v51 = vperm.slane %v2230_v47, %v4199_v53  ;;  %v2830_v52 = vperm.slane %v2824_v44, %v4199_v53 }
 0xb7d   :  { %v2232_v37 = vsel %vm332_vm12, %v3859_v30, %v2231_v39  ;;  %v2826_v58 = vsel %vm332_vm12, %v3860_v22, %v2825_v45 }
 0xb7e   :  { %v2240_v36 = vperm.slane %v2232_v37, %v4199_v53  ;;  %v2241_v60 = vrot.slane %v2236_v51, 4  ;;  %v2244_v34 = vsel %vm332_vm12, %v2236_v51, %v2243_v46  ;;  %v2834_v35 = vperm.slane %v2826_v58, %v4199_v53 }
 0xb7f   :  { %v2252_v42 = vperm.slane %v2244_v34, %v4206_v1  ;;  %v2835_v8 = vrot.slane %v2830_v52, 4  ;;  %v2838_v3 = vsel %vm332_vm12, %v2830_v52, %v2837_v56 }
 0xb80   :  { %v2242_v25 = vsel %vm332_vm12, %v2241_v60, %v2224_v15  ;;  %v2253_v54 = vrot.slane %v2240_v36, 4  ;;  %v2256_v59 = vsel %vm332_vm12, %v2240_v36, %v2255_v24  ;;  %2928 = vrot.lane.b32.xlu2 %v4935_v16, %s3999_s24  ;;  %v2846_v14 = vperm.slane %v2838_v3, %v4206_v1 }
 0xb81   :  { %v2248_v63 = vperm.slane %v2242_v25, %v4206_v1  ;;  %v2264_v0 = vperm.slane %v2256_v59, %v4206_v1  ;;  %v2267_v2 = vrot.slane %v2252_v42, 4  ;;  %v2836_v19 = vsel %vm332_vm12, %v2835_v8, %v2818_v13 }
 0xb82   :  { %v2254_v40 = vsel %vm332_vm12, %v2253_v54, %v2228_v41  ;;  %v2847_v20 = vrot.slane %v2834_v35, 4  ;;  %v2850_v21 = vsel %vm332_vm12, %v2834_v35, %v2849_v7  ;;  %v2842_v15 = vperm.slane %v2836_v19, %v4206_v1 }
 0xb83   :  { %v2260_v4 = vperm.slane %v2254_v40, %v4206_v1  ;;  %v2271_v5 = vrot.slane %v2264_v0, 4  ;;  %v2265_v17 = vrot.slane %v2248_v63, 4  ;;  %v2268_v18 = vsel %vm332_vm12, 0.0, %v2267_v2 }
 0xb84   :  { %v2273_v23 = vsel %vm332_vm12, %v2267_v2, %v2248_v63  ;;  %v2278_v6 = vrot.slane %v2268_v18, 4  ;;  %v2848_v38 = vsel %vm332_vm12, %v2847_v20, %v2822_v61  ;;  %v2858_v11 = vperm.slane %v2850_v21, %v4206_v1 }
 0xb85   :  { %v2269_v22 = vrot.slane %v2260_v4, 4  ;;  %v2272_v30 = vsel %vm332_vm12, 0.0, %v2271_v5  ;;  %v2266_v26 = vsel %vm332_vm12, 0.0, %v2265_v17  ;;  %v2861_v55 = vrot.slane %v2846_v14, 4 }
 0xb86   :  { %v2289_v27 = vrot.slane %v2272_v30, 4  ;;  %v2277_v28 = vperm.slane %v2273_v23, %v4199_v53  ;;  %v2854_v41 = vperm.slane %v2848_v38, %v4206_v1  ;;  %v2859_v43 = vrot.slane %v2842_v15, 4 }
 0xb87   :  { %v2270_v13 = vsel %vm332_vm12, 0.0, %v2269_v22  ;;  %v2279_v45 = vsel %vm332_vm12, %v2278_v6, %v2266_v26  ;;  %v2284_v47 = vsel %vm332_vm12, %v2271_v5, %v2260_v4  ;;  %v2862_v39 = vsel %vm332_vm12, 0.0, %v2861_v55 }
 0xb88   :  { %v2865_v44 = vrot.slane %v2858_v11, 4  ;;  %v2283_v48 = vperm.slane %v2279_v45, %v4199_v53  ;;  %v2288_v46 = vperm.slane %v2284_v47, %v4199_v53  ;;  %v2290_v51 = vsel %vm332_vm12, %v2289_v27, %v2270_v13 }
 0xb89   :  { %v2297_v52 = vrot.slane %v2277_v28, 4  ;;  %v2860_v37 = vsel %vm332_vm12, 0.0, %v2859_v43  ;;  %v2863_v58 = vrot.slane %v2854_v41, 4  ;;  %v2872_v24 = vrot.slane %v2862_v39, 4 }
 0xb8a   :  { %v2866_v36 = vsel %vm332_vm12, 0.0, %v2865_v44  ;;  %v2867_v60 = vsel %vm332_vm12, %v2861_v55, %v2842_v15  ;;  %v2294_v34 = vperm.slane %v2290_v51, %v4199_v53  ;;  %v2309_v61 = vrot.slane %v2288_v46, 4 }
 0xb8b   :  { %v2298_v56 = vsel %vm332_vm12, %v2283_v48, %v2297_v52  ;;  %v2871_v42 = vperm.slane %v2867_v60, %v4199_v53  ;;  %v2883_v35 = vrot.slane %v2866_v36, 4  ;;  %v2873_v25 = vsel %vm332_vm12, %v2872_v24, %v2860_v37 }
 0xb8c   :  { %v2306_v54 = vperm.slane %v2298_v56, %v4206_v1  ;;  %v2310_v59 = vsel %vm332_vm12, %v2294_v34, %v2309_v61  ;;  %v2864_v8 = vsel %vm332_vm12, 0.0, %v2863_v58  ;;  %v2877_v2 = vperm.slane %v2873_v25, %v4199_v53 }
 0xb8d   :  { %v2318_v63 = vperm.slane %v2310_v59, %v4206_v1  ;;  %v2878_v3 = vsel %vm332_vm12, %v2865_v44, %v2854_v41  ;;  %v2884_v4 = vsel %vm332_vm12, %v2883_v35, %v2864_v8  ;;  %v2891_v5 = vrot.slane %v2871_v42, 4 }
 0xb8e   :  { %v2325_v0 = vrot.slane %v2306_v54, 4  ;;  %v2882_v40 = vperm.slane %v2878_v3, %v4199_v53  ;;  %v2295_v7 = vrot.slane %v2283_v48, 4  ;;  %v2888_v17 = vperm.slane %v2884_v4, %v4199_v53 }
 0xb8f   :  { %v2307_v18 = vrot.slane %v2294_v34, 4  ;;  %v2892_v20 = vsel %vm332_vm12, %v2877_v2, %v2891_v5  ;;  %v2323_v11 = vrot.slane %v2318_v63, 4  ;;  %v2889_v41 = vrot.slane %v2877_v2, 4  ;;  %v2683_v5 = vpop.permute.xlu2 %2682 }
 0xb90   :  { %v2326_v14 = vsel %vm332_vm12, %v2318_v63, %v2325_v0  ;;  %v2903_v21 = vrot.slane %v2882_v40, 4  ;;  %v2296_v22 = vsel %vm332_vm12, %v2295_v7, %v2277_v28  ;;  %v2900_v30 = vperm.slane %v2892_v20, %v4206_v1 }
 0xb91   :  { %v2479_v19 = vpack.c.bf16 %v2326_v14, %v2326_v14  ;;  %v2302_v23 = vperm.slane %v2296_v22, %v4206_v1  ;;  %v2308_v6 = vsel %vm332_vm12, %v2307_v18, %v2288_v46  ;;  %v2324_v28 = vsel %vm332_vm12, %v2323_v11, %v2306_v54 }
 0xb92   :  { %v2904_v26 = vsel %vm332_vm12, %v2888_v17, %v2903_v21  ;;  %v2314_v38 = vperm.slane %v2308_v6, %v4206_v1  ;;  %v2919_v27 = vrot.slane %v2900_v30, 4  ;;  %v2901_v43 = vrot.slane %v2888_v17, 4 }
 0xb93   :  { %v2541_v15 = vsel %vm841_vm14, %v2479_v19, 0  ;;  %v2912_v55 = vperm.slane %v2904_v26, %v4206_v1  ;;  %v2321_v13 = vrot.slane %v2302_v23, 4  ;;  %v2478_v44 = vpack.c.bf16 %v2324_v28, %v2324_v28 }
 0xb94   :  { %2550 = vmatpush.bf16.msrb.mxu3 %v2541_v15  ;;  %v2319_v45 = vrot.slane %v2314_v38, 4  ;;  %v2890_v48 = vsel %vm332_vm12, %v2889_v41, %v2871_v42  ;;  %v2902_v37 = vsel %vm332_vm12, %v2901_v43, %v2882_v40  ;;  %v2693_v14 = vrot.slane %v4896_v29, 4 }
 0xb95   :  { %v2920_v47 = vsel %vm332_vm12, %v2912_v55, %v2919_v27  ;;  %v2322_v39 = vsel %vm332_vm12, %v2314_v38, %v2321_v13  ;;  %v2896_v52 = vperm.slane %v2890_v48, %v4206_v1  ;;  %v2522_v58 = vsel %vm841_vm14, %v2478_v44, 0 }
 0xb96   :  { %v3048_v46 = vpack.c.bf16 %v2920_v47, %v2920_v47  ;;  %v2477_v51 = vpack.c.bf16 %v2322_v39, %v2322_v39  ;;  %v2908_v24 = vperm.slane %v2902_v37, %v4206_v1  ;;  %v2917_v36 = vrot.slane %v2912_v55, 4  ;;  %2531 = vmatpush.bf16.msrb.mxu2 %v2522_v58 }
 0xb97   :  { %v2320_v60 = vsel %vm332_vm12, %v2319_v45, %v2302_v23  ;;  %v2915_v56 = vrot.slane %v2896_v52, 4  ;;  %v2686_v7 = vpop.permute.xlu2 %2685  ;;  %v2705_v18 = vrot.slane %v2683_v5, 4 }
 0xb98   :  { %v3110_v34 = vsel %vm690_vm13, %v3048_v46, 0  ;;  %v2503_v61 = vsel %vm841_vm14, %v2477_v51, 0  ;;  %v2476_v42 = vpack.c.bf16 %v2320_v60, %v2320_v60  ;;  %v2918_v35 = vsel %vm332_vm12, %v2917_v36, %v2900_v30 }
 0xb99   :  { %3119 = vmatpush.bf16.xpose.msra.mxu3 %v3110_v34  ;;  %2512 = vmatpush.bf16.msrb.mxu1 %v2503_v61  ;;  %v2913_v25 = vrot.slane %v2908_v24, 4  ;;  %v2916_v54 = vsel %vm332_vm12, %v2908_v24, %v2915_v56  ;;  %v3047_v59 = vpack.c.bf16 %v2918_v35, %v2918_v35  ;;  %v2691_v19 = vrot.slane %v2686_v7, 4 }
 0xb9a   :  { %v2484_v8 = vsel %vm841_vm14, %v2476_v42, 0  ;;  %v3046_v63 = vpack.c.bf16 %v2916_v54, %v2916_v54  ;;  %v2694_v20 = vsel %vm332_vm12, %v2686_v7, %v2693_v14 }
 0xb9b   :  { %2493 = vmatpush.bf16.msrb.mxu0 %v2484_v8  ;;  %v2914_v0 = vsel %vm332_vm12, %v2913_v25, %v2896_v52  ;;  %v3091_v2 = vsel %vm690_vm13, %v3047_v59, 0  ;;  %v2702_v30 = vperm.slane %v2694_v20, %v4199_v53  ;;  %v2692_v23 = vsel %vm332_vm12, %v2691_v19, %v4896_v29 }
 0xb9c   :  { %v3045_v3 = vpack.c.bf16 %v2914_v0, %v2914_v0  ;;  %v3072_v40 = vsel %vm690_vm13, %v3046_v63, 0  ;;  %3100 = vmatpush.bf16.xpose.msra.mxu2 %v3091_v2  ;;  %v2698_v26 = vperm.slane %v2692_v23, %v4199_v53 }
 0xb9d   :  { %3081 = vmatpush.bf16.xpose.msra.mxu1 %v3072_v40  ;;  %v2729_v38 = vrot.slane %v2702_v30, 4 }
 0xb9e   :  { %v3053_v4 = vsel %vm690_vm13, %v3045_v3, 0  ;;  %v2717_v13 = vrot.slane %v2698_v26, 4 }
 0xb9f   :  { %3062 = vmatpush.bf16.xpose.msra.mxu0 %v3053_v4  ;;  %v2689_v17 = vpop.permute.xlu2 %2688 }
 0xba0   :  { %v2703_v21 = vrot.slane %v2689_v17, 4  ;;  %v2706_v22 = vsel %vm332_vm12, %v2689_v17, %v2705_v18 }
 0xba1   :  { %v2714_v6 = vperm.slane %v2706_v22, %v4199_v53 }
 0xba2   :  { %v2704_v15 = vsel %vm332_vm12, %v2703_v21, %v2683_v5 }
 0xba3   :  { %v2710_v11 = vperm.slane %v2704_v15, %v4199_v53  ;;  %v2727_v55 = vrot.slane %v2714_v6, 4  ;;  %v2730_v27 = vsel %vm332_vm12, %v2714_v6, %v2729_v38 }
 0xba4   :  { %v2738_v41 = vperm.slane %v2730_v27, %v4206_v1 }
 0xba5   :  { %v2715_v28 = vrot.slane %v2710_v11, 4  ;;  %v2718_v43 = vsel %vm332_vm12, %v2710_v11, %v2717_v13  ;;  %v2728_v29 = vsel %vm332_vm12, %v2727_v55, %v2702_v30 }
 0xba6   :  { %v2726_v45 = vperm.slane %v2718_v43, %v4206_v1  ;;  %v2734_v47 = vperm.slane %v2728_v29, %v4206_v1  ;;  %v2745_v39 = vrot.slane %v2738_v41, 4 }
 0xba7   :  { %v2716_v44 = vsel %vm332_vm12, %v2715_v28, %v2698_v26 }
 0xba8   :  { %v2722_v48 = vperm.slane %v2716_v44, %v4206_v1  ;;  %v2741_v46 = vrot.slane %v2726_v45, 4  ;;  %v2743_v51 = vrot.slane %v2734_v47, 4  ;;  %v2746_v52 = vsel %vm332_vm12, 0.0, %v2745_v39 }
 0xba9   :  { %v2763_v37 = vrot.slane %v2746_v52, 4  ;;  %v2758_v8 = vsel %vm332_vm12, %v2745_v39, %v2734_v47 }
 0xbaa   :  { %v2739_v58 = vrot.slane %v2722_v48, 4  ;;  %v2742_v24 = vsel %vm332_vm12, 0.0, %v2741_v46  ;;  %v2744_v36 = vsel %vm332_vm12, 0.0, %v2743_v51  ;;  %v2747_v54 = vsel %vm332_vm12, %v2741_v46, %v2722_v48 }
 0xbab   :  { %v2752_v34 = vrot.slane %v2742_v24, 4  ;;  %v2764_v61 = vsel %vm332_vm12, %v2763_v37, %v2744_v36  ;;  %v2751_v3 = vperm.slane %v2747_v54, %v4199_v53  ;;  %v2762_v40 = vperm.slane %v2758_v8, %v4199_v53 }
 0xbac   :  { %v2740_v56 = vsel %vm332_vm12, 0.0, %v2739_v58  ;;  %v2768_v42 = vperm.slane %v2764_v61, %v4199_v53 }
 0xbad   :  { %v2753_v35 = vsel %vm332_vm12, %v2752_v34, %v2740_v56  ;;  %v2783_v15 = vrot.slane %v2762_v40, 4 }
 0xbae   :  { %v2757_v63 = vperm.slane %v2753_v35, %v4199_v53  ;;  %v2781_v0 = vrot.slane %v2768_v42, 4 }
 0xbb0   :  { %v2782_v17 = vsel %vm332_vm12, %v2781_v0, %v2762_v40  ;;  %v2769_v18 = vrot.slane %v2757_v63, 4 }
 0xbb1   :  { %v2788_v22 = vperm.slane %v2782_v17, %v4206_v1 }
 0xbb2   :  { %v2770_v30 = vsel %vm332_vm12, %v2769_v18, %v2751_v3 }
 0xbb3   :  { %v2776_v38 = vperm.slane %v2770_v30, %v4206_v1  ;;  %v2793_v11 = vrot.slane %v2788_v22, 4 }
 0xbb5   :  { %v2794_v41 = vsel %vm332_vm12, %v2793_v11, %v2776_v38  ;;  %v2795_v37 = vrot.slane %v2776_v38, 4 }
 0xbb6   :  { %v3041_v29 = vpack.c.bf16 %v2794_v41, %v2794_v41 }
 0xbb7   :  { %v2796_v58 = vsel %vm332_vm12, %v2788_v22, %v2795_v37 }
 0xbb8   :  { %v3042_v24 = vpack.c.bf16 %v2796_v58, %v2796_v58 }
 0xbdb   :  { %v2445_v60 = vpop.xlane.xlu2 %2444 }
 0xbdc   :  { %3954 = vrcp.f32 %v2445_v60 }
 0xbe0   :  { %v2454_v25 = vpop.xlane.xlu0 %2453 }
 0xbe1   :  { %3956 = vrcp.f32 %v2454_v25 }
 0xbe2   :  { %v3955_v59 = vpop.eup %3954 }
 0xbe3   :  { %v2459_v2 = vmul.f32 %v3955_v59, %v4904_v62  ;;  %v2771_v62 = vrot.slane %v2751_v3, 4 }
 0xbe5   :  { %v2463_v4 = vsel %vm690_vm13, %v2459_v2, 0.0  ;;  %v2472_v5 = vpack.c.bf16 %v2459_v2, %v2459_v2  ;;  %v2451_v7 = vpop.xlane.xlu1 %2450  ;;  %v2772_v23 = vsel %vm332_vm12, %v2757_v63, %v2771_v62 }
 0xbe6   :  { %3740 = vst [vmem:[%s5375_s19 + $0x40] sm:$0xff] %v2463_v4  ;;  %3958 = vrcp.f32 %v2451_v7  ;;  %v2780_v55 = vperm.slane %v2772_v23, %v4206_v1 }
 0xbe7   :  { %v3957_v14 = vpop.eup %3956  ;;  %3744 = vmatmul.msk.bf16.vlgmr.msrb.gmra.mxu0 %vm690_vm13, %v2472_v5 }
 0xbe8   :  { %v2462_v19 = vmul.f32 %v3957_v14, %v4908_v57  ;;  %v2799_v28 = vrot.slane %v2780_v55, 4 }
 0xbea   :  { %v2466_v20 = vsel %vm690_vm13, %v2462_v19, 0.0  ;;  %v2475_v21 = vpack.c.bf16 %v2462_v19, %v2462_v19 }
 0xbeb   :  { %3743 = vst [vmem:[%s5375_s19 + $0x58] sm:$0xff] %v2466_v20 }
 0xbec   :  { %3747 = vmatmul.msk.bf16.vlgmr.msrb.gmra.mxu3 %vm690_vm13, %v2475_v21  ;;  %v3959_v6 = vpop.eup %3958 }
 0xbed   :  { %v2461_v26 = vmul.f32 %v3959_v6, %v4912_v12  ;;  %v2448_v57 = vpop.xlane.xlu1 %2447  ;;  %v2784_v12 = vsel %vm332_vm12, %v2768_v42, %v2783_v15 }
 0xbee   :  { %3960 = vrcp.f32 %v2448_v57  ;;  %v2792_v45 = vperm.slane %v2784_v12, %v4206_v1 }
 0xbef   :  { %v2465_v27 = vsel %vm690_vm13, %v2461_v26, 0.0  ;;  %v2474_v13 = vpack.c.bf16 %v2461_v26, %v2461_v26 }
 0xbf0   :  { %3742 = vst [vmem:[%s5375_s19 + $0x50] sm:$0xff] %v2465_v27  ;;  %v2800_v39 = vsel %vm332_vm12, %v2792_v45, %v2799_v28  ;;  %v2797_v46 = vrot.slane %v2792_v45, 4 }
 0xbf1   :  { %3746 = vmatmul.msk.bf16.vlgmr.msrb.gmra.mxu2 %vm690_vm13, %v2474_v13  ;;  %v3044_v51 = vpack.c.bf16 %v2800_v39, %v2800_v39 }
 0xbf2   :  { %v2798_v52 = vsel %vm332_vm12, %v2797_v46, %v2780_v55 }
 0xbf4   :  { %v3961_v43 = vpop.eup %3960 }
 0xbf5   :  { %v2460_v47 = vmul.f32 %v3961_v43, %v4917_v31  ;;  %v3043_v31 = vpack.c.bf16 %v2798_v52, %v2798_v52 }
 0xbf7   :  { %3748 = vmatmul.msk.bf16.vlgmr.msra.gmra.mxu0 %vm690_vm13, %v3041_v29  ;;  %v2464_v44 = vsel %vm690_vm13, %v2460_v47, 0.0  ;;  %v2473_v48 = vpack.c.bf16 %v2460_v47, %v2460_v47 }
 0xbf8   :  { %3741 = vst [vmem:[%s5375_s19 + $0x48] sm:$0xff] %v2464_v44 }
 0xbf9   :  { %3745 = vmatmul.msk.bf16.vlgmr.msrb.gmra.mxu1 %vm690_vm13, %v2473_v48 }
 0xbfc   :  { %3751 = vmatmul.msk.bf16.vlgmr.msra.gmra.mxu3 %vm690_vm13, %v3044_v51 }
 0xc01   :  { %3750 = vmatmul.msk.bf16.vlgmr.msra.gmra.mxu2 %vm690_vm13, %v3043_v31 }
 0xc09   :  { %3749 = vmatmul.msk.bf16.vlgmr.msra.gmra.mxu1 %vm690_vm13, %v3042_v24 }
 0xc64   :  { %v2495_v36 = vpop.f32.mrf.mxu0 }
 0xc65   :  { %v2558_v61 = vrot.slane %v2495_v36, 4 }
 0xc6c   :  { %v2497_v60 = vpop.f32.mrf.mxu0 }
 0xc6f   :  { %v2552_v34 = vpop.f32.mrf.mxu3 }
 0xc70   :  { %v2568_v25 = vrot.slane %v2552_v34, 4 }
 0xc74   :  { %v3064_v56 = vpop.f32.mrf.mxu0  ;;  %v2533_v42 = vpop.f32.mrf.mxu2 }
 0xc75   :  { %v3125_v35 = vmul.f32 0.35355338, %v3064_v56  ;;  %v2556_v54 = vrot.slane %v2533_v42, 4  ;;  %v2559_v59 = vsel %vm332_vm12, %v2533_v42, %v2558_v61 }
 0xc76   :  { %v2567_v8 = vperm.slane %v2559_v59, %v4199_v53  ;;  %v2514_v63 = vpop.f32.mrf.mxu1 }
 0xc77   :  { %v2554_v0 = vpop.f32.mrf.mxu3  ;;  %v5089_v2 = vadd.f32 %v3125_v35, %v4512_v9  ;;  %v2557_v3 = vsel %vm332_vm12, %v2556_v54, %v2495_v36  ;;  %v2569_v40 = vsel %vm332_vm12, %v2568_v25, %v2514_v63  ;;  %v2570_v4 = vrot.slane %v2514_v63, 4 }
 0xc78   :  { %v2563_v5 = vperm.slane %v2557_v3, %v4199_v53  ;;  %v2575_v7 = vperm.slane %v2569_v40, %v4199_v53  ;;  %v2594_v62 = vrot.slane %v2567_v8, 4 }
 0xc79   :  { %v3133_v14 = vsel %vm690_vm13, %v5089_v2, -inf  ;;  %v2571_v17 = vsel %vm332_vm12, %v2552_v34, %v2570_v4 }
 0xc7a   :  { %3134 = vmax.xlane.f32.xlu0 %v3133_v14  ;;  %v2582_v18 = vrot.slane %v2563_v5, 4  ;;  %v2579_v19 = vperm.slane %v2571_v17, %v4199_v53  ;;  %v2580_v20 = vrot.slane %v2575_v7, 4 }
 0xc7c   :  { %v3066_v21 = vpop.f32.mrf.mxu0  ;;  %v2581_v22 = vsel %vm332_vm12, %v2580_v20, %v2563_v5  ;;  %v2583_v30 = vsel %vm332_vm12, %v2575_v7, %v2582_v18  ;;  %v2592_v23 = vrot.slane %v2579_v19, 4  ;;  %v2595_v6 = vsel %vm332_vm12, %v2579_v19, %v2594_v62  ;;  %v2535_v15 = vpop.f32.mrf.mxu2 }
 0xc7d   :  { %v2587_v26 = vperm.slane %v2581_v22, %v4206_v1  ;;  %v2591_v57 = vperm.slane %v2583_v30, %v4206_v1  ;;  %v2603_v38 = vperm.slane %v2595_v6, %v4206_v1 }
 0xc7e   :  { %v2593_v11 = vsel %vm332_vm12, %v2592_v23, %v2567_v8  ;;  %v2516_v55 = vpop.f32.mrf.mxu1 }
 0xc7f   :  { %v3121_v27 = vpop.f32.mrf.mxu3  ;;  %v2599_v13 = vperm.slane %v2593_v11, %v4206_v1  ;;  %v2604_v41 = vrot.slane %v2587_v26, 4  ;;  %v2606_v12 = vrot.slane %v2591_v57, 4  ;;  %v2610_v28 = vrot.slane %v2603_v38, 4 }
 0xc80   :  { %v3128_v7 = vmul.f32 0.35355338, %v3121_v27 }
 0xc81   :  { %v2607_v43 = vsel %vm332_vm12, 0.0, %v2606_v12  ;;  %v2608_v29 = vrot.slane %v2599_v13, 4  ;;  %v2611_v45 = vsel %vm332_vm12, 0.0, %v2610_v28  ;;  %v2612_v47 = vsel %vm332_vm12, %v2606_v12, %v2587_v26 }
 0xc82   :  { %v2617_v39 = vrot.slane %v2607_v43, 4  ;;  %v2623_v44 = vsel %vm332_vm12, %v2610_v28, %v2599_v13  ;;  %v2628_v48 = vrot.slane %v2611_v45, 4  ;;  %v2605_v46 = vsel %vm332_vm12, 0.0, %v2604_v41 }
 0xc83   :  { %v2609_v51 = vsel %vm332_vm12, 0.0, %v2608_v29  ;;  %v2616_v52 = vperm.slane %v2612_v47, %v4199_v53  ;;  %v2627_v31 = vperm.slane %v2623_v44, %v4199_v53  ;;  %v3132_v57 = vadd.f32 %v3128_v7, %v4512_v9 }
 0xc84   :  { %v2618_v37 = vsel %vm332_vm12, %v2617_v39, %v2605_v46  ;;  %v3102_v58 = vpop.f32.mrf.mxu2  ;;  %v2629_v24 = vsel %vm332_vm12, %v2628_v48, %v2609_v51 }
 0xc85   :  { %v3127_v36 = vmul.f32 0.35355338, %v3102_v58  ;;  %v2622_v60 = vperm.slane %v2618_v37, %v4199_v53  ;;  %v2633_v34 = vperm.slane %v2629_v24, %v4199_v53  ;;  %v2636_v42 = vrot.slane %v2616_v52, 4 }
 0xc86   :  { %v3083_v61 = vpop.f32.mrf.mxu1  ;;  %v2648_v35 = vrot.slane %v2627_v31, 4  ;;  %v3142_v55 = vsel %vm690_vm13, %v3132_v57, -inf }
 0xc87   :  { %v3123_v56 = vpop.f32.mrf.mxu3  ;;  %v3126_v25 = vmul.f32 0.35355338, %v3083_v61  ;;  %v3131_v54 = vadd.f32 %v3127_v36, %v4512_v9  ;;  %v2634_v59 = vrot.slane %v2622_v60, 4  ;;  %v2646_v8 = vrot.slane %v2633_v34, 4 }
 0xc88   :  { %v2637_v63 = vsel %vm332_vm12, %v2622_v60, %v2636_v42  ;;  %v2649_v0 = vsel %vm332_vm12, %v2633_v34, %v2648_v35  ;;  %v2929_v60 = vpop.permute.xlu2 %2928  ;;  %v2933_v35 = vrot.slane %v4935_v16, 4 }
 0xc89   :  { %v3139_v3 = vsel %vm690_vm13, %v3131_v54, -inf  ;;  %v3130_v40 = vadd.f32 %v3126_v25, %v4512_v9  ;;  %v2645_v4 = vperm.slane %v2637_v63, %v4206_v1  ;;  %v2657_v5 = vperm.slane %v2649_v0, %v4206_v1 }
 0xc8a   :  { %3140 = vmax.xlane.f32.xlu0 %v3139_v3  ;;  %v2635_v14 = vsel %vm332_vm12, %v2634_v59, %v2616_v52  ;;  %v2647_v17 = vsel %vm332_vm12, %v2646_v8, %v2627_v31  ;;  %v2943_v34 = vrot.slane %v2929_v60, 4 }
 0xc8b   :  { %v3136_v18 = vsel %vm690_vm13, %v3130_v40, -inf  ;;  %v2662_v62 = vrot.slane %v2657_v5, 4  ;;  %v2664_v19 = vrot.slane %v2645_v4, 4  ;;  %v2641_v20 = vperm.slane %v2635_v14, %v4206_v1 }
 0xc8c   :  { %v3104_v21 = vpop.f32.mrf.mxu2  ;;  %3137 = vmax.xlane.f32.xlu1 %v3136_v18  ;;  %v2653_v22 = vperm.slane %v2647_v17, %v4206_v1 }
 0xc8d   :  { %v5132_v30 = vsel %vm332_vm12, %v2662_v62, %v2645_v4  ;;  %v5135_v23 = vsel %vm332_vm12, %v2657_v5, %v2664_v19  ;;  %v2660_v6 = vrot.slane %v2641_v20, 4 }
 0xc8e   :  { %v3085_v15 = vpop.f32.mrf.mxu1  ;;  %v2658_v26 = vrot.slane %v2653_v22, 4 }
 0xc8f   :  { %v5139_v38 = vsel %vm332_vm12, %v2653_v22, %v2660_v6 }
 0xc90   :  { %v5142_v11 = vsel %vm332_vm12, %v2658_v26, %v2641_v20 }
 0xc94   :  { %3143 = vmax.xlane.f32.xlu1 %v3142_v55 }
 0xc9e   :  { %2922 = vrot.lane.b32.xlu0 %v4935_v16, %s4001_s25 }
 0xcad   :  { %2925 = vrot.lane.b32.xlu1 %v4935_v16, %s4000_s3 }
 0xced   :  { %v3135_v27 = vpop.xlane.xlu0 %3134 }
 0xcee   :  { %v3145_v13 = vsub.f32 %v5089_v2, %v3135_v27 }
 0xcf0   :  { %v3149_v41 = vmul.f32 1.442695, %v3145_v13 }
 0xcf2   :  { %3962 = vpow2.f32 %v3149_v41 }
 0xcf8   :  { %v5150_v9 = vpop.eup %3962 }
 0xcf9   :  { %v3157_v12 = vsel %vm690_vm13, %v5150_v9, 0.0 }
 0xcfa   :  { %3158 = vadd.xlane.f32.xlu2 %v3157_v12 }
 0xcfd   :  { %v3141_v28 = vpop.xlane.xlu0 %3140 }
 0xcfe   :  { %v3147_v43 = vsub.f32 %v3131_v54, %v3141_v28 }
 0xcff   :  { %v3138_v29 = vpop.xlane.xlu1 %3137 }
 0xd00   :  { %v3153_v45 = vmul.f32 1.442695, %v3147_v43  ;;  %v3146_v47 = vsub.f32 %v3130_v40, %v3138_v29 }
 0xd02   :  { %3964 = vpow2.f32 %v3153_v45  ;;  %v3151_v39 = vmul.f32 1.442695, %v3146_v47 }
 0xd04   :  { %3966 = vpow2.f32 %v3151_v39 }
 0xd07   :  { %v3144_v44 = vpop.xlane.xlu1 %3143 }
 0xd08   :  { %v5154_v48 = vpop.eup %3964  ;;  %v3148_v2 = vsub.f32 %v3132_v57, %v3144_v44 }
 0xd09   :  { %v3163_v46 = vsel %vm690_vm13, %v5154_v48, 0.0 }
 0xd0a   :  { %v3155_v51 = vmul.f32 1.442695, %v3148_v2  ;;  %3164 = vadd.xlane.f32.xlu0 %v3163_v46  ;;  %v5158_v52 = vpop.eup %3966 }
 0xd0b   :  { %v3160_v31 = vsel %vm690_vm13, %v5158_v52, 0.0 }
 0xd0c   :  { %3968 = vpow2.f32 %v3155_v51 }
 0xd10   :  { %v2923_v58 = vpop.permute.xlu0 %2922 }
 0xd11   :  { %v2945_v36 = vrot.slane %v2923_v58, 4  ;;  %v2944_v56 = vsel %vm332_vm12, %v2943_v34, %v2923_v58 }
 0xd12   :  { %v5162_v37 = vpop.eup %3968  ;;  %3161 = vadd.xlane.f32.xlu0 %v3160_v31  ;;  %v2950_v25 = vperm.slane %v2944_v56, %v4199_v53 }
 0xd13   :  { %v3166_v24 = vsel %vm690_vm13, %v5162_v37, 0.0  ;;  %v2946_v61 = vsel %vm332_vm12, %v2929_v60, %v2945_v36 }
 0xd14   :  { %3167 = vadd.xlane.f32.xlu1 %v3166_v24  ;;  %v2954_v42 = vperm.slane %v2946_v61, %v4199_v53  ;;  %v2955_v40 = vrot.slane %v2950_v25, 4 }
 0xd16   :  { %v2967_v63 = vrot.slane %v2954_v42, 4 }
 0xd1f   :  { %v2926_v54 = vpop.permute.xlu1 %2925 }
 0xd20   :  { %v2931_v59 = vrot.slane %v2926_v54, 4  ;;  %v2934_v8 = vsel %vm332_vm12, %v2926_v54, %v2933_v35 }
 0xd21   :  { %v2942_v0 = vperm.slane %v2934_v8, %v4199_v53 }
 0xd22   :  { %v2932_v3 = vsel %vm332_vm12, %v2931_v59, %v4935_v16 }
 0xd23   :  { %v2938_v4 = vperm.slane %v2932_v3, %v4199_v53  ;;  %v2968_v5 = vsel %vm332_vm12, %v2967_v63, %v2942_v0  ;;  %v2969_v7 = vrot.slane %v2942_v0, 4 }
 0xd24   :  { %v2974_v14 = vperm.slane %v2968_v5, %v4206_v1 }
 0xd25   :  { %v2956_v17 = vsel %vm332_vm12, %v2955_v40, %v2938_v4  ;;  %v2957_v18 = vrot.slane %v2938_v4, 4  ;;  %v2970_v62 = vsel %vm332_vm12, %v2954_v42, %v2969_v7 }
 0xd26   :  { %v2962_v19 = vperm.slane %v2956_v17, %v4206_v1  ;;  %v2978_v20 = vperm.slane %v2970_v62, %v4206_v1  ;;  %v2983_v22 = vrot.slane %v2974_v14, 4 }
 0xd27   :  { %v2958_v21 = vsel %vm332_vm12, %v2950_v25, %v2957_v18 }
 0xd28   :  { %v2966_v16 = vperm.slane %v2958_v21, %v4206_v1  ;;  %v2985_v6 = vrot.slane %v2978_v20, 4  ;;  %v2979_v15 = vrot.slane %v2962_v19, 4  ;;  %v2984_v12 = vsel %vm332_vm12, 0.0, %v2983_v22 }
 0xd2a   :  { %v2981_v26 = vrot.slane %v2966_v16, 4  ;;  %v2986_v57 = vsel %vm332_vm12, 0.0, %v2985_v6  ;;  %v2998_v55 = vsel %vm332_vm12, %v2985_v6, %v2974_v14  ;;  %v2980_v39 = vsel %vm332_vm12, 0.0, %v2979_v15 }
 0xd2b   :  { %v3002_v27 = vperm.slane %v2998_v55, %v4199_v53  ;;  %v3003_v13 = vrot.slane %v2986_v57, 4 }
 0xd2c   :  { %v2982_v41 = vsel %vm332_vm12, 0.0, %v2981_v26  ;;  %v2987_v28 = vsel %vm332_vm12, %v2981_v26, %v2962_v19 }
 0xd2d   :  { %v2992_v43 = vrot.slane %v2982_v41, 4  ;;  %v3004_v29 = vsel %vm332_vm12, %v3003_v13, %v2984_v12  ;;  %v3023_v45 = vrot.slane %v3002_v27, 4  ;;  %v2991_v47 = vperm.slane %v2987_v28, %v4199_v53 }
 0xd2e   :  { %v3008_v44 = vperm.slane %v3004_v29, %v4199_v53 }
 0xd2f   :  { %v2993_v2 = vsel %vm332_vm12, %v2992_v43, %v2980_v39  ;;  %v3011_v46 = vrot.slane %v2991_v47, 4 }
 0xd30   :  { %v3021_v51 = vrot.slane %v3008_v44, 4  ;;  %v2997_v31 = vperm.slane %v2993_v2, %v4199_v53  ;;  %v3024_v58 = vsel %vm332_vm12, %v3008_v44, %v3023_v45 }
 0xd31   :  { %v3032_v24 = vperm.slane %v3024_v58, %v4206_v1 }
 0xd32   :  { %v3012_v36 = vsel %vm332_vm12, %v2997_v31, %v3011_v46  ;;  %v3009_v60 = vrot.slane %v2997_v31, 4  ;;  %v3022_v34 = vsel %vm332_vm12, %v3021_v51, %v3002_v27 }
 0xd33   :  { %v3020_v61 = vperm.slane %v3012_v36, %v4206_v1  ;;  %v3037_v56 = vrot.slane %v3032_v24, 4  ;;  %v3028_v42 = vperm.slane %v3022_v34, %v4206_v1 }
 0xd34   :  { %v3010_v35 = vsel %vm332_vm12, %v3009_v60, %v2991_v47 }
 0xd35   :  { %v3038_v25 = vsel %vm332_vm12, %v3037_v56, %v3020_v61  ;;  %v3016_v54 = vperm.slane %v3010_v35, %v4206_v1  ;;  %v3033_v59 = vrot.slane %v3028_v42, 4  ;;  %v3039_v8 = vrot.slane %v3020_v61, 4 }
 0xd36   :  { %v3192_v63 = vpack.c.bf16 %v3038_v25, %v3038_v25 }
 0xd37   :  { %v3034_v0 = vsel %vm332_vm12, %v3033_v59, %v3016_v54  ;;  %v3040_v3 = vsel %vm332_vm12, %v3032_v24, %v3039_v8  ;;  %v3035_v40 = vrot.slane %v3016_v54, 4 }
 0xd38   :  { %v3236_v4 = vsel %vm841_vm14, %v3192_v63, 0  ;;  %v3190_v5 = vpack.c.bf16 %v3034_v0, %v3034_v0  ;;  %v3193_v7 = vpack.c.bf16 %v3040_v3, %v3040_v3 }
 0xd39   :  { %3245 = vmatpush.bf16.msrb.mxu2 %v3236_v4  ;;  %v3036_v14 = vsel %vm332_vm12, %v3028_v42, %v3035_v40 }
 0xd3a   :  { %v3198_v17 = vsel %vm841_vm14, %v3190_v5, 0  ;;  %v3255_v18 = vsel %vm841_vm14, %v3193_v7, 0  ;;  %v3191_v62 = vpack.c.bf16 %v3036_v14, %v3036_v14 }
 0xd3b   :  { %3207 = vmatpush.bf16.msrb.mxu0 %v3198_v17  ;;  %3264 = vmatpush.bf16.msrb.mxu3 %v3255_v18 }
 0xd3c   :  { %v3217_v19 = vsel %vm841_vm14, %v3191_v62, 0  ;;  %vm3513_vm14 = vcmask 523264  }
 0xd3d   :  { %3226 = vmatpush.bf16.msrb.mxu1 %v3217_v19 }
 0xd6d   :  { %v3159_v20 = vpop.xlane.xlu2 %3158 }
 0xd6e   :  { %3970 = vrcp.f32 %v3159_v20 }
 0xd74   :  { %v3971_v21 = vpop.eup %3970 }
 0xd75   :  { %v3173_v16 = vmul.f32 %v3971_v21, %v5150_v9 }
 0xd77   :  { %v3177_v22 = vsel %vm690_vm13, %v3173_v16, 0.0  ;;  %v3186_v6 = vpack.c.bf16 %v3173_v16, %v3173_v16 }
 0xd78   :  { %3752 = vst [vmem:[%s5375_s19 + $0x60] sm:$0xff] %v3177_v22 }
 0xd79   :  { %3756 = vmatmul.msk.bf16.vlgmr.msrb.gmra.mxu0 %vm690_vm13, %v3186_v6 }
 0xd7d   :  { %v3165_v15 = vpop.xlane.xlu0 %3164 }
 0xd7e   :  { %3972 = vrcp.f32 %v3165_v15 }
 0xd84   :  { %v3973_v26 = vpop.eup %3972 }
 0xd85   :  { %v3175_v57 = vmul.f32 %v3973_v26, %v5154_v48  ;;  %v3162_v55 = vpop.xlane.xlu0 %3161 }
 0xd86   :  { %3974 = vrcp.f32 %v3162_v55 }
 0xd87   :  { %v3179_v27 = vsel %vm690_vm13, %v3175_v57, 0.0  ;;  %v3188_v13 = vpack.c.bf16 %v3175_v57, %v3175_v57  ;;  %v3168_v9 = vpop.xlane.xlu1 %3167 }
 0xd88   :  { %3754 = vst [vmem:[%s5375_s19 + $0x70] sm:$0xff] %v3179_v27  ;;  %3976 = vrcp.f32 %v3168_v9 }
 0xd89   :  { %3758 = vmatmul.msk.bf16.vlgmr.msrb.gmra.mxu2 %vm690_vm13, %v3188_v13 }
 0xd8c   :  { %v3975_v41 = vpop.eup %3974 }
 0xd8d   :  { %v3174_v12 = vmul.f32 %v3975_v41, %v5158_v52 }
 0xd8e   :  { %v3977_v28 = vpop.eup %3976 }
 0xd8f   :  { %v3178_v43 = vsel %vm690_vm13, %v3174_v12, 0.0  ;;  %v3187_v48 = vpack.c.bf16 %v3174_v12, %v3174_v12  ;;  %v3176_v29 = vmul.f32 %v3977_v28, %v5162_v37 }
 0xd90   :  { %3753 = vst [vmem:[%s5375_s19 + $0x68] sm:$0xff] %v3178_v43 }
 0xd91   :  { %v3180_v45 = vsel %vm690_vm13, %v3176_v29, 0.0  ;;  %v3189_v47 = vpack.c.bf16 %v3176_v29, %v3176_v29  ;;  %3757 = vmatmul.msk.bf16.vlgmr.msrb.gmra.mxu1 %vm690_vm13, %v3187_v48 }
 0xd92   :  { %3755 = vst [vmem:[%s5375_s19 + $0x78] sm:$0xff] %v3180_v45 }
 0xd93   :  { %3759 = vmatmul.msk.bf16.vlgmr.msrb.gmra.mxu3 %vm690_vm13, %v3189_v47 }
 0xdf6   :  { %v3209_v52 = vpop.f32.mrf.mxu0 }
 0xdf7   :  { %v3272_v37 = vrot.slane %v3209_v52, 4 }
 0xdfe   :  { %v3211_v39 = vpop.f32.mrf.mxu0 }
 0xe0c   :  { %v3247_v44 = vpop.f32.mrf.mxu2 }
 0xe0d   :  { %v3270_v46 = vrot.slane %v3247_v44, 4  ;;  %v3273_v51 = vsel %vm332_vm12, %v3247_v44, %v3272_v37 }
 0xe0e   :  { %v3228_v2 = vpop.f32.mrf.mxu1  ;;  %v3281_v58 = vperm.slane %v3273_v51, %v4199_v53 }
 0xe0f   :  { %v3271_v31 = vsel %vm332_vm12, %v3270_v46, %v3209_v52  ;;  %v3284_v36 = vrot.slane %v3228_v2, 4 }
 0xe10   :  { %v3277_v60 = vperm.slane %v3271_v31, %v4199_v53  ;;  %v3308_v35 = vrot.slane %v3281_v58, 4 }
 0xe12   :  { %v3296_v59 = vrot.slane %v3277_v60, 4 }
 0xe14   :  { %v3249_v24 = vpop.f32.mrf.mxu2 }
 0xe16   :  { %v3230_v34 = vpop.f32.mrf.mxu1  ;;  %v3266_v61 = vpop.f32.mrf.mxu3 }
 0xe17   :  { %v3282_v56 = vrot.slane %v3266_v61, 4  ;;  %v3285_v42 = vsel %vm332_vm12, %v3266_v61, %v3284_v36 }
 0xe18   :  { %v3293_v25 = vperm.slane %v3285_v42, %v4199_v53 }
 0xe19   :  { %v3283_v54 = vsel %vm332_vm12, %v3282_v56, %v3228_v2 }
 0xe1a   :  { %v3289_v8 = vperm.slane %v3283_v54, %v4199_v53  ;;  %v3306_v63 = vrot.slane %v3293_v25, 4  ;;  %v3309_v0 = vsel %vm332_vm12, %v3293_v25, %v3308_v35  ;;  %v3801_v54 = vld [vmem:[%s5377_s12 + $0x10] sm:$0xff] }
 0xe1b   :  { %v3317_v3 = vperm.slane %v3309_v0, %v4206_v1 }
 0xe1c   :  { %v3294_v40 = vrot.slane %v3289_v8, 4  ;;  %v3297_v4 = vsel %vm332_vm12, %v3289_v8, %v3296_v59  ;;  %v3307_v5 = vsel %vm332_vm12, %v3306_v63, %v3281_v58 }
 0xe1d   :  { %v3305_v7 = vperm.slane %v3297_v4, %v4206_v1  ;;  %v3313_v14 = vperm.slane %v3307_v5, %v4206_v1  ;;  %v3324_v17 = vrot.slane %v3317_v3, 4 }
 0xe1e   :  { %v3295_v18 = vsel %vm332_vm12, %v3294_v40, %v3277_v60  ;;  %v3268_v62 = vpop.f32.mrf.mxu3 }
 0xe1f   :  { %v3301_v19 = vperm.slane %v3295_v18, %v4206_v1  ;;  %v3320_v20 = vrot.slane %v3305_v7, 4  ;;  %v3322_v21 = vrot.slane %v3313_v14, 4  ;;  %v3325_v16 = vsel %vm332_vm12, 0.0, %v3324_v17 }
 0xe20   :  { %v3337_v22 = vsel %vm332_vm12, %v3324_v17, %v3313_v14  ;;  %v3342_v6 = vrot.slane %v3325_v16, 4 }
 0xe21   :  { %v3318_v15 = vrot.slane %v3301_v19, 4  ;;  %v3321_v26 = vsel %vm332_vm12, 0.0, %v3320_v20  ;;  %v3323_v57 = vsel %vm332_vm12, 0.0, %v3322_v21  ;;  %v3326_v55 = vsel %vm332_vm12, %v3320_v20, %v3301_v19  ;;  %v3888_v20 = vld [vmem:[%s5376_s13 + $0x1] ss:$0 sm:$0xff]  ;;  %s4007_s13 = smov 32  }
 0xe22   :  { %v3331_v27 = vrot.slane %v3321_v26, 4  ;;  %v3341_v13 = vperm.slane %v3337_v22, %v4199_v53  ;;  %v3343_v9 = vsel %vm332_vm12, %v3342_v6, %v3323_v57  ;;  %v3330_v41 = vperm.slane %v3326_v55, %v4199_v53 }
 0xe23   :  { %v3347_v12 = vperm.slane %v3343_v9, %v4199_v53  ;;  %v3319_v28 = vsel %vm332_vm12, 0.0, %v3318_v15 }
 0xe24   :  { %v3362_v43 = vrot.slane %v3341_v13, 4  ;;  %v3332_v48 = vsel %vm332_vm12, %v3331_v27, %v3319_v28  ;;  %v3350_v29 = vrot.slane %v3330_v41, 4 }
 0xe25   :  { %v3336_v45 = vperm.slane %v3332_v48, %v4199_v53  ;;  %v3360_v47 = vrot.slane %v3347_v12, 4 }
 0xe26   :  { %v3363_v52 = vsel %vm332_vm12, %v3347_v12, %v3362_v43 }
 0xe27   :  { %v3351_v39 = vsel %vm332_vm12, %v3336_v45, %v3350_v29  ;;  %v3371_v44 = vperm.slane %v3363_v52, %v4206_v1  ;;  %v3348_v2 = vrot.slane %v3336_v45, 4  ;;  %v3361_v37 = vsel %vm332_vm12, %v3360_v47, %v3341_v13 }
 0xe28   :  { %v3359_v46 = vperm.slane %v3351_v39, %v4206_v1  ;;  %v3367_v51 = vperm.slane %v3361_v37, %v4206_v1 }
 0xe29   :  { %v3376_v31 = vrot.slane %v3371_v44, 4  ;;  %v3349_v58 = vsel %vm332_vm12, %v3348_v2, %v3330_v41 }
 0xe2a   :  { %v3378_v24 = vrot.slane %v3359_v46, 4  ;;  %v3355_v53 = vperm.slane %v3349_v58, %v4206_v1  ;;  %v3372_v36 = vrot.slane %v3367_v51, 4 }
 0xe2b   :  { %v3377_v60 = vsel %vm332_vm12, %v3376_v31, %v3359_v46 }
 0xe2c   :  { %v3866_v34 = vpack.i.bf16 %v3377_v60, %v5132_v30  ;;  %v3379_v61 = vsel %vm332_vm12, %v3371_v44, %v3378_v24  ;;  %v3374_v56 = vrot.slane %v3355_v53, 4  ;;  %v3373_v42 = vsel %vm332_vm12, %v3372_v36, %v3355_v53  ;;  %v3802_v30 = vld [vmem:[%s5377_s12 + $0x18] sm:$0xff]  ;;  %v3889_v36 = vld [vmem:[%s5378_s14 + $0x1] ss:$0 sm:$0xff]  ;;  %s4008_s14 = smov 64  }
 0xe2d   :  { %v3871_v35 = vpack.i.bf16 %v3379_v61, %v5135_v23  ;;  %3427 = vmatpush.bf16.msra.mxu0 %v3802_v30  ;;  %v3890_v61 = vld [vmem:[%s5379_s15 + $0x1] ss:$0 sm:$0xff] }
 0xe2e   :  { %3867 = vrot.lane.b32.xlu1 %v3866_v34, %s4004_s23  ;;  %v3375_v25 = vsel %vm332_vm12, %v3367_v51, %v3374_v56 }
 0xe2f   :  { %3872 = vrot.lane.b32.xlu2 %v3871_v35, %s4005_s5  ;;  %v3861_v1 = vpack.i.bf16 %v3375_v25, %v5139_v38 }
 0xe31   :  { %3862 = vrot.lane.b32.xlu0 %v3861_v1, %s4006_s26  ;;  %3428 = vmatpush.bf16.msra.mxu0 %v3801_v54 }
 0xe89   :  { %v3873_v59 = vpop.permute.xlu2 %3872 }
 0xe8a   :  { %v3875_v38 = vunpack.i.h.bf16 %v3873_v59  ;;  %v3874_v4 = vunpack.i.l.bf16 %v3873_v59 }
 0xea0   :  { %v3868_v23 = vpop.permute.xlu1 %3867 }
 0xea1   :  { %v3870_v3 = vunpack.i.h.bf16 %v3868_v23  ;;  %v3869_v40 = vunpack.i.l.bf16 %v3868_v23 }
 0xea3   :  { %v3863_v8 = vpop.permute.xlu0 %3862 }
 0xea4   :  { %v3865_v63 = vunpack.i.h.bf16 %v3863_v8  ;;  %v3864_v0 = vunpack.i.l.bf16 %v3863_v8 }
 0xea6   :  { %v2678_v5 = vsel %vm690_vm13, %v5142_v11, %v3864_v0  ;;  %v3392_v7 = vsel %vm690_vm13, %v3373_v42, %v3865_v63 }
 0xea7   :  { %v2679_v14 = vsel %vm1038_vm15, %v2678_v5, %v3869_v40  ;;  %v3393_v17 = vsel %vm1038_vm15, %v3392_v7, %v3870_v3 }
 0xea8   :  { %v2680_v18 = vsel %vm1040_vm1, %v2679_v14, %v3874_v4  ;;  %v3394_v62 = vsel %vm1040_vm1, %v3393_v17, %v3875_v38  ;;  %v3804_v38 = vld [vmem:[%s5381_s16 + $0x8] sm:$0xff]  ;;  %v3803_v4 = vld [vmem:[%s5381_s16] sm:$0xff]  ;;  %vm3516_vm1 = vcmask 785408  }
 0xea9   :  { %v3395_v19 = vpack.c.bf16 %v3394_v62, %v2680_v18  ;;  %3607 = vmatpush.bf16.msra.mxu1 %v3804_v38 }
 0xeab   :  { %3773 = vmatmul.msk.bf16.vlgmr.msra.gmra.mxu0 %vm65_vm0, %v3395_v19 }
 0xead   :  { %3608 = vmatpush.bf16.msra.mxu1 %v3803_v4 }
 0xf28   :  { %v3430_v21 = vpop.f32.mrf.mxu0 }
 0xf29   :  { %v3431_v16 = vadd.f32 %v3888_v20, %v3430_v21 }
 0xf2b   :  { %v3435_v11 = vadd.f32 %v3431_v16, %v4757_v32 }
 0xf2d   :  { %v3437_v22 = vsel %vm65_vm0, %v3435_v11, 0.0 }
 0xf2e   :  { %3438 = vadd.xlane.f32.xlu0 %v3437_v22 }
 0xf30   :  { %v3432_v6 = vpop.f32.mrf.mxu0 }
 0xf31   :  { %v3433_v15 = vadd.f32 %v3888_v20, %v3432_v6 }
 0xf33   :  { %v3436_v26 = vadd.f32 %v3433_v15, %v4759_v33 }
 0xf35   :  { %v3440_v57 = vsel %vm65_vm0, %v3436_v26, 0.0 }
 0xf36   :  { %3441 = vadd.xlane.f32.xlu1 %v3440_v57 }
 0xfa1   :  { %v3439_v55 = vpop.xlane.xlu0 %3438 }
 0xfa2   :  { %v3443_v27 = vmul.f32 %v3439_v55, %v4122_v10 }
 0xfa4   :  { %v3445_v13 = vsub.f32 %v3435_v11, %v3443_v27 }
 0xfa6   :  { %v3447_v9 = vmul.f32 %v3445_v13, %v3445_v13 }
 0xfa8   :  { %v3449_v41 = vsel %vm65_vm0, %v3447_v9, 0.0 }
 0xfa9   :  { %v3442_v12 = vpop.xlane.xlu1 %3441  ;;  %3450 = vadd.xlane.f32.xlu2 %v3449_v41 }
 0xfaa   :  { %v3444_v28 = vmul.f32 %v3442_v12, %v4122_v10 }
 0xfac   :  { %v3446_v43 = vsub.f32 %v3436_v26, %v3444_v28 }
 0xfae   :  { %v3448_v48 = vmul.f32 %v3446_v43, %v3446_v43 }
 0xfb0   :  { %v3452_v29 = vsel %vm65_vm0, %v3448_v48, 0.0 }
 0xfb1   :  { %3453 = vadd.xlane.f32.xlu0 %v3452_v29 }
 0xfc1   :  { %3497 = vrot.lane.b32.xlu2 %v4757_v32, %s4007_s13 }
0x101c   :  { %v3451_v45 = vpop.xlane.xlu2 %3450 }
0x101d   :  { %v3455_v47 = vmul.f32 %v3451_v45, %v4122_v10 }
0x101f   :  { %v3457_v52 = vadd.f32 1e-12, %v3455_v47 }
0x1021   :  { %3978 = vrsqrt.f32 %v3457_v52  ;;  %vm3465_vm9 = vweird.f32 %v3457_v52 }
0x1024   :  { %v3454_v39 = vpop.xlane.xlu0 %3453 }
0x1025   :  { %v3456_v44 = vmul.f32 %v3454_v39, %v4122_v10 }
0x1027   :  { %v3979_v2 = vpop.eup %3978  ;;  %v3458_v37 = vadd.f32 1e-12, %v3456_v44 }
0x1028   :  { %v3460_v46 = vmul.f32 %v3979_v2, %v3457_v52  ;;  %vm3466_vm8 = vweird.f32 %v3979_v2 }
0x1029   :  { %3980 = vrsqrt.f32 %v3458_v37  ;;  %vm3467_vm10 = vmor %vm3465_vm9, %vm3466_vm8  ;;  %vm3475_vm12 = vweird.f32 %v3458_v37 }
0x102a   :  { %v3461_v51 = vmul.f32 %v3979_v2, %v3460_v46 }
0x102c   :  { %v3462_v31 = vmul.f32 0.5, %v3461_v51 }
0x102e   :  { %v3463_v58 = vsub.f32 1.5, %v3462_v31 }
0x102f   :  { %v3981_v24 = vpop.eup %3980 }
0x1030   :  { %v3464_v53 = vmul.f32 %v3979_v2, %v3463_v58  ;;  %v3470_v32 = vmul.f32 %v3981_v24, %v3458_v37  ;;  %vm3476_vm11 = vweird.f32 %v3981_v24 }
0x1031   :  { %vm3477_vm13 = vmor %vm3475_vm12, %vm3476_vm11 }
0x1032   :  { %v3468_v60 = vsel %vm3467_vm10, %v3979_v2, %v3464_v53  ;;  %v3471_v34 = vmul.f32 %v3981_v24, %v3470_v32 }
0x1033   :  { %v3479_v10 = vmul.f32 %v3468_v60, %v3445_v13 }
0x1034   :  { %v3472_v56 = vmul.f32 0.5, %v3471_v34 }
0x1035   :  { %v3486_v42 = vmul.f32 %v3889_v36, %v3479_v10 }
0x1036   :  { %v3473_v35 = vsub.f32 1.5, %v3472_v56 }
0x1037   :  { %v5317_v25 = vadd.f32 %v3890_v61, %v3486_v42 }
0x1038   :  { %v3474_v1 = vmul.f32 %v3981_v24, %v3473_v35 }
0x1039   :  { %v3521_v30 = vmul.f32 %v5317_v25, %v5317_v25 }
0x103a   :  { %v3478_v54 = vsel %vm3477_vm13, %v3981_v24, %v3474_v1 }
0x103b   :  { %v3523_v23 = vsel %vm65_vm0, %v3521_v30, 0.0  ;;  %v3480_v59 = vmul.f32 %v3478_v54, %v3446_v43 }
0x103c   :  { %3524 = vadd.xlane.f32.xlu0 %v3523_v23 }
0x103d   :  { %v3487_v8 = vmul.f32 %v3889_v36, %v3480_v59 }
0x103f   :  { %v5322_v63 = vadd.f32 %v3890_v61, %v3487_v8  ;;  %v3891_v8 = vld [vmem:[%s5380_s17] ss:$0 sm:$0xff] }
0x1041   :  { %3507 = vrot.lane.b32.xlu2 %v5322_v63, %s4008_s14  ;;  %v3522_v0 = vmul.f32 %v5322_v63, %v5322_v63 }
0x1043   :  { %v3526_v3 = vsel %vm65_vm0, %v3522_v0, 0.0 }
0x1044   :  { %3527 = vadd.xlane.f32.xlu1 %v3526_v3 }
0x1050   :  { %3499 = vrot.lane.b32.xlu0 %v4759_v33, %s4007_s13  ;;  %v3498_v33 = vpop.permute.xlu2 %3497 }
0x1051   :  { %v3511_v39 = vsel %vm65_vm0, %v4142_v49, %v3498_v33 }
0x105d   :  { %3505 = vrot.lane.b32.xlu1 %v5317_v25, %s4008_s14 }
0x109b   :  { %v3508_v15 = vpop.permute.xlu2 %3507 }
0x10af   :  { %v3525_v40 = vpop.xlane.xlu0 %3524 }
0x10b0   :  { %3982 = vrsqrt.f32 %v3525_v40  ;;  %vm3536_vm15 = vcmp.eq.f32.partialorder %v3525_v40, inf  ;;  %v3539_v22 = vand.u32 2147483648, %v3525_v40  ;;  %vm3538_vm2 = vcmp.eq.f32.partialorder %v3525_v40, 0.0 }
0x10b6   :  { %v3983_v5 = vpop.eup %3982 }
0x10b7   :  { %v3530_v7 = vmul.f32 %v3983_v5, %v3525_v40  ;;  %v3528_v14 = vpop.xlane.xlu1 %3527 }
0x10b8   :  { %3984 = vrsqrt.f32 %v3528_v14  ;;  %vm3548_vm3 = vcmp.eq.f32.partialorder %v3528_v14, inf  ;;  %v3551_v45 = vand.u32 2147483648, %v3528_v14  ;;  %vm3550_vm4 = vcmp.eq.f32.partialorder %v3528_v14, 0.0 }
0x10b9   :  { %v3531_v17 = vmul.f32 %v3983_v5, %v3530_v7 }
0x10bb   :  { %v3532_v18 = vmul.f32 0.5, %v3531_v17 }
0x10bd   :  { %v3533_v62 = vsub.f32 1.5, %v3532_v18 }
0x10be   :  { %v3985_v19 = vpop.eup %3984 }
0x10bf   :  { %v3534_v20 = vmul.f32 %v3983_v5, %v3533_v62  ;;  %v3542_v21 = vmul.f32 %v3985_v19, %v3528_v14 }
0x10c1   :  { %v3535_v16 = vmul.f32 %v3534_v20, %v3525_v40  ;;  %v3543_v11 = vmul.f32 %v3985_v19, %v3542_v21 }
0x10c2   :  { %v3500_v6 = vpop.permute.xlu0 %3499 }
0x10c3   :  { %v3537_v26 = vsel %vm3536_vm15, %v3525_v40, %v3535_v16  ;;  %v3544_v57 = vmul.f32 0.5, %v3543_v11  ;;  %v3512_v55 = vsel %vm65_vm0, %v4144_v50, %v3500_v6 }
0x10c4   :  { %v3540_v27 = vsel %vm3538_vm2, %v3539_v22, %v3537_v26  ;;  %v3515_v13 = vsel %vm3513_vm14, %v3512_v55, %v3508_v15 }
0x10c5   :  { %v3553_v9 = vmax.f32 %v3540_v27, 1e-07  ;;  %v3545_v41 = vsub.f32 1.5, %v3544_v57  ;;  %v3518_v12 = vsel %vm3516_vm1, %v3515_v13, 0.0 }
0x10c6   :  { %3520 = vst [vmem:[%s5382_s18 + $0x8] sm:$0xff] %v3518_v12 }
0x10c7   :  { %v3555_v28 = vmin.f32 %v3553_v9, 0.99999  ;;  %v3546_v43 = vmul.f32 %v3985_v19, %v3545_v41 }
0x10c9   :  { %v3559_v48 = vsub.f32 1.0, %v3555_v28  ;;  %v3547_v29 = vmul.f32 %v3546_v43, %v3528_v14  ;;  %v3557_v46 = vadd.f32 1.0, %v3555_v28 }
0x10cb   :  { %3986 = vrcp.f32 %v3559_v48  ;;  %v3549_v47 = vsel %vm3548_vm3, %v3528_v14, %v3547_v29 }
0x10cc   :  { %v3552_v50 = vsel %vm3550_vm4, %v3551_v45, %v3549_v47 }
0x10cd   :  { %v3554_v52 = vmax.f32 %v3552_v50, 1e-07 }
0x10cf   :  { %v3556_v44 = vmin.f32 %v3554_v52, 0.99999  ;;  %v3506_v2 = vpop.permute.xlu1 %3505 }
0x10d0   :  { %v3514_v37 = vsel %vm3513_vm14, %v3511_v39, %v3506_v2 }
0x10d1   :  { %v3987_v51 = vpop.eup %3986  ;;  %v3560_v31 = vsub.f32 1.0, %v3556_v44  ;;  %v3517_v58 = vsel %vm3516_vm1, %v3514_v37, 0.0  ;;  %v3558_v53 = vadd.f32 1.0, %v3556_v44 }
0x10d2   :  { %3519 = vst [vmem:[%s5382_s18] sm:$0xff] %v3517_v58  ;;  %v3563_v24 = vmul.f32 %v3987_v51, %v3557_v46 }
0x10d3   :  { %3988 = vrcp.f32 %v3560_v31 }
0x10d4   :  { %3990 = vlog2.f32 %v3563_v24 }
0x10d9   :  { %v3989_v32 = vpop.eup %3988 }
0x10da   :  { %v3991_v36 = vpop.eup %3990  ;;  %v3564_v49 = vmul.f32 %v3989_v32, %v3558_v53 }
0x10db   :  { %v3566_v60 = vmul.f32 0.6931472, %v3991_v36 }
0x10dc   :  { %3992 = vlog2.f32 %v3564_v49 }
0x10dd   :  { %3994 = vrcp.f32 %v3555_v28  ;;  %v3569_v34 = vmul.f32 0.5, %v3566_v60 }
0x10de   :  { %3996 = vrcp.f32 %v3556_v44 }
0x10e2   :  { %v3993_v10 = vpop.eup %3992 }
0x10e3   :  { %v3568_v61 = vmul.f32 0.6931472, %v3993_v10  ;;  %v3995_v56 = vpop.eup %3994 }
0x10e4   :  { %v3573_v35 = vmul.f32 %v3995_v56, %v3569_v34  ;;  %v3997_v1 = vpop.eup %3996 }
0x10e5   :  { %v3570_v42 = vmul.f32 0.5, %v3568_v61 }
0x10e6   :  { %v3575_v54 = vmul.f32 %v3573_v35, %v5317_v25 }
0x10e7   :  { %v3574_v30 = vmul.f32 %v3997_v1, %v3570_v42 }
0x10e9   :  { %v3576_v23 = vmul.f32 %v3574_v30, %v5322_v63 }
0x10eb   :  { %v3577_v59 = vpack.c.bf16 %v3576_v23, %v3575_v54 }
0x10ed   :  { %3784 = vmatmul.msk.bf16.vlgmr.msra.gmra.mxu1 %vm65_vm0, %v3577_v59 }
0x116a   :  { %v3610_v0 = vpop.f32.mrf.mxu1 }
0x116b   :  { %v3611_v3 = vadd.f32 %v3891_v8, %v3610_v0 }
0x116d   :  { %3615 = vst [vmem:[%s5383_s20] sm:$0xff] %v3611_v3 }
0x1172   :  { %v3612_v40 = vpop.f32.mrf.mxu1 }
0x1173   :  { %v3613_v38 = vadd.f32 %v3891_v8, %v3612_v40 }
0x1175   :  { %3616 = vst [vmem:[%s5383_s20 + $0x8] sm:$0xff] %v3613_v38 }

</bundles_post_ra>
